<compile_context>
chip_gen: v7x
topology: tpu7x:2x2x1
jax: 0.10.0
libtpu: 0.0.40
codegen_flags: <defaults>
</compile_context>

<pallas_src>
import functools
import math

import jax
import jax.numpy as jnp
from jax import lax
from jax.experimental import pallas as pl
from jax.experimental.pallas import tpu as pltpu


def _round_up(x, m):
    return (x + m - 1) // m * m


@functools.lru_cache(maxsize=1)
def _num_cores():
    """TensorCores per chip that 'parallel' grid axes can shard over (megacore)."""
    try:
        kind = jax.devices()[0].device_kind.lower()
        if "v7" in kind or "v4" in kind:
            return 2
    except Exception:
        pass
    return 1


def _pick_tile(total, cap):
    """Largest multiple-of-128 tile <= cap dividing `total` (total is a mult of 128)."""
    if total <= cap:
        return total
    best = 128
    d = 256
    while d <= cap:
        if total % d == 0:
            best = d
        d += 128
    return best


def _pick_m(M):
    """(Mp, tm): pad M to a multiple of 16 (bf16 sublane packing), cap tile at 256."""
    if M <= 256:
        Mp = _round_up(M, 16)
        return Mp, Mp
    Mp256 = _round_up(M, 256)
    Mp128 = _round_up(M, 128)
    if Mp128 < Mp256:
        return Mp128, 128
    return Mp256, 256


# ----------------------------------------------------------------------------
# Pallas kernels: fused matmul  (X @ W_scaled) + bias [+ residual] [-> ReLU]
#   X, W, residual are bf16; accumulation and epilogue are f32.
# ----------------------------------------------------------------------------
def _matmul_kernel_single(x_ref, w_ref, b_ref, *rest, relu, residual):
    """Single K-step: no accumulator scratch, no k grid axis."""
    if residual:
        r_ref, o_ref = rest
    else:
        (o_ref,) = rest
    y = jnp.dot(x_ref[...], w_ref[...], preferred_element_type=jnp.float32)
    y = y + b_ref[...]
    if residual:
        y = y + r_ref[...].astype(jnp.float32)
    if relu:
        y = jnp.maximum(y, 0.0)
    o_ref[...] = y.astype(o_ref.dtype)


def _matmul_kernel_multi(x_ref, w_ref, b_ref, *rest, relu, residual):
    """Multi K-step fallback: f32 VMEM accumulator, first partial written directly."""
    if residual:
        r_ref, o_ref, acc_ref = rest
    else:
        o_ref, acc_ref = rest
    k = pl.program_id(2)
    part = jnp.dot(x_ref[...], w_ref[...], preferred_element_type=jnp.float32)

    @pl.when(k == 0)
    def _():
        acc_ref[...] = part

    @pl.when(k > 0)
    def _():
        acc_ref[...] += part

    @pl.when(k == pl.num_programs(2) - 1)
    def _():
        y = acc_ref[...] + b_ref[...]
        if residual:
            y = y + r_ref[...].astype(jnp.float32)
        if relu:
            y = jnp.maximum(y, 0.0)
        o_ref[...] = y.astype(o_ref.dtype)


_TK_CAP = 6144                    # big enough that every conv here is one K step
_VMEM_LIMIT = 32 * 1024 * 1024    # raise v5e's 16 MiB default; <= every physical VMEM


def fused_matmul(x, w, bias, residual=None, relu=False, out_dtype=jnp.bfloat16):
    """x:(M,K) bf16, w:(Kp,Np) prepacked bf16 (BN scale folded), bias:(1,Np) f32,
    residual:(M,N) bf16 or None. Returns (M, Np) out_dtype."""
    M, K = x.shape
    Kp, Np = w.shape
    n_cores = _num_cores()

    Mp, tm = _pick_m(M)
    tk = _pick_tile(Kp, _TK_CAP)
    tn = _pick_tile(Np, 512 if n_cores == 1 else 256)
    # 2-TensorCore chips: never leave a core idle when the parallel grid is 1x1.
    if n_cores >= 2 and Mp == tm and Np == tn:
        if Mp % 32 == 0:
            tm = Mp // 2          # stays a multiple of 16 (bf16 sublane packing)
        elif Np >= 256:
            tn = 128

    xp = x.astype(jnp.bfloat16)
    if Mp > M or Kp > K:
        xp = jnp.pad(xp, ((0, Mp - M), (0, Kp - K)))

    has_res = residual is not None
    operands = [xp, w, bias]
    if has_res:
        rp = residual.astype(jnp.bfloat16)
        rM, rN = rp.shape
        if Mp > rM or Np > rN:
            rp = jnp.pad(rp, ((0, Mp - rM), (0, Np - rN)))
        operands.append(rp)

    num_k = Kp // tk
    if num_k == 1:
        in_specs = [
            pl.BlockSpec((tm, tk), lambda i, j: (i, 0)),
            pl.BlockSpec((tk, tn), lambda i, j: (0, j)),
            pl.BlockSpec((1, tn), lambda i, j: (0, j)),
        ]
        if has_res:
            in_specs.append(pl.BlockSpec((tm, tn), lambda i, j: (i, j)))
        grid = (Mp // tm, Np // tn)
        out_specs = pl.BlockSpec((tm, tn), lambda i, j: (i, j))
        scratch = []
        kernel = functools.partial(_matmul_kernel_single, relu=relu, residual=has_res)
        semantics = ("parallel", "parallel")
    else:
        in_specs = [
            pl.BlockSpec((tm, tk), lambda i, j, k: (i, k)),
            pl.BlockSpec((tk, tn), lambda i, j, k: (k, j)),
            pl.BlockSpec((1, tn), lambda i, j, k: (0, j)),
        ]
        if has_res:
            in_specs.append(pl.BlockSpec((tm, tn), lambda i, j, k: (i, j)))
        grid = (Mp // tm, Np // tn, num_k)
        out_specs = pl.BlockSpec((tm, tn), lambda i, j, k: (i, j))
        scratch = [pltpu.VMEM((tm, tn), jnp.float32)]
        kernel = functools.partial(_matmul_kernel_multi, relu=relu, residual=has_res)
        semantics = ("parallel", "parallel", "arbitrary")

    out = pl.pallas_call(
        kernel,
        out_shape=jax.ShapeDtypeStruct((Mp, Np), out_dtype),
        grid_spec=pltpu.PrefetchScalarGridSpec(
            num_scalar_prefetch=0,
            grid=grid,
            in_specs=in_specs,
            out_specs=out_specs,
            scratch_shapes=scratch,
        ),
        compiler_params=pltpu.CompilerParams(
            dimension_semantics=semantics,
            vmem_limit_bytes=_VMEM_LIMIT),
    )(*operands)
    return out if Mp == M else out[:M]


# ----------------------------------------------------------------------------
# Parameter pre-packing: fold BN scale into weights, transpose / pad / cast once.
# ----------------------------------------------------------------------------
def pack_conv(w, scale=None, bias=None):
    """w:(O,I,kh,kw) f32 -> {'w': (Kp,Np) bf16, 'b': (1,Np) f32, meta ints}."""
    O, I, kh, kw = w.shape
    K = kh * kw * I
    wmat = jnp.transpose(w, (2, 3, 1, 0)).reshape(K, O)          # (dy,dx,cin) x cout
    if scale is not None:
        wmat = wmat * scale[None, :]
    if bias is None:
        bias = jnp.zeros((O,), jnp.float32)
    Kp = _round_up(K, 128)
    Np = _round_up(O, 128)
    wpad = jnp.pad(wmat, ((0, Kp - K), (0, Np - O))).astype(jnp.bfloat16)
    bpad = jnp.pad(bias.astype(jnp.float32)[None, :], ((0, 0), (0, Np - O)))
    return {"w": wpad, "b": bpad, "kh": kh, "kw": kw, "cin": I, "cout": O}


# ----------------------------------------------------------------------------
# Conv2d (bias=False) + folded BN + optional residual + optional ReLU.
# im2col (pure data movement, fused by XLA under jit); matmul hot path in Pallas.
# ----------------------------------------------------------------------------
def conv2d_packed(x, pc, stride=1, padding=0, relu=False, residual=None,
                  out_dtype=jnp.bfloat16):
    """x: NHWC bf16; returns NHWC out_dtype."""
    N, H, W, Cin = x.shape
    kh, kw, O = pc["kh"], pc["kw"], pc["cout"]
    Kp = pc["w"].shape[0]
    Ho = (H + 2 * padding - kh) // stride + 1
    Wo = (W + 2 * padding - kw) // stride + 1

    if kh == 1 and kw == 1 and padding == 0:
        xcol = x[:, ::stride, ::stride, :].reshape(N * Ho * Wo, Cin)
    else:
        xp = jnp.pad(x, ((0, 0), (padding, padding), (padding, padding), (0, 0)))
        cols = []
        for dy in range(kh):
            for dx in range(kw):
                cols.append(xp[:, dy:dy + (Ho - 1) * stride + 1:stride,
                               dx:dx + (Wo - 1) * stride + 1:stride, :])
        K = kh * kw * Cin
        if Kp > K:  # emit the K padding inside the single concat (no second pad pass)
            cols.append(jnp.zeros((N, Ho, Wo, Kp - K), x.dtype))
        xcol = jnp.concatenate(cols, axis=-1).reshape(N * Ho * Wo, max(K, Kp))

    res = residual.reshape(N * Ho * Wo, O) if residual is not None else None
    y = fused_matmul(xcol, pc["w"], pc["b"], residual=res, relu=relu,
                     out_dtype=out_dtype)
    if y.shape[1] != O:
        y = y[:, :O]
    return y.reshape(N, Ho, Wo, O)


def maxpool2d_3x3_s2_p1(x):
    """MaxPool2d(kernel=3, stride=2, padding=1) as a single windowed pass."""
    neg = jnp.asarray(-jnp.inf, x.dtype)
    return lax.reduce_window(x, neg, lax.max,
                             window_dimensions=(1, 3, 3, 1),
                             window_strides=(1, 2, 2, 1),
                             padding=((0, 0), (1, 1), (1, 1), (0, 0)))


def upsample2x_nearest(x):
    """Single-pass nearest-neighbor 2x upsample (broadcast + reshape)."""
    N, H, W, C = x.shape
    x = jnp.broadcast_to(x[:, :, None, :, None, :], (N, H, 2, W, 2, C))
    return x.reshape(N, 2 * H, 2 * W, C)


# ----------------------------------------------------------------------------
# ResNet-50 (children[:-4]) + head conv + nearest 2x upsample
# ----------------------------------------------------------------------------
def bottleneck(x, bp):
    identity = x
    out = conv2d_packed(x, bp["conv1"], stride=1, padding=0, relu=True)
    out = conv2d_packed(out, bp["conv2"], stride=bp["stride"], padding=1, relu=True)
    if "down" in bp:
        identity = conv2d_packed(x, bp["down"], stride=bp["stride"], padding=0,
                                 relu=False)
    # conv3 + bn3 + residual add + final ReLU fused in the matmul epilogue
    out = conv2d_packed(out, bp["conv3"], stride=1, padding=0, relu=True,
                        residual=identity)
    return out


def modified_resnet50(x_nchw, pp):
    x = jnp.transpose(x_nchw, (0, 2, 3, 1)).astype(jnp.bfloat16)   # NHWC bf16
    # stem: conv7x7/s2 + BN + ReLU, then maxpool3x3/s2
    x = conv2d_packed(x, pp["stem"], stride=2, padding=3, relu=True)
    x = maxpool2d_3x3_s2_p1(x)
    for bp in pp["layer1"]:
        x = bottleneck(x, bp)
    for bp in pp["layer2"]:
        x = bottleneck(x, bp)
    # head conv: 512 -> 32, 3x3, pad 1, no bias, no BN, no ReLU (emitted in f32, tiny)
    x = conv2d_packed(x, pp["head"], stride=1, padding=1, relu=False,
                      out_dtype=jnp.float32)
    x = upsample2x_nearest(x)
    return jnp.transpose(x, (0, 3, 1, 2)).astype(jnp.float32)      # back to NCHW f32


# ----------------------------------------------------------------------------
# Deterministic synthetic parameters (shapes match torchvision resnet50)
# ----------------------------------------------------------------------------
class KeyGen:
    def __init__(self, key):
        self.key = key

    def __call__(self):
        self.key, sub = jax.random.split(self.key)
        return sub


def make_conv(kg, o, i, kh, kw):
    fan_in = i * kh * kw
    return jax.random.normal(kg(), (o, i, kh, kw), jnp.float32) / math.sqrt(fan_in)


def make_bn(kg, c, eps=1e-5):
    gamma = 1.0 + 0.1 * jax.random.normal(kg(), (c,), jnp.float32)
    beta = 0.1 * jax.random.normal(kg(), (c,), jnp.float32)
    mean = 0.1 * jax.random.normal(kg(), (c,), jnp.float32)
    var = 1.0 + 0.1 * jnp.abs(jax.random.normal(kg(), (c,), jnp.float32))
    scale = gamma / jnp.sqrt(var + eps)
    bias = beta - mean * scale
    return scale, bias


def make_bottleneck_params(kg, inplanes, planes, stride, downsample):
    out_c = planes * 4
    p = {"stride": stride}
    p["conv1_w"] = make_conv(kg, planes, inplanes, 1, 1)
    p["bn1_s"], p["bn1_b"] = make_bn(kg, planes)
    p["conv2_w"] = make_conv(kg, planes, planes, 3, 3)
    p["bn2_s"], p["bn2_b"] = make_bn(kg, planes)
    p["conv3_w"] = make_conv(kg, out_c, planes, 1, 1)
    p["bn3_s"], p["bn3_b"] = make_bn(kg, out_c)
    if downsample:
        p["down_w"] = make_conv(kg, out_c, inplanes, 1, 1)
        p["dbn_s"], p["dbn_b"] = make_bn(kg, out_c)
    return p


def make_params(key):
    kg = KeyGen(key)
    params = {}
    params["stem_w"] = make_conv(kg, 64, 3, 7, 7)
    params["stem_s"], params["stem_b"] = make_bn(kg, 64)
    layer1 = [make_bottleneck_params(kg, 64, 64, 1, True)]
    for _ in range(2):
        layer1.append(make_bottleneck_params(kg, 256, 64, 1, False))
    params["layer1"] = layer1
    layer2 = [make_bottleneck_params(kg, 256, 128, 2, True)]
    for _ in range(3):
        layer2.append(make_bottleneck_params(kg, 512, 128, 1, False))
    params["layer2"] = layer2
    params["head_w"] = make_conv(kg, 32, 512, 3, 3)
    return params


def pack_params(params):
    def pack_block(p):
        b = {"stride": p["stride"],
             "conv1": pack_conv(p["conv1_w"], p["bn1_s"], p["bn1_b"]),
             "conv2": pack_conv(p["conv2_w"], p["bn2_s"], p["bn2_b"]),
             "conv3": pack_conv(p["conv3_w"], p["bn3_s"], p["bn3_b"])}
        if "down_w" in p:
            b["down"] = pack_conv(p["down_w"], p["dbn_s"], p["dbn_b"])
        return b

    pp = {"stem": pack_conv(params["stem_w"], params["stem_s"], params["stem_b"])}
    pp["layer1"] = [pack_block(p) for p in params["layer1"]]
    pp["layer2"] = [pack_block(p) for p in params["layer2"]]
    pp["head"] = pack_conv(params["head_w"])
    return pp


if __name__ == "__main__":
    key = jax.random.PRNGKey(0)
    pkey, xkey = jax.random.split(key)
    params = make_params(pkey)
    packed = pack_params(params)   # fold BN, transpose/pad/cast weights ONCE

    # small input: batch=2, 3 channels (ResNet stem requires 3), 32x32 spatial (NCHW)
    x = jax.random.normal(xkey, (2, 3, 32, 32), jnp.float32)

    fwd = jax.jit(lambda inp: modified_resnet50(inp, packed))
    y = fwd(x)
    jax.block_until_ready(y)

    # 32x32 -> /2 (stem) -> /2 (maxpool) -> /2 (layer2) = 4x4; conv -> 32ch; x2 up -> 8x8
    assert y.shape == (2, 32, 8, 8), y.shape
    assert y.dtype == jnp.float32
    assert bool(jnp.all(jnp.isfinite(y)))
    print("KERNEL_OK")
</pallas_src>

<mosaic_0001>
module attributes {stable_mosaic.version = 11 : i64} {
  func.func @_matmul_kernel_single(%arg0: i32, %arg1: i32, %arg2: memref<256x256xbf16, #tpu.memory_space<vmem>>, %arg3: memref<256x128xbf16, #tpu.memory_space<vmem>>, %arg4: memref<1x128xf32, #tpu.memory_space<vmem>>, %arg5: memref<256x128xbf16, #tpu.memory_space<vmem>>) attributes {dimension_semantics = [#tpu.dimension_semantics<parallel>, #tpu.dimension_semantics<parallel>], iteration_bounds = array<i64: 2, 1>, scalar_prefetch = 0 : i64, scratch_operands = 0 : i64, tpu.core_type = #tpu.core_type<tc>, window_params = [{transform_indices = @transform_0, window_bounds = array<i64: 256, 256>}, {transform_indices = @transform_1, window_bounds = array<i64: 256, 128>}, {transform_indices = @transform_2, window_bounds = array<i64: 1, 128>}, {transform_indices = @transform_3, window_bounds = array<i64: 256, 128>}]} {
    %c0 = arith.constant 0 : index
    %c0_0 = arith.constant 0 : index
    %0 = vector.load %arg2[%c0, %c0_0] : memref<256x256xbf16, #tpu.memory_space<vmem>>, vector<256x256xbf16>
    %c0_1 = arith.constant 0 : index
    %c0_2 = arith.constant 0 : index
    %1 = vector.load %arg3[%c0_1, %c0_2] : memref<256x128xbf16, #tpu.memory_space<vmem>>, vector<256x128xbf16>
    %cst = arith.constant dense<0.000000e+00> : vector<256x128xf32>
    %2 = tpu.matmul %0, %1, %cst {dimension_numbers = #tpu.dot_dimension_numbers<[1], [0], [0], [1], [0, 0, 1, 1], [], []>} : vector<256x256xbf16>, vector<256x128xbf16>, vector<256x128xf32> -> vector<256x128xf32>
    %c0_3 = arith.constant 0 : index
    %c0_4 = arith.constant 0 : index
    %3 = vector.load %arg4[%c0_3, %c0_4] : memref<1x128xf32, #tpu.memory_space<vmem>>, vector<1x128xf32>
    %4 = vector.broadcast %3 : vector<1x128xf32> to vector<256x128xf32>
    %5 = arith.addf %2, %4 : vector<256x128xf32>
    %cst_5 = arith.constant 0.000000e+00 : f32
    %6 = vector.broadcast %cst_5 : f32 to vector<256x128xf32>
    %7 = arith.maximumf %5, %6 : vector<256x128xf32>
    %8 = arith.truncf %7 : vector<256x128xf32> to vector<256x128xbf16>
    %c0_6 = arith.constant 0 : index
    %c0_7 = arith.constant 0 : index
    %9 = vector.load %arg5[%c0_6, %c0_7] : memref<256x128xbf16, #tpu.memory_space<vmem>>, vector<256x128xbf16>
    tpu.vector_store %arg5[%c0_6, %c0_7], %8 {strides = array<i32>} : memref<256x128xbf16, #tpu.memory_space<vmem>>, vector<256x128xbf16>,
    return
  }
  func.func @transform_0(%arg0: i32, %arg1: i32) -> (i32, i32) {
    %c0_i32 = arith.constant 0 : i32
    %c0_i32_0 = arith.constant 0 : i32
    return %arg0, %c0_i32 : i32, i32
  }
  func.func @transform_1(%arg0: i32, %arg1: i32) -> (i32, i32) {
    %c0_i32 = arith.constant 0 : i32
    %c0_i32_0 = arith.constant 0 : i32
    return %c0_i32, %arg1 : i32, i32
  }
  func.func @transform_2(%arg0: i32, %arg1: i32) -> (i32, i32) {
    %c0_i32 = arith.constant 0 : i32
    %c0_i32_0 = arith.constant 0 : i32
    return %c0_i32, %arg1 : i32, i32
  }
  func.func @transform_3(%arg0: i32, %arg1: i32) -> (i32, i32) {
    %c0_i32 = arith.constant 0 : i32
    return %arg0, %arg1 : i32, i32
  }
}

module attributes {stable_mosaic.version = 11 : i64} {
  func.func @_matmul_kernel_single(%arg0: i32, %arg1: i32, %arg2: memref<128x128xbf16, #tpu.memory_space<vmem>>, %arg3: memref<128x128xbf16, #tpu.memory_space<vmem>>, %arg4: memref<1x128xf32, #tpu.memory_space<vmem>>, %arg5: memref<128x128xbf16, #tpu.memory_space<vmem>>) attributes {dimension_semantics = [#tpu.dimension_semantics<parallel>, #tpu.dimension_semantics<parallel>], iteration_bounds = array<i64: 1, 1>, scalar_prefetch = 0 : i64, scratch_operands = 0 : i64, tpu.core_type = #tpu.core_type<tc>, window_params = [{transform_indices = @transform_0, window_bounds = array<i64: 128, 128>}, {transform_indices = @transform_1, window_bounds = array<i64: 128, 128>}, {transform_indices = @transform_2, window_bounds = array<i64: 1, 128>}, {transform_indices = @transform_3, window_bounds = array<i64: 128, 128>}]} {
    %c0 = arith.constant 0 : index
    %c0_0 = arith.constant 0 : index
    %0 = vector.load %arg2[%c0, %c0_0] : memref<128x128xbf16, #tpu.memory_space<vmem>>, vector<128x128xbf16>
    %c0_1 = arith.constant 0 : index
    %c0_2 = arith.constant 0 : index
    %1 = vector.load %arg3[%c0_1, %c0_2] : memref<128x128xbf16, #tpu.memory_space<vmem>>, vector<128x128xbf16>
    %cst = arith.constant dense<0.000000e+00> : vector<128x128xf32>
    %2 = tpu.matmul %0, %1, %cst {dimension_numbers = #tpu.dot_dimension_numbers<[1], [0], [0], [1], [0, 0, 1, 1], [], []>} : vector<128x128xbf16>, vector<128x128xbf16>, vector<128x128xf32> -> vector<128x128xf32>
    %c0_3 = arith.constant 0 : index
    %c0_4 = arith.constant 0 : index
    %3 = vector.load %arg4[%c0_3, %c0_4] : memref<1x128xf32, #tpu.memory_space<vmem>>, vector<1x128xf32>
    %4 = vector.broadcast %3 : vector<1x128xf32> to vector<128x128xf32>
    %5 = arith.addf %2, %4 : vector<128x128xf32>
    %cst_5 = arith.constant 0.000000e+00 : f32
    %6 = vector.broadcast %cst_5 : f32 to vector<128x128xf32>
    %7 = arith.maximumf %5, %6 : vector<128x128xf32>
    %8 = arith.truncf %7 : vector<128x128xf32> to vector<128x128xbf16>
    %c0_6 = arith.constant 0 : index
    %c0_7 = arith.constant 0 : index
    %9 = vector.load %arg5[%c0_6, %c0_7] : memref<128x128xbf16, #tpu.memory_space<vmem>>, vector<128x128xbf16>
    tpu.vector_store %arg5[%c0_6, %c0_7], %8 {strides = array<i32>} : memref<128x128xbf16, #tpu.memory_space<vmem>>, vector<128x128xbf16>,
    return
  }
  func.func @transform_0(%arg0: i32, %arg1: i32) -> (i32, i32) {
    %c0_i32 = arith.constant 0 : i32
    %c0_i32_0 = arith.constant 0 : i32
    return %arg0, %c0_i32 : i32, i32
  }
  func.func @transform_1(%arg0: i32, %arg1: i32) -> (i32, i32) {
    %c0_i32 = arith.constant 0 : i32
    %c0_i32_0 = arith.constant 0 : i32
    return %c0_i32, %arg1 : i32, i32
  }
  func.func @transform_2(%arg0: i32, %arg1: i32) -> (i32, i32) {
    %c0_i32 = arith.constant 0 : i32
    %c0_i32_0 = arith.constant 0 : i32
    return %c0_i32, %arg1 : i32, i32
  }
  func.func @transform_3(%arg0: i32, %arg1: i32) -> (i32, i32) {
    %c0_i32 = arith.constant 0 : i32
    return %arg0, %arg1 : i32, i32
  }
}

module attributes {stable_mosaic.version = 11 : i64} {
  func.func @_matmul_kernel_single(%arg0: i32, %arg1: i32, %arg2: memref<128x640xbf16, #tpu.memory_space<vmem>>, %arg3: memref<640x128xbf16, #tpu.memory_space<vmem>>, %arg4: memref<1x128xf32, #tpu.memory_space<vmem>>, %arg5: memref<128x128xbf16, #tpu.memory_space<vmem>>) attributes {dimension_semantics = [#tpu.dimension_semantics<parallel>, #tpu.dimension_semantics<parallel>], iteration_bounds = array<i64: 1, 1>, scalar_prefetch = 0 : i64, scratch_operands = 0 : i64, tpu.core_type = #tpu.core_type<tc>, window_params = [{transform_indices = @transform_0, window_bounds = array<i64: 128, 640>}, {transform_indices = @transform_1, window_bounds = array<i64: 640, 128>}, {transform_indices = @transform_2, window_bounds = array<i64: 1, 128>}, {transform_indices = @transform_3, window_bounds = array<i64: 128, 128>}]} {
    %c0 = arith.constant 0 : index
    %c0_0 = arith.constant 0 : index
    %0 = vector.load %arg2[%c0, %c0_0] : memref<128x640xbf16, #tpu.memory_space<vmem>>, vector<128x640xbf16>
    %c0_1 = arith.constant 0 : index
    %c0_2 = arith.constant 0 : index
    %1 = vector.load %arg3[%c0_1, %c0_2] : memref<640x128xbf16, #tpu.memory_space<vmem>>, vector<640x128xbf16>
    %cst = arith.constant dense<0.000000e+00> : vector<128x128xf32>
    %2 = tpu.matmul %0, %1, %cst {dimension_numbers = #tpu.dot_dimension_numbers<[1], [0], [0], [1], [0, 0, 1, 1], [], []>} : vector<128x640xbf16>, vector<640x128xbf16>, vector<128x128xf32> -> vector<128x128xf32>
    %c0_3 = arith.constant 0 : index
    %c0_4 = arith.constant 0 : index
    %3 = vector.load %arg4[%c0_3, %c0_4] : memref<1x128xf32, #tpu.memory_space<vmem>>, vector<1x128xf32>
    %4 = vector.broadcast %3 : vector<1x128xf32> to vector<128x128xf32>
    %5 = arith.addf %2, %4 : vector<128x128xf32>
    %cst_5 = arith.constant 0.000000e+00 : f32
    %6 = vector.broadcast %cst_5 : f32 to vector<128x128xf32>
    %7 = arith.maximumf %5, %6 : vector<128x128xf32>
    %8 = arith.truncf %7 : vector<128x128xf32> to vector<128x128xbf16>
    %c0_6 = arith.constant 0 : index
    %c0_7 = arith.constant 0 : index
    %9 = vector.load %arg5[%c0_6, %c0_7] : memref<128x128xbf16, #tpu.memory_space<vmem>>, vector<128x128xbf16>
    tpu.vector_store %arg5[%c0_6, %c0_7], %8 {strides = array<i32>} : memref<128x128xbf16, #tpu.memory_space<vmem>>, vector<128x128xbf16>,
    return
  }
  func.func @transform_0(%arg0: i32, %arg1: i32) -> (i32, i32) {
    %c0_i32 = arith.constant 0 : i32
    %c0_i32_0 = arith.constant 0 : i32
    return %arg0, %c0_i32 : i32, i32
  }
  func.func @transform_1(%arg0: i32, %arg1: i32) -> (i32, i32) {
    %c0_i32 = arith.constant 0 : i32
    %c0_i32_0 = arith.constant 0 : i32
    return %c0_i32, %arg1 : i32, i32
  }
  func.func @transform_2(%arg0: i32, %arg1: i32) -> (i32, i32) {
    %c0_i32 = arith.constant 0 : i32
    %c0_i32_0 = arith.constant 0 : i32
    return %c0_i32, %arg1 : i32, i32
  }
  func.func @transform_3(%arg0: i32, %arg1: i32) -> (i32, i32) {
    %c0_i32 = arith.constant 0 : i32
    return %arg0, %arg1 : i32, i32
  }
}

module attributes {stable_mosaic.version = 11 : i64} {
  func.func @_matmul_kernel_single(%arg0: i32, %arg1: i32, %arg2: memref<128x128xbf16, #tpu.memory_space<vmem>>, %arg3: memref<128x256xbf16, #tpu.memory_space<vmem>>, %arg4: memref<1x256xf32, #tpu.memory_space<vmem>>, %arg5: memref<128x256xbf16, #tpu.memory_space<vmem>>) attributes {dimension_semantics = [#tpu.dimension_semantics<parallel>, #tpu.dimension_semantics<parallel>], iteration_bounds = array<i64: 1, 1>, scalar_prefetch = 0 : i64, scratch_operands = 0 : i64, tpu.core_type = #tpu.core_type<tc>, window_params = [{transform_indices = @transform_0, window_bounds = array<i64: 128, 128>}, {transform_indices = @transform_1, window_bounds = array<i64: 128, 256>}, {transform_indices = @transform_2, window_bounds = array<i64: 1, 256>}, {transform_indices = @transform_3, window_bounds = array<i64: 128, 256>}]} {
    %c0 = arith.constant 0 : index
    %c0_0 = arith.constant 0 : index
    %0 = vector.load %arg2[%c0, %c0_0] : memref<128x128xbf16, #tpu.memory_space<vmem>>, vector<128x128xbf16>
    %c0_1 = arith.constant 0 : index
    %c0_2 = arith.constant 0 : index
    %1 = vector.load %arg3[%c0_1, %c0_2] : memref<128x256xbf16, #tpu.memory_space<vmem>>, vector<128x256xbf16>
    %cst = arith.constant dense<0.000000e+00> : vector<128x256xf32>
    %2 = tpu.matmul %0, %1, %cst {dimension_numbers = #tpu.dot_dimension_numbers<[1], [0], [0], [1], [0, 0, 1, 1], [], []>} : vector<128x128xbf16>, vector<128x256xbf16>, vector<128x256xf32> -> vector<128x256xf32>
    %c0_3 = arith.constant 0 : index
    %c0_4 = arith.constant 0 : index
    %3 = vector.load %arg4[%c0_3, %c0_4] : memref<1x256xf32, #tpu.memory_space<vmem>>, vector<1x256xf32>
    %4 = vector.broadcast %3 : vector<1x256xf32> to vector<128x256xf32>
    %5 = arith.addf %2, %4 : vector<128x256xf32>
    %6 = arith.truncf %5 : vector<128x256xf32> to vector<128x256xbf16>
    %c0_5 = arith.constant 0 : index
    %c0_6 = arith.constant 0 : index
    %7 = vector.load %arg5[%c0_5, %c0_6] : memref<128x256xbf16, #tpu.memory_space<vmem>>, vector<128x256xbf16>
    tpu.vector_store %arg5[%c0_5, %c0_6], %6 {strides = array<i32>} : memref<128x256xbf16, #tpu.memory_space<vmem>>, vector<128x256xbf16>,
    return
  }
  func.func @transform_0(%arg0: i32, %arg1: i32) -> (i32, i32) {
    %c0_i32 = arith.constant 0 : i32
    %c0_i32_0 = arith.constant 0 : i32
    return %arg0, %c0_i32 : i32, i32
  }
  func.func @transform_1(%arg0: i32, %arg1: i32) -> (i32, i32) {
    %c0_i32 = arith.constant 0 : i32
    %c0_i32_0 = arith.constant 0 : i32
    return %c0_i32, %arg1 : i32, i32
  }
  func.func @transform_2(%arg0: i32, %arg1: i32) -> (i32, i32) {
    %c0_i32 = arith.constant 0 : i32
    %c0_i32_0 = arith.constant 0 : i32
    return %c0_i32, %arg1 : i32, i32
  }
  func.func @transform_3(%arg0: i32, %arg1: i32) -> (i32, i32) {
    %c0_i32 = arith.constant 0 : i32
    return %arg0, %arg1 : i32, i32
  }
}

module attributes {stable_mosaic.version = 11 : i64} {
  func.func @_matmul_kernel_single(%arg0: i32, %arg1: i32, %arg2: memref<128x128xbf16, #tpu.memory_space<vmem>>, %arg3: memref<128x256xbf16, #tpu.memory_space<vmem>>, %arg4: memref<1x256xf32, #tpu.memory_space<vmem>>, %arg5: memref<128x256xbf16, #tpu.memory_space<vmem>>, %arg6: memref<128x256xbf16, #tpu.memory_space<vmem>>) attributes {dimension_semantics = [#tpu.dimension_semantics<parallel>, #tpu.dimension_semantics<parallel>], iteration_bounds = array<i64: 1, 1>, scalar_prefetch = 0 : i64, scratch_operands = 0 : i64, tpu.core_type = #tpu.core_type<tc>, window_params = [{transform_indices = @transform_0, window_bounds = array<i64: 128, 128>}, {transform_indices = @transform_1, window_bounds = array<i64: 128, 256>}, {transform_indices = @transform_2, window_bounds = array<i64: 1, 256>}, {transform_indices = @transform_3, window_bounds = array<i64: 128, 256>}, {transform_indices = @transform_4, window_bounds = array<i64: 128, 256>}]} {
    %c0 = arith.constant 0 : index
    %c0_0 = arith.constant 0 : index
    %0 = vector.load %arg2[%c0, %c0_0] : memref<128x128xbf16, #tpu.memory_space<vmem>>, vector<128x128xbf16>
    %c0_1 = arith.constant 0 : index
    %c0_2 = arith.constant 0 : index
    %1 = vector.load %arg3[%c0_1, %c0_2] : memref<128x256xbf16, #tpu.memory_space<vmem>>, vector<128x256xbf16>
    %cst = arith.constant dense<0.000000e+00> : vector<128x256xf32>
    %2 = tpu.matmul %0, %1, %cst {dimension_numbers = #tpu.dot_dimension_numbers<[1], [0], [0], [1], [0, 0, 1, 1], [], []>} : vector<128x128xbf16>, vector<128x256xbf16>, vector<128x256xf32> -> vector<128x256xf32>
    %c0_3 = arith.constant 0 : index
    %c0_4 = arith.constant 0 : index
    %3 = vector.load %arg4[%c0_3, %c0_4] : memref<1x256xf32, #tpu.memory_space<vmem>>, vector<1x256xf32>
    %4 = vector.broadcast %3 : vector<1x256xf32> to vector<128x256xf32>
    %5 = arith.addf %2, %4 : vector<128x256xf32>
    %c0_5 = arith.constant 0 : index
    %c0_6 = arith.constant 0 : index
    %6 = vector.load %arg5[%c0_5, %c0_6] : memref<128x256xbf16, #tpu.memory_space<vmem>>, vector<128x256xbf16>
    %7 = arith.extf %6 : vector<128x256xbf16> to vector<128x256xf32>
    %8 = arith.addf %5, %7 : vector<128x256xf32>
    %cst_7 = arith.constant 0.000000e+00 : f32
    %9 = vector.broadcast %cst_7 : f32 to vector<128x256xf32>
    %10 = arith.maximumf %8, %9 : vector<128x256xf32>
    %11 = arith.truncf %10 : vector<128x256xf32> to vector<128x256xbf16>
    %c0_8 = arith.constant 0 : index
    %c0_9 = arith.constant 0 : index
    %12 = vector.load %arg6[%c0_8, %c0_9] : memref<128x256xbf16, #tpu.memory_space<vmem>>, vector<128x256xbf16>
    tpu.vector_store %arg6[%c0_8, %c0_9], %11 {strides = array<i32>} : memref<128x256xbf16, #tpu.memory_space<vmem>>, vector<128x256xbf16>,
    return
  }
  func.func @transform_0(%arg0: i32, %arg1: i32) -> (i32, i32) {
    %c0_i32 = arith.constant 0 : i32
    %c0_i32_0 = arith.constant 0 : i32
    return %arg0, %c0_i32 : i32, i32
  }
  func.func @transform_1(%arg0: i32, %arg1: i32) -> (i32, i32) {
    %c0_i32 = arith.constant 0 : i32
    %c0_i32_0 = arith.constant 0 : i32
    return %c0_i32, %arg1 : i32, i32
  }
  func.func @transform_2(%arg0: i32, %arg1: i32) -> (i32, i32) {
    %c0_i32 = arith.constant 0 : i32
    %c0_i32_0 = arith.constant 0 : i32
    return %c0_i32, %arg1 : i32, i32
  }
  func.func @transform_3(%arg0: i32, %arg1: i32) -> (i32, i32) {
    %c0_i32 = arith.constant 0 : i32
    return %arg0, %arg1 : i32, i32
  }
  func.func @transform_4(%arg0: i32, %arg1: i32) -> (i32, i32) {
    %c0_i32 = arith.constant 0 : i32
    return %arg0, %arg1 : i32, i32
  }
}

module attributes {stable_mosaic.version = 11 : i64} {
  func.func @_matmul_kernel_single(%arg0: i32, %arg1: i32, %arg2: memref<128x256xbf16, #tpu.memory_space<vmem>>, %arg3: memref<256x128xbf16, #tpu.memory_space<vmem>>, %arg4: memref<1x128xf32, #tpu.memory_space<vmem>>, %arg5: memref<128x128xbf16, #tpu.memory_space<vmem>>) attributes {dimension_semantics = [#tpu.dimension_semantics<parallel>, #tpu.dimension_semantics<parallel>], iteration_bounds = array<i64: 1, 1>, scalar_prefetch = 0 : i64, scratch_operands = 0 : i64, tpu.core_type = #tpu.core_type<tc>, window_params = [{transform_indices = @transform_0, window_bounds = array<i64: 128, 256>}, {transform_indices = @transform_1, window_bounds = array<i64: 256, 128>}, {transform_indices = @transform_2, window_bounds = array<i64: 1, 128>}, {transform_indices = @transform_3, window_bounds = array<i64: 128, 128>}]} {
    %c0 = arith.constant 0 : index
    %c0_0 = arith.constant 0 : index
    %0 = vector.load %arg2[%c0, %c0_0] : memref<128x256xbf16, #tpu.memory_space<vmem>>, vector<128x256xbf16>
    %c0_1 = arith.constant 0 : index
    %c0_2 = arith.constant 0 : index
    %1 = vector.load %arg3[%c0_1, %c0_2] : memref<256x128xbf16, #tpu.memory_space<vmem>>, vector<256x128xbf16>
    %cst = arith.constant dense<0.000000e+00> : vector<128x128xf32>
    %2 = tpu.matmul %0, %1, %cst {dimension_numbers = #tpu.dot_dimension_numbers<[1], [0], [0], [1], [0, 0, 1, 1], [], []>} : vector<128x256xbf16>, vector<256x128xbf16>, vector<128x128xf32> -> vector<128x128xf32>
    %c0_3 = arith.constant 0 : index
    %c0_4 = arith.constant 0 : index
    %3 = vector.load %arg4[%c0_3, %c0_4] : memref<1x128xf32, #tpu.memory_space<vmem>>, vector<1x128xf32>
    %4 = vector.broadcast %3 : vector<1x128xf32> to vector<128x128xf32>
    %5 = arith.addf %2, %4 : vector<128x128xf32>
    %cst_5 = arith.constant 0.000000e+00 : f32
    %6 = vector.broadcast %cst_5 : f32 to vector<128x128xf32>
    %7 = arith.maximumf %5, %6 : vector<128x128xf32>
    %8 = arith.truncf %7 : vector<128x128xf32> to vector<128x128xbf16>
    %c0_6 = arith.constant 0 : index
    %c0_7 = arith.constant 0 : index
    %9 = vector.load %arg5[%c0_6, %c0_7] : memref<128x128xbf16, #tpu.memory_space<vmem>>, vector<128x128xbf16>
    tpu.vector_store %arg5[%c0_6, %c0_7], %8 {strides = array<i32>} : memref<128x128xbf16, #tpu.memory_space<vmem>>, vector<128x128xbf16>,
    return
  }
  func.func @transform_0(%arg0: i32, %arg1: i32) -> (i32, i32) {
    %c0_i32 = arith.constant 0 : i32
    %c0_i32_0 = arith.constant 0 : i32
    return %arg0, %c0_i32 : i32, i32
  }
  func.func @transform_1(%arg0: i32, %arg1: i32) -> (i32, i32) {
    %c0_i32 = arith.constant 0 : i32
    %c0_i32_0 = arith.constant 0 : i32
    return %c0_i32, %arg1 : i32, i32
  }
  func.func @transform_2(%arg0: i32, %arg1: i32) -> (i32, i32) {
    %c0_i32 = arith.constant 0 : i32
    %c0_i32_0 = arith.constant 0 : i32
    return %c0_i32, %arg1 : i32, i32
  }
  func.func @transform_3(%arg0: i32, %arg1: i32) -> (i32, i32) {
    %c0_i32 = arith.constant 0 : i32
    return %arg0, %arg1 : i32, i32
  }
}

module attributes {stable_mosaic.version = 11 : i64} {
  func.func @_matmul_kernel_single(%arg0: i32, %arg1: i32, %arg2: memref<32x1152xbf16, #tpu.memory_space<vmem>>, %arg3: memref<1152x128xbf16, #tpu.memory_space<vmem>>, %arg4: memref<1x128xf32, #tpu.memory_space<vmem>>, %arg5: memref<32x128xbf16, #tpu.memory_space<vmem>>) attributes {dimension_semantics = [#tpu.dimension_semantics<parallel>, #tpu.dimension_semantics<parallel>], iteration_bounds = array<i64: 1, 1>, scalar_prefetch = 0 : i64, scratch_operands = 0 : i64, tpu.core_type = #tpu.core_type<tc>, window_params = [{transform_indices = @transform_0, window_bounds = array<i64: 32, 1152>}, {transform_indices = @transform_1, window_bounds = array<i64: 1152, 128>}, {transform_indices = @transform_2, window_bounds = array<i64: 1, 128>}, {transform_indices = @transform_3, window_bounds = array<i64: 32, 128>}]} {
    %c0 = arith.constant 0 : index
    %c0_0 = arith.constant 0 : index
    %0 = vector.load %arg2[%c0, %c0_0] : memref<32x1152xbf16, #tpu.memory_space<vmem>>, vector<32x1152xbf16>
    %c0_1 = arith.constant 0 : index
    %c0_2 = arith.constant 0 : index
    %1 = vector.load %arg3[%c0_1, %c0_2] : memref<1152x128xbf16, #tpu.memory_space<vmem>>, vector<1152x128xbf16>
    %cst = arith.constant dense<0.000000e+00> : vector<32x128xf32>
    %2 = tpu.matmul %0, %1, %cst {dimension_numbers = #tpu.dot_dimension_numbers<[1], [0], [0], [1], [0, 0, 1, 1], [], []>} : vector<32x1152xbf16>, vector<1152x128xbf16>, vector<32x128xf32> -> vector<32x128xf32>
    %c0_3 = arith.constant 0 : index
    %c0_4 = arith.constant 0 : index
    %3 = vector.load %arg4[%c0_3, %c0_4] : memref<1x128xf32, #tpu.memory_space<vmem>>, vector<1x128xf32>
    %4 = vector.broadcast %3 : vector<1x128xf32> to vector<32x128xf32>
    %5 = arith.addf %2, %4 : vector<32x128xf32>
    %cst_5 = arith.constant 0.000000e+00 : f32
    %6 = vector.broadcast %cst_5 : f32 to vector<32x128xf32>
    %7 = arith.maximumf %5, %6 : vector<32x128xf32>
    %8 = arith.truncf %7 : vector<32x128xf32> to vector<32x128xbf16>
    %c0_6 = arith.constant 0 : index
    %c0_7 = arith.constant 0 : index
    %9 = vector.load %arg5[%c0_6, %c0_7] : memref<32x128xbf16, #tpu.memory_space<vmem>>, vector<32x128xbf16>
    tpu.vector_store %arg5[%c0_6, %c0_7], %8 {strides = array<i32>} : memref<32x128xbf16, #tpu.memory_space<vmem>>, vector<32x128xbf16>,
    return
  }
  func.func @transform_0(%arg0: i32, %arg1: i32) -> (i32, i32) {
    %c0_i32 = arith.constant 0 : i32
    %c0_i32_0 = arith.constant 0 : i32
    return %arg0, %c0_i32 : i32, i32
  }
  func.func @transform_1(%arg0: i32, %arg1: i32) -> (i32, i32) {
    %c0_i32 = arith.constant 0 : i32
    %c0_i32_0 = arith.constant 0 : i32
    return %c0_i32, %arg1 : i32, i32
  }
  func.func @transform_2(%arg0: i32, %arg1: i32) -> (i32, i32) {
    %c0_i32 = arith.constant 0 : i32
    %c0_i32_0 = arith.constant 0 : i32
    return %c0_i32, %arg1 : i32, i32
  }
  func.func @transform_3(%arg0: i32, %arg1: i32) -> (i32, i32) {
    %c0_i32 = arith.constant 0 : i32
    return %arg0, %arg1 : i32, i32
  }
}

module attributes {stable_mosaic.version = 11 : i64} {
  func.func @_matmul_kernel_single(%arg0: i32, %arg1: i32, %arg2: memref<32x256xbf16, #tpu.memory_space<vmem>>, %arg3: memref<256x512xbf16, #tpu.memory_space<vmem>>, %arg4: memref<1x512xf32, #tpu.memory_space<vmem>>, %arg5: memref<32x512xbf16, #tpu.memory_space<vmem>>) attributes {dimension_semantics = [#tpu.dimension_semantics<parallel>, #tpu.dimension_semantics<parallel>], iteration_bounds = array<i64: 1, 1>, scalar_prefetch = 0 : i64, scratch_operands = 0 : i64, tpu.core_type = #tpu.core_type<tc>, window_params = [{transform_indices = @transform_0, window_bounds = array<i64: 32, 256>}, {transform_indices = @transform_1, window_bounds = array<i64: 256, 512>}, {transform_indices = @transform_2, window_bounds = array<i64: 1, 512>}, {transform_indices = @transform_3, window_bounds = array<i64: 32, 512>}]} {
    %c0 = arith.constant 0 : index
    %c0_0 = arith.constant 0 : index
    %0 = vector.load %arg2[%c0, %c0_0] : memref<32x256xbf16, #tpu.memory_space<vmem>>, vector<32x256xbf16>
    %c0_1 = arith.constant 0 : index
    %c0_2 = arith.constant 0 : index
    %1 = vector.load %arg3[%c0_1, %c0_2] : memref<256x512xbf16, #tpu.memory_space<vmem>>, vector<256x512xbf16>
    %cst = arith.constant dense<0.000000e+00> : vector<32x512xf32>
    %2 = tpu.matmul %0, %1, %cst {dimension_numbers = #tpu.dot_dimension_numbers<[1], [0], [0], [1], [0, 0, 1, 1], [], []>} : vector<32x256xbf16>, vector<256x512xbf16>, vector<32x512xf32> -> vector<32x512xf32>
    %c0_3 = arith.constant 0 : index
    %c0_4 = arith.constant 0 : index
    %3 = vector.load %arg4[%c0_3, %c0_4] : memref<1x512xf32, #tpu.memory_space<vmem>>, vector<1x512xf32>
    %4 = vector.broadcast %3 : vector<1x512xf32> to vector<32x512xf32>
    %5 = arith.addf %2, %4 : vector<32x512xf32>
    %6 = arith.truncf %5 : vector<32x512xf32> to vector<32x512xbf16>
    %c0_5 = arith.constant 0 : index
    %c0_6 = arith.constant 0 : index
    %7 = vector.load %arg5[%c0_5, %c0_6] : memref<32x512xbf16, #tpu.memory_space<vmem>>, vector<32x512xbf16>
    tpu.vector_store %arg5[%c0_5, %c0_6], %6 {strides = array<i32>} : memref<32x512xbf16, #tpu.memory_space<vmem>>, vector<32x512xbf16>,
    return
  }
  func.func @transform_0(%arg0: i32, %arg1: i32) -> (i32, i32) {
    %c0_i32 = arith.constant 0 : i32
    %c0_i32_0 = arith.constant 0 : i32
    return %arg0, %c0_i32 : i32, i32
  }
  func.func @transform_1(%arg0: i32, %arg1: i32) -> (i32, i32) {
    %c0_i32 = arith.constant 0 : i32
    %c0_i32_0 = arith.constant 0 : i32
    return %c0_i32, %arg1 : i32, i32
  }
  func.func @transform_2(%arg0: i32, %arg1: i32) -> (i32, i32) {
    %c0_i32 = arith.constant 0 : i32
    %c0_i32_0 = arith.constant 0 : i32
    return %c0_i32, %arg1 : i32, i32
  }
  func.func @transform_3(%arg0: i32, %arg1: i32) -> (i32, i32) {
    %c0_i32 = arith.constant 0 : i32
    return %arg0, %arg1 : i32, i32
  }
}

module attributes {stable_mosaic.version = 11 : i64} {
  func.func @_matmul_kernel_single(%arg0: i32, %arg1: i32, %arg2: memref<32x128xbf16, #tpu.memory_space<vmem>>, %arg3: memref<128x512xbf16, #tpu.memory_space<vmem>>, %arg4: memref<1x512xf32, #tpu.memory_space<vmem>>, %arg5: memref<32x512xbf16, #tpu.memory_space<vmem>>, %arg6: memref<32x512xbf16, #tpu.memory_space<vmem>>) attributes {dimension_semantics = [#tpu.dimension_semantics<parallel>, #tpu.dimension_semantics<parallel>], iteration_bounds = array<i64: 1, 1>, scalar_prefetch = 0 : i64, scratch_operands = 0 : i64, tpu.core_type = #tpu.core_type<tc>, window_params = [{transform_indices = @transform_0, window_bounds = array<i64: 32, 128>}, {transform_indices = @transform_1, window_bounds = array<i64: 128, 512>}, {transform_indices = @transform_2, window_bounds = array<i64: 1, 512>}, {transform_indices = @transform_3, window_bounds = array<i64: 32, 512>}, {transform_indices = @transform_4, window_bounds = array<i64: 32, 512>}]} {
    %c0 = arith.constant 0 : index
    %c0_0 = arith.constant 0 : index
    %0 = vector.load %arg2[%c0, %c0_0] : memref<32x128xbf16, #tpu.memory_space<vmem>>, vector<32x128xbf16>
    %c0_1 = arith.constant 0 : index
    %c0_2 = arith.constant 0 : index
    %1 = vector.load %arg3[%c0_1, %c0_2] : memref<128x512xbf16, #tpu.memory_space<vmem>>, vector<128x512xbf16>
    %cst = arith.constant dense<0.000000e+00> : vector<32x512xf32>
    %2 = tpu.matmul %0, %1, %cst {dimension_numbers = #tpu.dot_dimension_numbers<[1], [0], [0], [1], [0, 0, 1, 1], [], []>} : vector<32x128xbf16>, vector<128x512xbf16>, vector<32x512xf32> -> vector<32x512xf32>
    %c0_3 = arith.constant 0 : index
    %c0_4 = arith.constant 0 : index
    %3 = vector.load %arg4[%c0_3, %c0_4] : memref<1x512xf32, #tpu.memory_space<vmem>>, vector<1x512xf32>
    %4 = vector.broadcast %3 : vector<1x512xf32> to vector<32x512xf32>
    %5 = arith.addf %2, %4 : vector<32x512xf32>
    %c0_5 = arith.constant 0 : index
    %c0_6 = arith.constant 0 : index
    %6 = vector.load %arg5[%c0_5, %c0_6] : memref<32x512xbf16, #tpu.memory_space<vmem>>, vector<32x512xbf16>
    %7 = arith.extf %6 : vector<32x512xbf16> to vector<32x512xf32>
    %8 = arith.addf %5, %7 : vector<32x512xf32>
    %cst_7 = arith.constant 0.000000e+00 : f32
    %9 = vector.broadcast %cst_7 : f32 to vector<32x512xf32>
    %10 = arith.maximumf %8, %9 : vector<32x512xf32>
    %11 = arith.truncf %10 : vector<32x512xf32> to vector<32x512xbf16>
    %c0_8 = arith.constant 0 : index
    %c0_9 = arith.constant 0 : index
    %12 = vector.load %arg6[%c0_8, %c0_9] : memref<32x512xbf16, #tpu.memory_space<vmem>>, vector<32x512xbf16>
    tpu.vector_store %arg6[%c0_8, %c0_9], %11 {strides = array<i32>} : memref<32x512xbf16, #tpu.memory_space<vmem>>, vector<32x512xbf16>,
    return
  }
  func.func @transform_0(%arg0: i32, %arg1: i32) -> (i32, i32) {
    %c0_i32 = arith.constant 0 : i32
    %c0_i32_0 = arith.constant 0 : i32
    return %arg0, %c0_i32 : i32, i32
  }
  func.func @transform_1(%arg0: i32, %arg1: i32) -> (i32, i32) {
    %c0_i32 = arith.constant 0 : i32
    %c0_i32_0 = arith.constant 0 : i32
    return %c0_i32, %arg1 : i32, i32
  }
  func.func @transform_2(%arg0: i32, %arg1: i32) -> (i32, i32) {
    %c0_i32 = arith.constant 0 : i32
    %c0_i32_0 = arith.constant 0 : i32
    return %c0_i32, %arg1 : i32, i32
  }
  func.func @transform_3(%arg0: i32, %arg1: i32) -> (i32, i32) {
    %c0_i32 = arith.constant 0 : i32
    return %arg0, %arg1 : i32, i32
  }
  func.func @transform_4(%arg0: i32, %arg1: i32) -> (i32, i32) {
    %c0_i32 = arith.constant 0 : i32
    return %arg0, %arg1 : i32, i32
  }
}

module attributes {stable_mosaic.version = 11 : i64} {
  func.func @_matmul_kernel_single(%arg0: i32, %arg1: i32, %arg2: memref<32x512xbf16, #tpu.memory_space<vmem>>, %arg3: memref<512x128xbf16, #tpu.memory_space<vmem>>, %arg4: memref<1x128xf32, #tpu.memory_space<vmem>>, %arg5: memref<32x128xbf16, #tpu.memory_space<vmem>>) attributes {dimension_semantics = [#tpu.dimension_semantics<parallel>, #tpu.dimension_semantics<parallel>], iteration_bounds = array<i64: 1, 1>, scalar_prefetch = 0 : i64, scratch_operands = 0 : i64, tpu.core_type = #tpu.core_type<tc>, window_params = [{transform_indices = @transform_0, window_bounds = array<i64: 32, 512>}, {transform_indices = @transform_1, window_bounds = array<i64: 512, 128>}, {transform_indices = @transform_2, window_bounds = array<i64: 1, 128>}, {transform_indices = @transform_3, window_bounds = array<i64: 32, 128>}]} {
    %c0 = arith.constant 0 : index
    %c0_0 = arith.constant 0 : index
    %0 = vector.load %arg2[%c0, %c0_0] : memref<32x512xbf16, #tpu.memory_space<vmem>>, vector<32x512xbf16>
    %c0_1 = arith.constant 0 : index
    %c0_2 = arith.constant 0 : index
    %1 = vector.load %arg3[%c0_1, %c0_2] : memref<512x128xbf16, #tpu.memory_space<vmem>>, vector<512x128xbf16>
    %cst = arith.constant dense<0.000000e+00> : vector<32x128xf32>
    %2 = tpu.matmul %0, %1, %cst {dimension_numbers = #tpu.dot_dimension_numbers<[1], [0], [0], [1], [0, 0, 1, 1], [], []>} : vector<32x512xbf16>, vector<512x128xbf16>, vector<32x128xf32> -> vector<32x128xf32>
    %c0_3 = arith.constant 0 : index
    %c0_4 = arith.constant 0 : index
    %3 = vector.load %arg4[%c0_3, %c0_4] : memref<1x128xf32, #tpu.memory_space<vmem>>, vector<1x128xf32>
    %4 = vector.broadcast %3 : vector<1x128xf32> to vector<32x128xf32>
    %5 = arith.addf %2, %4 : vector<32x128xf32>
    %cst_5 = arith.constant 0.000000e+00 : f32
    %6 = vector.broadcast %cst_5 : f32 to vector<32x128xf32>
    %7 = arith.maximumf %5, %6 : vector<32x128xf32>
    %8 = arith.truncf %7 : vector<32x128xf32> to vector<32x128xbf16>
    %c0_6 = arith.constant 0 : index
    %c0_7 = arith.constant 0 : index
    %9 = vector.load %arg5[%c0_6, %c0_7] : memref<32x128xbf16, #tpu.memory_space<vmem>>, vector<32x128xbf16>
    tpu.vector_store %arg5[%c0_6, %c0_7], %8 {strides = array<i32>} : memref<32x128xbf16, #tpu.memory_space<vmem>>, vector<32x128xbf16>,
    return
  }
  func.func @transform_0(%arg0: i32, %arg1: i32) -> (i32, i32) {
    %c0_i32 = arith.constant 0 : i32
    %c0_i32_0 = arith.constant 0 : i32
    return %arg0, %c0_i32 : i32, i32
  }
  func.func @transform_1(%arg0: i32, %arg1: i32) -> (i32, i32) {
    %c0_i32 = arith.constant 0 : i32
    %c0_i32_0 = arith.constant 0 : i32
    return %c0_i32, %arg1 : i32, i32
  }
  func.func @transform_2(%arg0: i32, %arg1: i32) -> (i32, i32) {
    %c0_i32 = arith.constant 0 : i32
    %c0_i32_0 = arith.constant 0 : i32
    return %c0_i32, %arg1 : i32, i32
  }
  func.func @transform_3(%arg0: i32, %arg1: i32) -> (i32, i32) {
    %c0_i32 = arith.constant 0 : i32
    return %arg0, %arg1 : i32, i32
  }
}

module attributes {stable_mosaic.version = 11 : i64} {
  func.func @_matmul_kernel_single(%arg0: i32, %arg1: i32, %arg2: memref<32x4608xbf16, #tpu.memory_space<vmem>>, %arg3: memref<4608x128xbf16, #tpu.memory_space<vmem>>, %arg4: memref<1x128xf32, #tpu.memory_space<vmem>>, %arg5: memref<32x128xf32, #tpu.memory_space<vmem>>) attributes {dimension_semantics = [#tpu.dimension_semantics<parallel>, #tpu.dimension_semantics<parallel>], iteration_bounds = array<i64: 1, 1>, scalar_prefetch = 0 : i64, scratch_operands = 0 : i64, tpu.core_type = #tpu.core_type<tc>, window_params = [{transform_indices = @transform_0, window_bounds = array<i64: 32, 4608>}, {transform_indices = @transform_1, window_bounds = array<i64: 4608, 128>}, {transform_indices = @transform_2, window_bounds = array<i64: 1, 128>}, {transform_indices = @transform_3, window_bounds = array<i64: 32, 128>}]} {
    %c0 = arith.constant 0 : index
    %c0_0 = arith.constant 0 : index
    %0 = vector.load %arg2[%c0, %c0_0] : memref<32x4608xbf16, #tpu.memory_space<vmem>>, vector<32x4608xbf16>
    %c0_1 = arith.constant 0 : index
    %c0_2 = arith.constant 0 : index
    %1 = vector.load %arg3[%c0_1, %c0_2] : memref<4608x128xbf16, #tpu.memory_space<vmem>>, vector<4608x128xbf16>
    %cst = arith.constant dense<0.000000e+00> : vector<32x128xf32>
    %2 = tpu.matmul %0, %1, %cst {dimension_numbers = #tpu.dot_dimension_numbers<[1], [0], [0], [1], [0, 0, 1, 1], [], []>} : vector<32x4608xbf16>, vector<4608x128xbf16>, vector<32x128xf32> -> vector<32x128xf32>
    %c0_3 = arith.constant 0 : index
    %c0_4 = arith.constant 0 : index
    %3 = vector.load %arg4[%c0_3, %c0_4] : memref<1x128xf32, #tpu.memory_space<vmem>>, vector<1x128xf32>
    %4 = vector.broadcast %3 : vector<1x128xf32> to vector<32x128xf32>
    %5 = arith.addf %2, %4 : vector<32x128xf32>
    %c0_5 = arith.constant 0 : index
    %c0_6 = arith.constant 0 : index
    %6 = vector.load %arg5[%c0_5, %c0_6] : memref<32x128xf32, #tpu.memory_space<vmem>>, vector<32x128xf32>
    tpu.vector_store %arg5[%c0_5, %c0_6], %5 {strides = array<i32>} : memref<32x128xf32, #tpu.memory_space<vmem>>, vector<32x128xf32>,
    return
  }
  func.func @transform_0(%arg0: i32, %arg1: i32) -> (i32, i32) {
    %c0_i32 = arith.constant 0 : i32
    %c0_i32_0 = arith.constant 0 : i32
    return %arg0, %c0_i32 : i32, i32
  }
  func.func @transform_1(%arg0: i32, %arg1: i32) -> (i32, i32) {
    %c0_i32 = arith.constant 0 : i32
    %c0_i32_0 = arith.constant 0 : i32
    return %c0_i32, %arg1 : i32, i32
  }
  func.func @transform_2(%arg0: i32, %arg1: i32) -> (i32, i32) {
    %c0_i32 = arith.constant 0 : i32
    %c0_i32_0 = arith.constant 0 : i32
    return %c0_i32, %arg1 : i32, i32
  }
  func.func @transform_3(%arg0: i32, %arg1: i32) -> (i32, i32) {
    %c0_i32 = arith.constant 0 : i32
    return %arg0, %arg1 : i32, i32
  }
}

</mosaic_0001>

<bundles_post_ra>
// kernel: _lambda_.26
= control target key start
LH: loop header
LB: loop body
LE: loop exit
PB: predicated region body
PF: predicated region fallthrough
CT: control target
= control target key end

     0   :  { %s618_s1 = inlined_call_operand.vmem [shape: bf16[128,128], index: 1, kind: input, shape index: {}]   ;;  %s619_s0 = inlined_call_operand.vmem [shape: bf16[128,128], index: 0, kind: input, shape index: {}]   ;;  %s620_s2 = inlined_call_operand.vmem [shape: f32[1,128], index: 2, kind: input, shape index: {}]   ;;  %s621_s3 = inlined_call_operand.vmem [shape: bf16[128,128], index: 3, kind: output, shape index: {}]  }
   0x1   :  { %v507_v0 = vld [vmem:[%s618_s1] sm:$0xff]   ;;  %v508_v1 = vld [vmem:[%s618_s1 + $0x8] sm:$0xff]   ;;  %v509_v2 = vld [vmem:[%s618_s1 + $0x10] sm:$0xff]  }
   0x2   :  { %459 = vmatprep.subr.bf16.mxu0 %v507_v0  ;;  %491 = vmatprep.subr.bf16.mxu1 %v507_v0  ;;  %v510_v3 = vld [vmem:[%s618_s1 + $0x18] sm:$0xff]   ;;  %v515_v4 = vld [vmem:[%s619_s0] sm:$0xff]   ;;  %v512_v7 = vld [vmem:[%s618_s1 + $0x28] sm:$0xff]  }
   0x3   :  { %460 = vmatpush3.bf16.msra.mxu0 %v507_v0  ;;  %499 = vmatpush3.bf16.msra.mxu1 %v507_v0  ;;  %v516_v5 = vld [vmem:[%s619_s0 + $0x20] sm:$0xff]   ;;  %v513_v8 = vld [vmem:[%s618_s1 + $0x30] sm:$0xff]   ;;  %v514_v9 = vld [vmem:[%s618_s1 + $0x38] sm:$0xff]  }
   0x4   :  { %461 = vmatprep.subr.bf16.mxu0 %v508_v1  ;;  %492 = vmatprep.subr.bf16.mxu1 %v508_v1  ;;  %v511_v6 = vld [vmem:[%s618_s1 + $0x20] sm:$0xff]   ;;  %v517_v10 = vld [vmem:[%s619_s0 + $0x8] sm:$0xff]   ;;  %v519_v12 = vld [vmem:[%s619_s0 + $0x10] sm:$0xff]  }
   0x5   :  { %475 = vmatprep.mubr.bf16.mxu0 %v515_v4  ;;  %483 = vmatprep.mubr.bf16.mxu1 %v516_v5  ;;  %v518_v11 = vld [vmem:[%s619_s0 + $0x28] sm:$0xff]   ;;  %v520_v13 = vld [vmem:[%s619_s0 + $0x30] sm:$0xff]   ;;  %v521_v14 = vld [vmem:[%s619_s0 + $0x18] sm:$0xff]  }
   0x6   :  { %v522_v15 = vld [vmem:[%s619_s0 + $0x38] sm:$0xff]   ;;  %v347_v16 = vld [vmem:[%s620_s2] ss:$0 sm:$0xff] }
   0x7   :  { %462 = vmatpush3.bf16.msra.mxu0 %v508_v1  ;;  %500 = vmatpush3.bf16.msra.mxu1 %v508_v1 }
   0x8   :  { %463 = vmatprep.subr.bf16.mxu0 %v509_v2  ;;  %493 = vmatprep.subr.bf16.mxu1 %v509_v2 }
   0xb   :  { %464 = vmatpush3.bf16.msra.mxu0 %v509_v2  ;;  %501 = vmatpush3.bf16.msra.mxu1 %v509_v2 }
   0xc   :  { %465 = vmatprep.subr.bf16.mxu0 %v510_v3  ;;  %494 = vmatprep.subr.bf16.mxu1 %v510_v3 }
   0xf   :  { %466 = vmatpush3.bf16.msra.mxu0 %v510_v3  ;;  %502 = vmatpush3.bf16.msra.mxu1 %v510_v3 }
  0x10   :  { %467 = vmatprep.subr.bf16.mxu0 %v511_v6  ;;  %495 = vmatprep.subr.bf16.mxu1 %v511_v6 }
  0x13   :  { %468 = vmatpush3.bf16.msra.mxu0 %v511_v6  ;;  %503 = vmatpush3.bf16.msra.mxu1 %v511_v6 }
  0x14   :  { %469 = vmatprep.subr.bf16.mxu0 %v512_v7  ;;  %496 = vmatprep.subr.bf16.mxu1 %v512_v7 }
  0x17   :  { %470 = vmatpush3.bf16.msra.mxu0 %v512_v7  ;;  %504 = vmatpush3.bf16.msra.mxu1 %v512_v7 }
  0x18   :  { %471 = vmatprep.subr.bf16.mxu0 %v513_v8  ;;  %497 = vmatprep.subr.bf16.mxu1 %v513_v8 }
  0x1b   :  { %472 = vmatpush3.bf16.msra.mxu0 %v513_v8  ;;  %505 = vmatpush3.bf16.msra.mxu1 %v513_v8 }
  0x1c   :  { %473 = vmatprep.subr.bf16.mxu0 %v514_v9  ;;  %498 = vmatprep.subr.bf16.mxu1 %v514_v9 }
  0x1f   :  { %474 = vmatpush3.bf16.msra.mxu0 %v514_v9  ;;  %506 = vmatpush3.bf16.msra.mxu1 %v514_v9 }
  0x22   :  { %476 = vmatmul.mubr.bf16.vlgmr.msra.gmra.mrb[0].mxu0 %v517_v10  ;;  %484 = vmatmul.mubr.bf16.vlgmr.msra.gmra.mrb[0].mxu1 %v518_v11 }
  0x23   :  { %479 = vmatprep.mubr.bf16.mxu0 %v519_v12  ;;  %487 = vmatprep.mubr.bf16.mxu1 %v520_v13 }
  0x2a   :  { %480 = vmatmul.mubr.bf16.gmra.mrb[4].mxu0 %v521_v14  ;;  %488 = vmatmul.mubr.bf16.gmra.mrb[4].mxu1 %v522_v15 }
  0xf5   :  { %v477_v17 = vpop.f32.mrb[0].mxu0  ;;  %v485_v18 = vpop.f32.mrb[0].mxu1 }
  0xf6   :  { %v193_v19 = vadd.f32 %v477_v17, %v347_v16  ;;  %v225_v20 = vadd.f32 %v485_v18, %v347_v16  ;;  %v184_v21 = vpop.f32.mrb[1].mxu0  ;;  %v216_v22 = vpop.f32.mrb[1].mxu1 }
  0xf7   :  { %v185_v23 = vadd.f32 %v347_v16, %v184_v21  ;;  %v217_v24 = vadd.f32 %v347_v16, %v216_v22  ;;  %v478_v25 = vpop.f32.mrb[2].mxu0  ;;  %v486_v26 = vpop.f32.mrb[2].mxu1 }
  0xf8   :  { %v196_v27 = vadd.f32 %v478_v25, %v347_v16  ;;  %v228_v28 = vadd.f32 %v486_v26, %v347_v16  ;;  %v187_v29 = vpop.f32.mrb[3].mxu0  ;;  %v219_v30 = vpop.f32.mrb[3].mxu1  ;;  %v249_v33 = vmax.f32 %v193_v19, 0.0  ;;  %v257_v34 = vmax.f32 %v225_v20, 0.0 }
  0xf9   :  { %v188_v31 = vadd.f32 %v347_v16, %v187_v29  ;;  %v220_v32 = vadd.f32 %v347_v16, %v219_v30  ;;  %v247_v37 = vmax.f32 %v185_v23, 0.0  ;;  %v255_v38 = vmax.f32 %v217_v24, 0.0 }
  0xfa   :  { %v250_v35 = vmax.f32 %v196_v27, 0.0  ;;  %v258_v36 = vmax.f32 %v228_v28, 0.0 }
  0xfb   :  { %v248_v39 = vmax.f32 %v188_v31, 0.0  ;;  %v256_v40 = vmax.f32 %v220_v32, 0.0 }
  0xfc   :  { %v404_v41 = vpack.c.bf16 %v250_v35, %v249_v33  ;;  %v424_v42 = vpack.c.bf16 %v258_v36, %v257_v34 }
  0xfd   :  { %v399_v43 = vpack.c.bf16 %v248_v39, %v247_v37  ;;  %v419_v44 = vpack.c.bf16 %v256_v40, %v255_v38  ;;  %v481_v45 = vpop.f32.mrb[4].mxu0  ;;  %v489_v46 = vpop.f32.mrb[4].mxu1 }
  0xfe   :  { %436 = vst [vmem:[%s621_s3 + $0x8] sm:$0xff] %v404_v41   ;;  %440 = vst [vmem:[%s621_s3 + $0x28] sm:$0xff] %v424_v42   ;;  %v209_v47 = vadd.f32 %v481_v45, %v347_v16  ;;  %v241_v48 = vadd.f32 %v489_v46, %v347_v16  ;;  %v200_v49 = vpop.f32.mrb[5].mxu0  ;;  %v232_v50 = vpop.f32.mrb[5].mxu1 }
  0xff   :  { %400 = vst [vmem:[%s621_s3] sm:$0xff] %v399_v43   ;;  %439 = vst [vmem:[%s621_s3 + $0x20] sm:$0xff] %v419_v44   ;;  %v201_v51 = vadd.f32 %v347_v16, %v200_v49  ;;  %v233_v52 = vadd.f32 %v347_v16, %v232_v50  ;;  %v482_v53 = vpop.f32.mrb[6].mxu0  ;;  %v490_v54 = vpop.f32.mrb[6].mxu1 }
 0x100   :  { %v212_v55 = vadd.f32 %v482_v53, %v347_v16  ;;  %v244_v56 = vadd.f32 %v490_v54, %v347_v16  ;;  %v203_v57 = vpop.f32.mrb[7].mxu0  ;;  %v235_v58 = vpop.f32.mrb[7].mxu1  ;;  %v253_v61 = vmax.f32 %v209_v47, 0.0  ;;  %v261_v62 = vmax.f32 %v241_v48, 0.0 }
 0x101   :  { %v204_v59 = vadd.f32 %v347_v16, %v203_v57  ;;  %v236_v60 = vadd.f32 %v347_v16, %v235_v58  ;;  %v251_v1 = vmax.f32 %v201_v51, 0.0  ;;  %v259_v2 = vmax.f32 %v233_v52, 0.0 }
 0x102   :  { %v254_v63 = vmax.f32 %v212_v55, 0.0  ;;  %v262_v0 = vmax.f32 %v244_v56, 0.0 }
 0x103   :  { %v252_v3 = vmax.f32 %v204_v59, 0.0  ;;  %v260_v4 = vmax.f32 %v236_v60, 0.0 }
 0x104   :  { %v414_v5 = vpack.c.bf16 %v254_v63, %v253_v61  ;;  %v434_v6 = vpack.c.bf16 %v262_v0, %v261_v62 }
 0x105   :  { %v409_v7 = vpack.c.bf16 %v252_v3, %v251_v1  ;;  %v429_v8 = vpack.c.bf16 %v260_v4, %v259_v2 }
 0x106   :  { %438 = vst [vmem:[%s621_s3 + $0x18] sm:$0xff] %v414_v5   ;;  %442 = vst [vmem:[%s621_s3 + $0x38] sm:$0xff] %v434_v6  }
 0x107   :  { %437 = vst [vmem:[%s621_s3 + $0x10] sm:$0xff] %v409_v7   ;;  %441 = vst [vmem:[%s621_s3 + $0x30] sm:$0xff] %v429_v8  }

// kernel: _lambda_.25
= control target key start
LH: loop header
LB: loop body
LE: loop exit
PB: predicated region body
PF: predicated region fallthrough
CT: control target
= control target key end

     0   :  { %s1494_s12 = smov 0   ;;  %s1496_s13 = smov 0   ;;  %s1668_s0 = inlined_call_operand.vmem [shape: bf16[512,256], index: 0, kind: input, shape index: {}]   ;;  %s1669_s1 = inlined_call_operand.vmem [shape: bf16[256,128], index: 1, kind: input, shape index: {}]   ;;  %s1670_s2 = inlined_call_operand.vmem [shape: f32[1,128], index: 2, kind: input, shape index: {}]   ;;  %s1671_s3 = inlined_call_operand.vmem [shape: bf16[512,128], index: 3, kind: output, shape index: {}]  }
   0x1   :  { %s1498_s14 = smov 0  }
   0x2 LB: > { %s25_s15 = sadd.s32 1, %s1468_s13  ;;  %p1017_p0 = scmp.ge.s32.totalorder %s1472_s14, 1  ;;  %s1472_s14 = sphi %s1498_s14, %s13_s14   ;;  %s1468_s13 = sphi %s1496_s13, %s1673_s13   ;;  %s1464_s12 = sphi %s1494_s12, %s1672_s12  }
   0x3   : > { %p27_p1 = scmp.ge.s32.totalorder %s25_s15, 2  ;;  %p170_p2 = scmp.lt.s32.totalorder %s1472_s14, 3 }
   0x5   : > { %s1675_s15 = smov (%p27_p1, %s25_s15), 0  ;;  %p171_p3 = pnand %p1017_p0, %p170_p2 }
   0x6   : > { %v1386_v0 = vld [vmem:[%s1669_s1 + $0x40] sm:$0xff] (!%p171_p3)   ;;  %s1018_s18 = sshll.u32 (!%p171_p3), %s1464_s12, 5  ;;  %v1388_v2 = vld [vmem:[%s1669_s1 + $0x48] sm:$0xff] (!%p171_p3)   ;;  %v1390_v4 = vld [vmem:[%s1669_s1 + $0x50] sm:$0xff] (!%p171_p3)  }
   0x7   : > { %174 = sbr.rel (%p171_p3) target bundleno = 320 (0x140), region = 32  ;;  %v1387_v1 = vld [vmem:[%s1669_s1] sm:$0xff] (!%p171_p3)   ;;  %1234 = vmatprep.subr.bf16.mxu0 (!%p171_p3), %v1386_v0  ;;  %1346 = vmatprep.subr.bf16.mxu1 (!%p171_p3), %v1386_v0  ;;  %v1389_v3 = vld [vmem:[%s1669_s1 + $0x8] sm:$0xff] (!%p171_p3)   ;;  %p206_p4 = scmp.lt.s32.totalorder (!%p171_p3), %s1018_s18, 63  ;;  %v1391_v5 = vld [vmem:[%s1669_s1 + $0x10] sm:$0xff] (!%p171_p3)  }
   0x8   : > { %1235 = vmatpush3.bf16.msra.mxu0 (!%p171_p3), %v1387_v1  ;;  %1354 = vmatpush3.bf16.msra.mxu1 (!%p171_p3), %v1387_v1  ;;  %v1392_v6 = vld [vmem:[%s1669_s1 + $0x58] sm:$0xff] (!%p171_p3)   ;;  %v1394_v8 = vld [vmem:[%s1669_s1 + $0x60] sm:$0xff] (!%p171_p3)   ;;  %v1396_v10 = vld [vmem:[%s1669_s1 + $0x68] sm:$0xff] (!%p171_p3)  }
   0x9   : > { %1236 = vmatprep.subr.bf16.mxu0 (!%p171_p3), %v1388_v2  ;;  %1347 = vmatprep.subr.bf16.mxu1 (!%p171_p3), %v1388_v2  ;;  %v1393_v7 = vld [vmem:[%s1669_s1 + $0x18] sm:$0xff] (!%p171_p3)   ;;  %v1395_v9 = vld [vmem:[%s1669_s1 + $0x20] sm:$0xff] (!%p171_p3)   ;;  %v1397_v13 = vld [vmem:[%s1669_s1 + $0x28] sm:$0xff] (!%p171_p3)  }
   0xa   : > { %v1398_v14 = vld [vmem:[%s1669_s1 + $0x70] sm:$0xff] (!%p171_p3)   ;;  %v1400_v16 = vld [vmem:[%s1669_s1 + $0x78] sm:$0xff] (!%p171_p3)   ;;  %v1603_v50 = vld [vmem:[%s1670_s2] ss:$0 sm:$0xff] (!%p171_p3) }
   0xb   : > { %v1399_v15 = vld [vmem:[%s1669_s1 + $0x30] sm:$0xff] (!%p171_p3)   ;;  %v1401_v17 = vld [vmem:[%s1669_s1 + $0x38] sm:$0xff] (!%p171_p3)  }
   0xc   : > { %1237 = vmatpush3.bf16.msra.mxu0 (!%p171_p3), %v1389_v3  ;;  %1355 = vmatpush3.bf16.msra.mxu1 (!%p171_p3), %v1389_v3 }
   0xd   : > { %1238 = vmatprep.subr.bf16.mxu0 (!%p171_p3), %v1390_v4  ;;  %1348 = vmatprep.subr.bf16.mxu1 (!%p171_p3), %v1390_v4 }
   0xe   : > { %s1677_s18 = smov (!%p206_p4, %s1018_s18), 63 }
   0xf   : > { %s1106_s6 = sshll.u32 %s1677_s18, 3  ;;  %s1022_s5 = sshll.u32 %s1677_s18, 2 }
  0x10   : > { %1239 = vmatpush3.bf16.msra.mxu0 %v1391_v5  ;;  %1356 = vmatpush3.bf16.msra.mxu1 %v1391_v5  ;;  %s1545_s11 = scalar_lea.vmem %s1668_s0, %s1106_s6  ;;  %s1613_s8 = scalar_lea.vmem %s1671_s3, %s1022_s5 }
  0x11   : > { %1240 = vmatprep.subr.bf16.mxu0 %v1392_v6  ;;  %1349 = vmatprep.subr.bf16.mxu1 %v1392_v6  ;;  %v1404_v11 = vld [vmem:[%s1545_s11 + $0x4] ss:$8 sps:$4 sm:$0xff]   ;;  %v1402_v18 = vld [vmem:[%s1545_s11] ss:$8 sps:$4 sm:$0xff]   ;;  %v1408_v20 = vld [vmem:[%s1545_s11 + $0x14] ss:$8 sps:$4 sm:$0xff]  }
  0x12   : > { %v1407_v12 = vld [vmem:[%s1545_s11 + $0x84] ss:$8 sps:$4 sm:$0xff]   ;;  %588 = vmatprep.mubr.bf16.mxu0 %v1404_v11  ;;  %v1405_v19 = vld [vmem:[%s1545_s11 + $0x80] ss:$8 sps:$4 sm:$0xff]   ;;  %v1410_v21 = vld [vmem:[%s1545_s11 + $0x94] ss:$8 sps:$4 sm:$0xff]  }
  0x13   : > { %652 = vmatprep.mubr.bf16.mxu1 %v1407_v12  ;;  %v1412_v22 = vld [vmem:[%s1545_s11 + $0x10] ss:$8 sps:$4 sm:$0xff]   ;;  %v1414_v24 = vld [vmem:[%s1545_s11 + $0x24] ss:$8 sps:$4 sm:$0xff]   ;;  %v1418_v26 = vld [vmem:[%s1545_s11 + $0x20] ss:$8 sps:$4 sm:$0xff]  }
  0x14   : > { %1241 = vmatpush3.bf16.msra.mxu0 %v1393_v7  ;;  %1357 = vmatpush3.bf16.msra.mxu1 %v1393_v7  ;;  %v1413_v23 = vld [vmem:[%s1545_s11 + $0x90] ss:$8 sps:$4 sm:$0xff]   ;;  %v1416_v25 = vld [vmem:[%s1545_s11 + $0xa4] ss:$8 sps:$4 sm:$0xff]   ;;  %v1419_v27 = vld [vmem:[%s1545_s11 + $0xa0] ss:$8 sps:$4 sm:$0xff]  }
  0x15   : > { %1242 = vmatprep.subr.bf16.mxu0 %v1394_v8  ;;  %1350 = vmatprep.subr.bf16.mxu1 %v1394_v8  ;;  %v1420_v28 = vld [vmem:[%s1545_s11 + $0x34] ss:$8 sps:$4 sm:$0xff]   ;;  %v1424_v30 = vld [vmem:[%s1545_s11 + $0x30] ss:$8 sps:$4 sm:$0xff]   ;;  %v1426_v32 = vld [vmem:[%s1545_s11 + $0x44] ss:$8 sps:$4 sm:$0xff]  }
  0x16   : > { %v1422_v29 = vld [vmem:[%s1545_s11 + $0xb4] ss:$8 sps:$4 sm:$0xff]   ;;  %v1425_v31 = vld [vmem:[%s1545_s11 + $0xb0] ss:$8 sps:$4 sm:$0xff]   ;;  %v1428_v33 = vld [vmem:[%s1545_s11 + $0xc4] ss:$8 sps:$4 sm:$0xff]  }
  0x17   : > { %v1430_v34 = vld [vmem:[%s1545_s11 + $0x40] ss:$8 sps:$4 sm:$0xff]   ;;  %v1432_v36 = vld [vmem:[%s1545_s11 + $0x54] ss:$8 sps:$4 sm:$0xff]   ;;  %v1436_v38 = vld [vmem:[%s1545_s11 + $0x50] ss:$8 sps:$4 sm:$0xff]  }
  0x18   : > { %1243 = vmatpush3.bf16.msra.mxu0 %v1395_v9  ;;  %1358 = vmatpush3.bf16.msra.mxu1 %v1395_v9  ;;  %v1431_v35 = vld [vmem:[%s1545_s11 + $0xc0] ss:$8 sps:$4 sm:$0xff]   ;;  %v1434_v37 = vld [vmem:[%s1545_s11 + $0xd4] ss:$8 sps:$4 sm:$0xff]   ;;  %v1437_v39 = vld [vmem:[%s1545_s11 + $0xd0] ss:$8 sps:$4 sm:$0xff]  }
  0x19   : > { %1244 = vmatprep.subr.bf16.mxu0 %v1396_v10  ;;  %1351 = vmatprep.subr.bf16.mxu1 %v1396_v10  ;;  %v1438_v40 = vld [vmem:[%s1545_s11 + $0x64] ss:$8 sps:$4 sm:$0xff]   ;;  %v1442_v42 = vld [vmem:[%s1545_s11 + $0x60] ss:$8 sps:$4 sm:$0xff]   ;;  %v1444_v44 = vld [vmem:[%s1545_s11 + $0x74] ss:$8 sps:$4 sm:$0xff]  }
  0x1a   : > { %v1440_v41 = vld [vmem:[%s1545_s11 + $0xe4] ss:$8 sps:$4 sm:$0xff]   ;;  %v1443_v43 = vld [vmem:[%s1545_s11 + $0xe0] ss:$8 sps:$4 sm:$0xff]   ;;  %v1446_v45 = vld [vmem:[%s1545_s11 + $0xf4] ss:$8 sps:$4 sm:$0xff]  }
  0x1b   : > { %v1448_v46 = vld [vmem:[%s1545_s11 + $0x70] ss:$8 sps:$4 sm:$0xff]  }
  0x1c   : > { %1245 = vmatpush3.bf16.msra.mxu0 %v1397_v13  ;;  %1359 = vmatpush3.bf16.msra.mxu1 %v1397_v13  ;;  %v1449_v47 = vld [vmem:[%s1545_s11 + $0xf0] ss:$8 sps:$4 sm:$0xff]  }
  0x1d   : > { %1246 = vmatprep.subr.bf16.mxu0 %v1398_v14  ;;  %1352 = vmatprep.subr.bf16.mxu1 %v1398_v14 }
  0x20   : > { %1247 = vmatpush3.bf16.msra.mxu0 %v1399_v15  ;;  %1360 = vmatpush3.bf16.msra.mxu1 %v1399_v15 }
  0x21   : > { %1248 = vmatprep.subr.bf16.mxu0 %v1400_v16  ;;  %1353 = vmatprep.subr.bf16.mxu1 %v1400_v16 }
  0x24   : > { %1249 = vmatpush3.bf16.msra.mxu0 %v1401_v17  ;;  %1361 = vmatpush3.bf16.msra.mxu1 %v1401_v17 }
  0x27   : > { %589 = vmatmul.mubr.bf16.vlgmr.msra.gmra.mrb[0].mxu0 %v1402_v18  ;;  %653 = vmatmul.mubr.bf16.vlgmr.msra.gmra.mrb[0].mxu1 %v1405_v19 }
  0x28   : > { %596 = vmatprep.mubr.bf16.mxu0 %v1408_v20  ;;  %660 = vmatprep.mubr.bf16.mxu1 %v1410_v21 }
  0x2f   : > { %597 = vmatmul.mubr.bf16.gmra.mrb[4].mxu0 %v1412_v22  ;;  %661 = vmatmul.mubr.bf16.gmra.mrb[4].mxu1 %v1413_v23 }
  0x30   : > { %604 = vmatprep.mubr.bf16.mxu0 %v1414_v24  ;;  %668 = vmatprep.mubr.bf16.mxu1 %v1416_v25 }
  0x37   : > { %605 = vmatmul.mubr.bf16.gmra.mrb[8].mxu0 %v1418_v26  ;;  %669 = vmatmul.mubr.bf16.gmra.mrb[8].mxu1 %v1419_v27 }
  0x38   : > { %612 = vmatprep.mubr.bf16.mxu0 %v1420_v28  ;;  %676 = vmatprep.mubr.bf16.mxu1 %v1422_v29 }
  0x3f   : > { %613 = vmatmul.mubr.bf16.gmra.mrb[12].mxu0 %v1424_v30  ;;  %677 = vmatmul.mubr.bf16.gmra.mrb[12].mxu1 %v1425_v31 }
  0x40   : > { %620 = vmatprep.mubr.bf16.mxu0 %v1426_v32  ;;  %684 = vmatprep.mubr.bf16.mxu1 %v1428_v33 }
  0x47   : > { %621 = vmatmul.mubr.bf16.gmra.mrb[16].mxu0 %v1430_v34  ;;  %685 = vmatmul.mubr.bf16.gmra.mrb[16].mxu1 %v1431_v35 }
  0x48   : > { %628 = vmatprep.mubr.bf16.mxu0 %v1432_v36  ;;  %692 = vmatprep.mubr.bf16.mxu1 %v1434_v37 }
  0x4f   : > { %629 = vmatmul.mubr.bf16.gmra.mrb[20].mxu0 %v1436_v38  ;;  %693 = vmatmul.mubr.bf16.gmra.mrb[20].mxu1 %v1437_v39 }
  0x50   : > { %636 = vmatprep.mubr.bf16.mxu0 %v1438_v40  ;;  %700 = vmatprep.mubr.bf16.mxu1 %v1440_v41 }
  0x57   : > { %637 = vmatmul.mubr.bf16.gmra.mrb[24].mxu0 %v1442_v42  ;;  %701 = vmatmul.mubr.bf16.gmra.mrb[24].mxu1 %v1443_v43 }
  0x58   : > { %644 = vmatprep.mubr.bf16.mxu0 %v1444_v44  ;;  %708 = vmatprep.mubr.bf16.mxu1 %v1446_v45 }
  0x5f   : > { %645 = vmatmul.mubr.bf16.gmra.mrb[28].mxu0 %v1448_v46  ;;  %709 = vmatmul.mubr.bf16.gmra.mrb[28].mxu1 %v1449_v47 }
  0xfa   : > { %v1250_v48 = vpop.f32.mrb[0].mxu0  ;;  %v1298_v49 = vpop.f32.mrb[0].mxu1 }
  0xfb   : > { %v1251_v51 = vpop.f32.mrb[1].mxu0  ;;  %v1299_v52 = vpop.f32.mrb[1].mxu1 }
  0xfc   : > { %v1252_v53 = vadd.f32 %v1251_v51, %v1250_v48  ;;  %v1300_v54 = vadd.f32 %v1299_v52, %v1298_v49  ;;  %v1253_v55 = vpop.f32.mrb[2].mxu0  ;;  %v1301_v56 = vpop.f32.mrb[2].mxu1 }
  0xfd   : > { %v1254_v57 = vpop.f32.mrb[3].mxu0  ;;  %v1302_v58 = vpop.f32.mrb[3].mxu1 }
  0xfe   : > { %v591_v59 = vadd.f32 %v1252_v53, %v1603_v50  ;;  %v655_v60 = vadd.f32 %v1300_v54, %v1603_v50  ;;  %v1255_v61 = vadd.f32 %v1254_v57, %v1253_v55  ;;  %v1303_v62 = vadd.f32 %v1302_v58, %v1301_v56 }
 0x100   : > { %v594_v63 = vadd.f32 %v1255_v61, %v1603_v50  ;;  %v658_v0 = vadd.f32 %v1303_v62, %v1603_v50  ;;  %v717_v1 = vmax.f32 %v591_v59, 0.0  ;;  %v733_v2 = vmax.f32 %v655_v60, 0.0 }
 0x102   : > { %v718_v3 = vmax.f32 %v594_v63, 0.0  ;;  %v734_v4 = vmax.f32 %v658_v0, 0.0  ;;  %v1256_v5 = vpop.f32.mrb[4].mxu0  ;;  %v1304_v6 = vpop.f32.mrb[4].mxu1 }
 0x103   : > { %v1257_v7 = vpop.f32.mrb[5].mxu0  ;;  %v1305_v8 = vpop.f32.mrb[5].mxu1 }
 0x104   : > { %v1142_v9 = vpack.c.bf16 %v718_v3, %v717_v1  ;;  %v1182_v10 = vpack.c.bf16 %v734_v4, %v733_v2  ;;  %v1258_v11 = vadd.f32 %v1257_v7, %v1256_v5  ;;  %v1306_v12 = vadd.f32 %v1305_v8, %v1304_v6  ;;  %v1259_v13 = vpop.f32.mrb[6].mxu0  ;;  %v1307_v14 = vpop.f32.mrb[6].mxu1 }
 0x105   : > { %v1260_v15 = vpop.f32.mrb[7].mxu0  ;;  %v1308_v16 = vpop.f32.mrb[7].mxu1 }
 0x106   : > { %1143 = vst [vmem:[%s1613_s8] sm:$0xff] %v1142_v9   ;;  %1226 = vst [vmem:[%s1613_s8 + $0x40] sm:$0xff] %v1182_v10   ;;  %v599_v17 = vadd.f32 %v1258_v11, %v1603_v50  ;;  %v663_v18 = vadd.f32 %v1306_v12, %v1603_v50  ;;  %v1261_v19 = vadd.f32 %v1260_v15, %v1259_v13 }
 0x107   : > { %v1309_v20 = vadd.f32 %v1308_v16, %v1307_v14 }
 0x108   : > { %v602_v21 = vadd.f32 %v1261_v19, %v1603_v50  ;;  %v719_v23 = vmax.f32 %v599_v17, 0.0  ;;  %v735_v24 = vmax.f32 %v663_v18, 0.0 }
 0x109   : > { %v666_v22 = vadd.f32 %v1309_v20, %v1603_v50 }
 0x10a   : > { %v720_v25 = vmax.f32 %v602_v21, 0.0  ;;  %v1262_v27 = vpop.f32.mrb[8].mxu0  ;;  %v1310_v28 = vpop.f32.mrb[8].mxu1 }
 0x10b   : > { %v736_v26 = vmax.f32 %v666_v22, 0.0  ;;  %v1263_v29 = vpop.f32.mrb[9].mxu0  ;;  %v1311_v30 = vpop.f32.mrb[9].mxu1 }
 0x10c   : > { %v1147_v31 = vpack.c.bf16 %v720_v25, %v719_v23  ;;  %v1264_v33 = vadd.f32 %v1263_v29, %v1262_v27  ;;  %v1312_v34 = vadd.f32 %v1311_v30, %v1310_v28  ;;  %v1265_v35 = vpop.f32.mrb[10].mxu0  ;;  %v1313_v36 = vpop.f32.mrb[10].mxu1 }
 0x10d   : > { %v1187_v32 = vpack.c.bf16 %v736_v26, %v735_v24  ;;  %v1266_v37 = vpop.f32.mrb[11].mxu0  ;;  %v1314_v38 = vpop.f32.mrb[11].mxu1 }
 0x10e   : > { %1219 = vst [vmem:[%s1613_s8 + $0x8] sm:$0xff] %v1147_v31   ;;  %v607_v39 = vadd.f32 %v1264_v33, %v1603_v50  ;;  %v671_v40 = vadd.f32 %v1312_v34, %v1603_v50  ;;  %v1267_v41 = vadd.f32 %v1266_v37, %v1265_v35  ;;  %v1315_v42 = vadd.f32 %v1314_v38, %v1313_v36 }
 0x10f   : > { %1227 = vst [vmem:[%s1613_s8 + $0x48] sm:$0xff] %v1187_v32  }
 0x110   : > { %v610_v43 = vadd.f32 %v1267_v41, %v1603_v50  ;;  %v674_v44 = vadd.f32 %v1315_v42, %v1603_v50  ;;  %v721_v45 = vmax.f32 %v607_v39, 0.0  ;;  %v737_v46 = vmax.f32 %v671_v40, 0.0 }
 0x112   : > { %v722_v47 = vmax.f32 %v610_v43, 0.0  ;;  %v738_v48 = vmax.f32 %v674_v44, 0.0  ;;  %v1268_v49 = vpop.f32.mrb[12].mxu0  ;;  %v1316_v51 = vpop.f32.mrb[12].mxu1 }
 0x113   : > { %v1269_v52 = vpop.f32.mrb[13].mxu0  ;;  %v1317_v53 = vpop.f32.mrb[13].mxu1 }
 0x114   : > { %v1152_v54 = vpack.c.bf16 %v722_v47, %v721_v45  ;;  %v1192_v55 = vpack.c.bf16 %v738_v48, %v737_v46  ;;  %v1270_v56 = vadd.f32 %v1269_v52, %v1268_v49  ;;  %v1318_v57 = vadd.f32 %v1317_v53, %v1316_v51  ;;  %v1271_v58 = vpop.f32.mrb[14].mxu0  ;;  %v1319_v59 = vpop.f32.mrb[14].mxu1 }
 0x115   : > { %v1272_v60 = vpop.f32.mrb[15].mxu0  ;;  %v1320_v61 = vpop.f32.mrb[15].mxu1 }
 0x116   : > { %1220 = vst [vmem:[%s1613_s8 + $0x10] sm:$0xff] %v1152_v54   ;;  %1228 = vst [vmem:[%s1613_s8 + $0x50] sm:$0xff] %v1192_v55   ;;  %v615_v62 = vadd.f32 %v1270_v56, %v1603_v50  ;;  %v679_v63 = vadd.f32 %v1318_v57, %v1603_v50  ;;  %v1273_v0 = vadd.f32 %v1272_v60, %v1271_v58 }
 0x117   : > { %v1321_v1 = vadd.f32 %v1320_v61, %v1319_v59 }
 0x118   : > { %v618_v2 = vadd.f32 %v1273_v0, %v1603_v50  ;;  %v723_v4 = vmax.f32 %v615_v62, 0.0  ;;  %v739_v5 = vmax.f32 %v679_v63, 0.0 }
 0x119   : > { %v682_v3 = vadd.f32 %v1321_v1, %v1603_v50 }
 0x11a   : > { %v724_v6 = vmax.f32 %v618_v2, 0.0  ;;  %v1274_v8 = vpop.f32.mrb[16].mxu0  ;;  %v1322_v9 = vpop.f32.mrb[16].mxu1 }
 0x11b   : > { %v740_v7 = vmax.f32 %v682_v3, 0.0  ;;  %v1275_v10 = vpop.f32.mrb[17].mxu0  ;;  %v1323_v11 = vpop.f32.mrb[17].mxu1 }
 0x11c   : > { %v1157_v12 = vpack.c.bf16 %v724_v6, %v723_v4  ;;  %v1276_v14 = vadd.f32 %v1275_v10, %v1274_v8  ;;  %v1324_v15 = vadd.f32 %v1323_v11, %v1322_v9  ;;  %v1277_v16 = vpop.f32.mrb[18].mxu0  ;;  %v1325_v17 = vpop.f32.mrb[18].mxu1 }
 0x11d   : > { %v1197_v13 = vpack.c.bf16 %v740_v7, %v739_v5  ;;  %v1278_v18 = vpop.f32.mrb[19].mxu0  ;;  %v1326_v19 = vpop.f32.mrb[19].mxu1 }
 0x11e   : > { %1221 = vst [vmem:[%s1613_s8 + $0x18] sm:$0xff] %v1157_v12   ;;  %v623_v20 = vadd.f32 %v1276_v14, %v1603_v50  ;;  %v687_v21 = vadd.f32 %v1324_v15, %v1603_v50  ;;  %v1279_v22 = vadd.f32 %v1278_v18, %v1277_v16  ;;  %v1327_v23 = vadd.f32 %v1326_v19, %v1325_v17 }
 0x11f   : > { %1229 = vst [vmem:[%s1613_s8 + $0x58] sm:$0xff] %v1197_v13  }
 0x120   : > { %v626_v24 = vadd.f32 %v1279_v22, %v1603_v50  ;;  %v690_v25 = vadd.f32 %v1327_v23, %v1603_v50  ;;  %v725_v26 = vmax.f32 %v623_v20, 0.0  ;;  %v741_v27 = vmax.f32 %v687_v21, 0.0 }
 0x122   : > { %v726_v28 = vmax.f32 %v626_v24, 0.0  ;;  %v742_v29 = vmax.f32 %v690_v25, 0.0  ;;  %v1280_v30 = vpop.f32.mrb[20].mxu0  ;;  %v1328_v31 = vpop.f32.mrb[20].mxu1 }
 0x123   : > { %v1281_v32 = vpop.f32.mrb[21].mxu0  ;;  %v1329_v33 = vpop.f32.mrb[21].mxu1 }
 0x124   : > { %v1162_v34 = vpack.c.bf16 %v726_v28, %v725_v26  ;;  %v1202_v35 = vpack.c.bf16 %v742_v29, %v741_v27  ;;  %v1282_v36 = vadd.f32 %v1281_v32, %v1280_v30  ;;  %v1330_v37 = vadd.f32 %v1329_v33, %v1328_v31  ;;  %v1283_v38 = vpop.f32.mrb[22].mxu0  ;;  %v1331_v39 = vpop.f32.mrb[22].mxu1 }
 0x125   : > { %v1284_v40 = vpop.f32.mrb[23].mxu0  ;;  %v1332_v41 = vpop.f32.mrb[23].mxu1 }
 0x126   : > { %1222 = vst [vmem:[%s1613_s8 + $0x20] sm:$0xff] %v1162_v34   ;;  %1230 = vst [vmem:[%s1613_s8 + $0x60] sm:$0xff] %v1202_v35   ;;  %v631_v42 = vadd.f32 %v1282_v36, %v1603_v50  ;;  %v695_v43 = vadd.f32 %v1330_v37, %v1603_v50  ;;  %v1285_v44 = vadd.f32 %v1284_v40, %v1283_v38 }
 0x127   : > { %v1333_v45 = vadd.f32 %v1332_v41, %v1331_v39 }
 0x128   : > { %v634_v46 = vadd.f32 %v1285_v44, %v1603_v50  ;;  %v727_v48 = vmax.f32 %v631_v42, 0.0  ;;  %v743_v49 = vmax.f32 %v695_v43, 0.0 }
 0x129   : > { %v698_v47 = vadd.f32 %v1333_v45, %v1603_v50 }
 0x12a   : > { %v728_v51 = vmax.f32 %v634_v46, 0.0  ;;  %v1286_v53 = vpop.f32.mrb[24].mxu0  ;;  %v1334_v54 = vpop.f32.mrb[24].mxu1 }
 0x12b   : > { %v744_v52 = vmax.f32 %v698_v47, 0.0  ;;  %v1287_v55 = vpop.f32.mrb[25].mxu0  ;;  %v1335_v56 = vpop.f32.mrb[25].mxu1 }
 0x12c   : > { %v1167_v57 = vpack.c.bf16 %v728_v51, %v727_v48  ;;  %v1288_v59 = vadd.f32 %v1287_v55, %v1286_v53  ;;  %v1336_v60 = vadd.f32 %v1335_v56, %v1334_v54  ;;  %v1289_v61 = vpop.f32.mrb[26].mxu0  ;;  %v1337_v62 = vpop.f32.mrb[26].mxu1 }
 0x12d   : > { %v1207_v58 = vpack.c.bf16 %v744_v52, %v743_v49  ;;  %v1290_v63 = vpop.f32.mrb[27].mxu0  ;;  %v1338_v0 = vpop.f32.mrb[27].mxu1 }
 0x12e   : > { %1223 = vst [vmem:[%s1613_s8 + $0x28] sm:$0xff] %v1167_v57   ;;  %v639_v1 = vadd.f32 %v1288_v59, %v1603_v50  ;;  %v703_v2 = vadd.f32 %v1336_v60, %v1603_v50  ;;  %v1291_v3 = vadd.f32 %v1290_v63, %v1289_v61  ;;  %v1339_v4 = vadd.f32 %v1338_v0, %v1337_v62 }
 0x12f   : > { %1231 = vst [vmem:[%s1613_s8 + $0x68] sm:$0xff] %v1207_v58  }
 0x130   : > { %v642_v5 = vadd.f32 %v1291_v3, %v1603_v50  ;;  %v706_v6 = vadd.f32 %v1339_v4, %v1603_v50  ;;  %v729_v7 = vmax.f32 %v639_v1, 0.0  ;;  %v745_v8 = vmax.f32 %v703_v2, 0.0 }
 0x132   : > { %v730_v9 = vmax.f32 %v642_v5, 0.0  ;;  %v746_v10 = vmax.f32 %v706_v6, 0.0  ;;  %v1292_v11 = vpop.f32.mrb[28].mxu0  ;;  %v1340_v12 = vpop.f32.mrb[28].mxu1 }
 0x133   : > { %v1293_v13 = vpop.f32.mrb[29].mxu0  ;;  %v1341_v14 = vpop.f32.mrb[29].mxu1 }
 0x134   : > { %v1172_v15 = vpack.c.bf16 %v730_v9, %v729_v7  ;;  %v1212_v16 = vpack.c.bf16 %v746_v10, %v745_v8  ;;  %v1294_v17 = vadd.f32 %v1293_v13, %v1292_v11  ;;  %v1342_v18 = vadd.f32 %v1341_v14, %v1340_v12  ;;  %v1295_v19 = vpop.f32.mrb[30].mxu0  ;;  %v1343_v20 = vpop.f32.mrb[30].mxu1 }
 0x135   : > { %v1296_v21 = vpop.f32.mrb[31].mxu0  ;;  %v1344_v22 = vpop.f32.mrb[31].mxu1 }
 0x136   : > { %1224 = vst [vmem:[%s1613_s8 + $0x30] sm:$0xff] %v1172_v15   ;;  %1232 = vst [vmem:[%s1613_s8 + $0x70] sm:$0xff] %v1212_v16   ;;  %v647_v23 = vadd.f32 %v1294_v17, %v1603_v50  ;;  %v711_v24 = vadd.f32 %v1342_v18, %v1603_v50  ;;  %v1297_v25 = vadd.f32 %v1296_v21, %v1295_v19 }
 0x137   : > { %v1345_v26 = vadd.f32 %v1344_v22, %v1343_v20 }
 0x138   : > { %v650_v27 = vadd.f32 %v1297_v25, %v1603_v50  ;;  %v731_v29 = vmax.f32 %v647_v23, 0.0  ;;  %v747_v30 = vmax.f32 %v711_v24, 0.0 }
 0x139   : > { %v714_v28 = vadd.f32 %v1345_v26, %v1603_v50 }
 0x13a   : > { %v732_v31 = vmax.f32 %v650_v27, 0.0 }
 0x13b   : > { %v748_v32 = vmax.f32 %v714_v28, 0.0 }
 0x13c   : > { %v1177_v33 = vpack.c.bf16 %v732_v31, %v731_v29 }
 0x13d   : > { %v1217_v34 = vpack.c.bf16 %v748_v32, %v747_v30 }
 0x13e   : > { %1225 = vst [vmem:[%s1613_s8 + $0x38] sm:$0xff] %v1177_v33  }
 0x13f   : > { %1233 = vst [vmem:[%s1613_s8 + $0x78] sm:$0xff] %v1217_v34  }
 0x140 PF: > { %s13_s14 = sadd.s32 1, %s1472_s14   ;;  %s1672_s12 = smov %s1468_s13 }
 0x141   : > { %p10_p5 = scmp.ge.s32.totalorder %s13_s14, 4   ;;  %s1673_s13 = smov %s1675_s15 }
 0x143   :  { %12 = sbr.rel (!%p10_p5) target bundleno = 2 (0x2), region = 68 }

// kernel: _lambda_.27
= control target key start
LH: loop header
LB: loop body
LE: loop exit
PB: predicated region body
PF: predicated region fallthrough
CT: control target
= control target key end

     0   :  { %s1772_s1 = inlined_call_operand.vmem [shape: bf16[640,128], index: 1, kind: input, shape index: {}]   ;;  %s1773_s0 = inlined_call_operand.vmem [shape: bf16[128,640], index: 0, kind: input, shape index: {}]   ;;  %s1774_s2 = inlined_call_operand.vmem [shape: f32[1,128], index: 2, kind: input, shape index: {}]   ;;  %s1775_s3 = inlined_call_operand.vmem [shape: bf16[128,128], index: 3, kind: output, shape index: {}]  }
   0x1   :  { %v1341_v0 = vld [vmem:[%s1772_s1 + $0x40] sm:$0xff]   ;;  %v1345_v4 = vld [vmem:[%s1772_s1 + $0x48] sm:$0xff]   ;;  %v1349_v8 = vld [vmem:[%s1772_s1 + $0x50] sm:$0xff]  }
   0x2   :  { %v1342_v1 = vld [vmem:[%s1772_s1 + $0xc0] sm:$0xff]   ;;  %1149 = vmatprep.subr.bf16.mxu0 %v1341_v0  ;;  %v1346_v5 = vld [vmem:[%s1772_s1 + $0xc8] sm:$0xff]   ;;  %v1350_v9 = vld [vmem:[%s1772_s1 + $0xd0] sm:$0xff]  }
   0x3   :  { %v1343_v2 = vld [vmem:[%s1772_s1] sm:$0xff]   ;;  %1213 = vmatprep.subr.bf16.mxu1 %v1342_v1  ;;  %v1347_v6 = vld [vmem:[%s1772_s1 + $0x8] sm:$0xff]   ;;  %v1351_v10 = vld [vmem:[%s1772_s1 + $0x10] sm:$0xff]  }
   0x4   :  { %v1344_v3 = vld [vmem:[%s1772_s1 + $0x80] sm:$0xff]   ;;  %1150 = vmatpush3.bf16.msra.mxu0 %v1343_v2  ;;  %v1348_v7 = vld [vmem:[%s1772_s1 + $0x88] sm:$0xff]   ;;  %v1352_v11 = vld [vmem:[%s1772_s1 + $0x90] sm:$0xff]  }
   0x5   :  { %1214 = vmatpush3.bf16.msra.mxu1 %v1344_v3  ;;  %1151 = vmatprep.subr.bf16.mxu0 %v1345_v4  ;;  %v1353_v12 = vld [vmem:[%s1772_s1 + $0x58] sm:$0xff]   ;;  %v1357_v16 = vld [vmem:[%s1772_s1 + $0x60] sm:$0xff]   ;;  %v1361_v20 = vld [vmem:[%s1772_s1 + $0x68] sm:$0xff]  }
   0x6   :  { %1215 = vmatprep.subr.bf16.mxu1 %v1346_v5  ;;  %v1354_v13 = vld [vmem:[%s1772_s1 + $0xd8] sm:$0xff]   ;;  %v1358_v17 = vld [vmem:[%s1772_s1 + $0xe0] sm:$0xff]   ;;  %v1362_v21 = vld [vmem:[%s1772_s1 + $0xe8] sm:$0xff]  }
   0x7   :  { %v1355_v14 = vld [vmem:[%s1772_s1 + $0x18] sm:$0xff]   ;;  %v1359_v18 = vld [vmem:[%s1772_s1 + $0x20] sm:$0xff]   ;;  %v1363_v22 = vld [vmem:[%s1772_s1 + $0x28] sm:$0xff]  }
   0x8   :  { %1152 = vmatpush3.bf16.msra.mxu0 %v1347_v6  ;;  %v1356_v15 = vld [vmem:[%s1772_s1 + $0x98] sm:$0xff]   ;;  %v1360_v19 = vld [vmem:[%s1772_s1 + $0xa0] sm:$0xff]   ;;  %v1364_v23 = vld [vmem:[%s1772_s1 + $0xa8] sm:$0xff]  }
   0x9   :  { %1216 = vmatpush3.bf16.msra.mxu1 %v1348_v7  ;;  %1153 = vmatprep.subr.bf16.mxu0 %v1349_v8  ;;  %v1365_v24 = vld [vmem:[%s1772_s1 + $0x70] sm:$0xff]   ;;  %v1369_v28 = vld [vmem:[%s1772_s1 + $0x78] sm:$0xff]   ;;  %v1378_v35 = vld [vmem:[%s1773_s0 + $0xc] ss:$20 sps:$4 sm:$0xff]  }
   0xa   :  { %1217 = vmatprep.subr.bf16.mxu1 %v1350_v9  ;;  %v1366_v25 = vld [vmem:[%s1772_s1 + $0xf0] sm:$0xff]   ;;  %v1370_v29 = vld [vmem:[%s1772_s1 + $0xf8] sm:$0xff]   ;;  %v1379_v36 = vld [vmem:[%s1772_s1 + $0x100] sm:$0xff]   ;;  %727 = vmatprep.mubr.bf16.mxu1 %v1378_v35 }
   0xb   :  { %v1367_v26 = vld [vmem:[%s1772_s1 + $0x30] sm:$0xff]   ;;  %v1371_v30 = vld [vmem:[%s1772_s1 + $0x38] sm:$0xff]   ;;  %v1380_v37 = vld [vmem:[%s1773_s0 + $0x2c] ss:$20 sps:$4 sm:$0xff]  }
   0xc   :  { %1154 = vmatpush3.bf16.msra.mxu0 %v1351_v10  ;;  %v1368_v27 = vld [vmem:[%s1772_s1 + $0xb0] sm:$0xff]   ;;  %v1372_v31 = vld [vmem:[%s1772_s1 + $0xb8] sm:$0xff]   ;;  %v1386_v39 = vld [vmem:[%s1772_s1 + $0x108] sm:$0xff]  }
   0xd   :  { %1218 = vmatpush3.bf16.msra.mxu1 %v1352_v11  ;;  %1155 = vmatprep.subr.bf16.mxu0 %v1353_v12  ;;  %v1373_v32 = vld [vmem:[%s1773_s0] ss:$20 sps:$4 sm:$0xff]   ;;  %v1375_v33 = vld [vmem:[%s1773_s0 + $0x4] ss:$20 sps:$4 sm:$0xff]   ;;  %v1376_v34 = vld [vmem:[%s1773_s0 + $0x8] ss:$20 sps:$4 sm:$0xff]  }
   0xe   :  { %1219 = vmatprep.subr.bf16.mxu1 %v1354_v13  ;;  %630 = vmatprep.mubr.bf16.mxu0 %v1375_v33  ;;  %v1382_v38 = vld [vmem:[%s1773_s0 + $0x34] ss:$20 sps:$4 sm:$0xff]   ;;  %v1385_v41 = vld [vmem:[%s1773_s0 + $0x30] ss:$20 sps:$4 sm:$0xff]   ;;  %v1400_v45 = vld [vmem:[%s1772_s1 + $0x118] sm:$0xff]  }
   0xf   :  { %v1384_v40 = vld [vmem:[%s1773_s0 + $0x28] ss:$20 sps:$4 sm:$0xff]   ;;  %v1393_v44 = vld [vmem:[%s1772_s1 + $0x110] sm:$0xff]   ;;  %v1392_v47 = vld [vmem:[%s1773_s0 + $0x58] ss:$20 sps:$4 sm:$0xff]  }
  0x10   :  { %1156 = vmatpush3.bf16.msra.mxu0 %v1355_v14  ;;  %v1387_v42 = vld [vmem:[%s1773_s0 + $0x54] ss:$20 sps:$4 sm:$0xff]   ;;  %v1389_v43 = vld [vmem:[%s1773_s0 + $0x5c] ss:$20 sps:$4 sm:$0xff]   ;;  %v1396_v49 = vld [vmem:[%s1773_s0 + $0x84] ss:$20 sps:$4 sm:$0xff]  }
  0x11   :  { %1220 = vmatpush3.bf16.msra.mxu1 %v1356_v15  ;;  %1157 = vmatprep.subr.bf16.mxu0 %v1357_v16  ;;  %v1391_v46 = vld [vmem:[%s1773_s0 + $0x50] ss:$20 sps:$4 sm:$0xff]   ;;  %v1414_v51 = vld [vmem:[%s1772_s1 + $0x128] sm:$0xff]   ;;  %v1399_v53 = vld [vmem:[%s1773_s0 + $0x80] ss:$20 sps:$4 sm:$0xff]  }
  0x12   :  { %1221 = vmatprep.subr.bf16.mxu1 %v1358_v17  ;;  %v1394_v48 = vld [vmem:[%s1773_s0 + $0x7c] ss:$20 sps:$4 sm:$0xff]   ;;  %v1407_v50 = vld [vmem:[%s1772_s1 + $0x120] sm:$0xff]   ;;  %v1398_v52 = vld [vmem:[%s1773_s0 + $0x78] ss:$20 sps:$4 sm:$0xff]  }
  0x13   :  { %v1401_v54 = vld [vmem:[%s1773_s0 + $0xa4] ss:$20 sps:$4 sm:$0xff]   ;;  %v1421_v55 = vld [vmem:[%s1772_s1 + $0x130] sm:$0xff]   ;;  %v1403_v56 = vld [vmem:[%s1773_s0 + $0xac] ss:$20 sps:$4 sm:$0xff]  }
  0x14   :  { %1158 = vmatpush3.bf16.msra.mxu0 %v1359_v18  ;;  %v1428_v57 = vld [vmem:[%s1772_s1 + $0x138] sm:$0xff]   ;;  %v1405_v58 = vld [vmem:[%s1773_s0 + $0xa0] ss:$20 sps:$4 sm:$0xff]   ;;  %v1413_v63 = vld [vmem:[%s1773_s0 + $0xd0] ss:$20 sps:$4 sm:$0xff]  }
  0x15   :  { %1222 = vmatpush3.bf16.msra.mxu1 %v1360_v19  ;;  %1159 = vmatprep.subr.bf16.mxu0 %v1361_v20  ;;  %v1406_v59 = vld [vmem:[%s1773_s0 + $0xa8] ss:$20 sps:$4 sm:$0xff]   ;;  %v1408_v60 = vld [vmem:[%s1773_s0 + $0xcc] ss:$20 sps:$4 sm:$0xff]   ;;  %v1419_v2 = vld [vmem:[%s1773_s0 + $0xf0] ss:$20 sps:$4 sm:$0xff]  }
  0x16   :  { %1223 = vmatprep.subr.bf16.mxu1 %v1362_v21  ;;  %v1410_v61 = vld [vmem:[%s1773_s0 + $0xd4] ss:$20 sps:$4 sm:$0xff]   ;;  %v1417_v1 = vld [vmem:[%s1773_s0 + $0xfc] ss:$20 sps:$4 sm:$0xff]   ;;  %v1420_v3 = vld [vmem:[%s1773_s0 + $0xf8] ss:$20 sps:$4 sm:$0xff]  }
  0x17   :  { %v1412_v62 = vld [vmem:[%s1773_s0 + $0xc8] ss:$20 sps:$4 sm:$0xff]   ;;  %v1424_v5 = vld [vmem:[%s1773_s0 + $0x124] ss:$20 sps:$4 sm:$0xff]   ;;  %v1427_v7 = vld [vmem:[%s1773_s0 + $0x120] ss:$20 sps:$4 sm:$0xff]  }
  0x18   :  { %1160 = vmatpush3.bf16.msra.mxu0 %v1363_v22  ;;  %v1415_v0 = vld [vmem:[%s1773_s0 + $0xf4] ss:$20 sps:$4 sm:$0xff]   ;;  %v1422_v4 = vld [vmem:[%s1773_s0 + $0x11c] ss:$20 sps:$4 sm:$0xff]   ;;  %v1426_v6 = vld [vmem:[%s1773_s0 + $0x118] ss:$20 sps:$4 sm:$0xff]  }
  0x19   :  { %1224 = vmatpush3.bf16.msra.mxu1 %v1364_v23  ;;  %1161 = vmatprep.subr.bf16.mxu0 %v1365_v24  ;;  %v1429_v8 = vld [vmem:[%s1773_s0 + $0x10] ss:$20 sps:$4 sm:$0xff]   ;;  %v1431_v10 = vld [vmem:[%s1773_s0 + $0x38] ss:$20 sps:$4 sm:$0xff]   ;;  %v1433_v12 = vld [vmem:[%s1773_s0 + $0x60] ss:$20 sps:$4 sm:$0xff]  }
  0x1a   :  { %1225 = vmatprep.subr.bf16.mxu1 %v1366_v25  ;;  %v1430_v9 = vld [vmem:[%s1773_s0 + $0xb0] ss:$20 sps:$4 sm:$0xff]   ;;  %v1432_v11 = vld [vmem:[%s1773_s0 + $0xd8] ss:$20 sps:$4 sm:$0xff]   ;;  %v1434_v13 = vld [vmem:[%s1773_s0 + $0x100] ss:$20 sps:$4 sm:$0xff]  }
  0x1b   :  { %v1435_v14 = vld [vmem:[%s1773_s0 + $0x88] ss:$20 sps:$4 sm:$0xff]   ;;  %v1700_v18 = vld [vmem:[%s1774_s2] ss:$0 sm:$0xff] }
  0x1c   :  { %1162 = vmatpush3.bf16.msra.mxu0 %v1367_v26  ;;  %v1436_v15 = vld [vmem:[%s1773_s0 + $0x128] ss:$20 sps:$4 sm:$0xff]  }
  0x1d   :  { %1226 = vmatpush3.bf16.msra.mxu1 %v1368_v27  ;;  %1163 = vmatprep.subr.bf16.mxu0 %v1369_v28 }
  0x1e   :  { %1227 = vmatprep.subr.bf16.mxu1 %v1370_v29 }
  0x20   :  { %1164 = vmatpush3.bf16.msra.mxu0 %v1371_v30 }
  0x21   :  { %1228 = vmatpush3.bf16.msra.mxu1 %v1372_v31  ;;  %1293 = vmatprep.subr.bf16.mxu0 %v1379_v36 }
  0x22   :  { %1325 = vmatprep.subr.bf16.mxu1 %v1379_v36 }
  0x23   :  { %631 = vmatmul.mubr.bf16.vlgmr.msra.gmra.mrb[0].mxu0 %v1373_v32 }
  0x24   :  { %728 = vmatmul.mubr.bf16.vlgmr.msra.gmra.mrb[0].mxu1 %v1376_v34  ;;  %1294 = vmatpush3.bf16.msra.mxu0 %v1379_v36 }
  0x25   :  { %1333 = vmatpush3.bf16.msra.mxu1 %v1379_v36  ;;  %638 = vmatprep.mubr.bf16.mxu0 %v1380_v37 }
  0x26   :  { %735 = vmatprep.mubr.bf16.mxu1 %v1382_v38  ;;  %1295 = vmatprep.subr.bf16.mxu0 %v1386_v39 }
  0x27   :  { %1326 = vmatprep.subr.bf16.mxu1 %v1386_v39 }
  0x28   :  { %1296 = vmatpush3.bf16.msra.mxu0 %v1386_v39 }
  0x29   :  { %1334 = vmatpush3.bf16.msra.mxu1 %v1386_v39  ;;  %1297 = vmatprep.subr.bf16.mxu0 %v1393_v44 }
  0x2a   :  { %1327 = vmatprep.subr.bf16.mxu1 %v1393_v44 }
  0x2b   :  { %639 = vmatmul.mubr.bf16.gmra.mrb[4].mxu0 %v1384_v40 }
  0x2c   :  { %736 = vmatmul.mubr.bf16.gmra.mrb[4].mxu1 %v1385_v41  ;;  %646 = vmatprep.mubr.bf16.mxu0 %v1387_v42 }
  0x2d   :  { %743 = vmatprep.mubr.bf16.mxu1 %v1389_v43  ;;  %1298 = vmatpush3.bf16.msra.mxu0 %v1393_v44 }
  0x2e   :  { %1335 = vmatpush3.bf16.msra.mxu1 %v1393_v44  ;;  %1299 = vmatprep.subr.bf16.mxu0 %v1400_v45 }
  0x2f   :  { %1328 = vmatprep.subr.bf16.mxu1 %v1400_v45 }
  0x31   :  { %1300 = vmatpush3.bf16.msra.mxu0 %v1400_v45 }
  0x32   :  { %1336 = vmatpush3.bf16.msra.mxu1 %v1400_v45  ;;  %1301 = vmatprep.subr.bf16.mxu0 %v1407_v50 }
  0x33   :  { %647 = vmatmul.mubr.bf16.gmra.mrb[8].mxu0 %v1391_v46  ;;  %1329 = vmatprep.subr.bf16.mxu1 %v1407_v50 }
  0x34   :  { %744 = vmatmul.mubr.bf16.gmra.mrb[8].mxu1 %v1392_v47  ;;  %654 = vmatprep.mubr.bf16.mxu0 %v1394_v48 }
  0x35   :  { %751 = vmatprep.mubr.bf16.mxu1 %v1396_v49  ;;  %1302 = vmatpush3.bf16.msra.mxu0 %v1407_v50 }
  0x36   :  { %1337 = vmatpush3.bf16.msra.mxu1 %v1407_v50  ;;  %1303 = vmatprep.subr.bf16.mxu0 %v1414_v51 }
  0x37   :  { %1330 = vmatprep.subr.bf16.mxu1 %v1414_v51 }
  0x39   :  { %1304 = vmatpush3.bf16.msra.mxu0 %v1414_v51 }
  0x3a   :  { %1338 = vmatpush3.bf16.msra.mxu1 %v1414_v51  ;;  %1305 = vmatprep.subr.bf16.mxu0 %v1421_v55 }
  0x3b   :  { %655 = vmatmul.mubr.bf16.gmra.mrb[12].mxu0 %v1398_v52  ;;  %1331 = vmatprep.subr.bf16.mxu1 %v1421_v55 }
  0x3c   :  { %752 = vmatmul.mubr.bf16.gmra.mrb[12].mxu1 %v1399_v53  ;;  %662 = vmatprep.mubr.bf16.mxu0 %v1401_v54 }
  0x3d   :  { %759 = vmatprep.mubr.bf16.mxu1 %v1403_v56  ;;  %1306 = vmatpush3.bf16.msra.mxu0 %v1421_v55 }
  0x3e   :  { %1339 = vmatpush3.bf16.msra.mxu1 %v1421_v55  ;;  %1307 = vmatprep.subr.bf16.mxu0 %v1428_v57 }
  0x3f   :  { %1332 = vmatprep.subr.bf16.mxu1 %v1428_v57 }
  0x41   :  { %1308 = vmatpush3.bf16.msra.mxu0 %v1428_v57 }
  0x42   :  { %1340 = vmatpush3.bf16.msra.mxu1 %v1428_v57 }
  0x43   :  { %663 = vmatmul.mubr.bf16.gmra.mrb[16].mxu0 %v1405_v58 }
  0x44   :  { %760 = vmatmul.mubr.bf16.gmra.mrb[16].mxu1 %v1406_v59  ;;  %670 = vmatprep.mubr.bf16.mxu0 %v1408_v60 }
  0x45   :  { %767 = vmatprep.mubr.bf16.mxu1 %v1410_v61 }
  0x4b   :  { %671 = vmatmul.mubr.bf16.gmra.mrb[20].mxu0 %v1412_v62 }
  0x4c   :  { %768 = vmatmul.mubr.bf16.gmra.mrb[20].mxu1 %v1413_v63  ;;  %678 = vmatprep.mubr.bf16.mxu0 %v1415_v0 }
  0x4d   :  { %775 = vmatprep.mubr.bf16.mxu1 %v1417_v1 }
  0x53   :  { %679 = vmatmul.mubr.bf16.gmra.mrb[24].mxu0 %v1419_v2 }
  0x54   :  { %776 = vmatmul.mubr.bf16.gmra.mrb[24].mxu1 %v1420_v3  ;;  %686 = vmatprep.mubr.bf16.mxu0 %v1422_v4 }
  0x55   :  { %783 = vmatprep.mubr.bf16.mxu1 %v1424_v5 }
  0x5b   :  { %687 = vmatmul.mubr.bf16.gmra.mrb[28].mxu0 %v1426_v6 }
  0x5c   :  { %784 = vmatmul.mubr.bf16.gmra.mrb[28].mxu1 %v1427_v7  ;;  %1309 = vmatprep.mubr.bf16.mxu0 %v1429_v8 }
  0x5d   :  { %1317 = vmatprep.mubr.bf16.mxu1 %v1430_v9 }
  0x63   :  { %1310 = vmatmul.mubr.bf16.vlgmr.msra.gmra.mrb[32].mxu0 %v1431_v10 }
  0x64   :  { %1318 = vmatmul.mubr.bf16.vlgmr.msra.gmra.mrb[32].mxu1 %v1432_v11  ;;  %1313 = vmatprep.mubr.bf16.mxu0 %v1433_v12 }
  0x65   :  { %1321 = vmatprep.mubr.bf16.mxu1 %v1434_v13 }
  0x6b   :  { %1314 = vmatmul.mubr.bf16.gmra.mrb[36].mxu0 %v1435_v14 }
  0x6c   :  { %1322 = vmatmul.mubr.bf16.gmra.mrb[36].mxu1 %v1436_v15 }
  0xf6   :  { %v1165_v16 = vpop.f32.mrb[0].mxu0 }
  0xf7   :  { %v1229_v17 = vpop.f32.mrb[0].mxu1  ;;  %v1166_v19 = vpop.f32.mrb[1].mxu0 }
  0xf8   :  { %v1167_v20 = vadd.f32 %v1166_v19, %v1165_v16  ;;  %v1230_v21 = vpop.f32.mrb[1].mxu1  ;;  %v1168_v22 = vpop.f32.mrb[2].mxu0 }
  0xf9   :  { %v1231_v23 = vadd.f32 %v1230_v21, %v1229_v17  ;;  %v1232_v24 = vpop.f32.mrb[2].mxu1  ;;  %v1169_v25 = vpop.f32.mrb[3].mxu0 }
  0xfa   :  { %v633_v26 = vadd.f32 %v1167_v20, %v1700_v18  ;;  %v1170_v27 = vadd.f32 %v1169_v25, %v1168_v22  ;;  %v1233_v28 = vpop.f32.mrb[3].mxu1 }
  0xfb   :  { %v1234_v29 = vadd.f32 %v1233_v28, %v1232_v24 }
  0xfc   :  { %v636_v30 = vadd.f32 %v1170_v27, %v1700_v18  ;;  %v1704_v31 = vadd.f32 %v1231_v23, %v633_v26 }
  0xfe   :  { %v1171_v32 = vpop.f32.mrb[4].mxu0  ;;  %v1706_v33 = vadd.f32 %v1234_v29, %v636_v30 }
  0xff   :  { %v1235_v34 = vpop.f32.mrb[4].mxu1  ;;  %v1172_v35 = vpop.f32.mrb[5].mxu0 }
 0x100   :  { %v1173_v36 = vadd.f32 %v1172_v35, %v1171_v32  ;;  %v1236_v37 = vpop.f32.mrb[5].mxu1  ;;  %v1174_v38 = vpop.f32.mrb[6].mxu0 }
 0x101   :  { %v1237_v39 = vadd.f32 %v1236_v37, %v1235_v34  ;;  %v1238_v40 = vpop.f32.mrb[6].mxu1  ;;  %v1175_v41 = vpop.f32.mrb[7].mxu0 }
 0x102   :  { %v641_v42 = vadd.f32 %v1173_v36, %v1700_v18  ;;  %v1176_v43 = vadd.f32 %v1175_v41, %v1174_v38  ;;  %v1239_v44 = vpop.f32.mrb[7].mxu1 }
 0x103   :  { %v1240_v45 = vadd.f32 %v1239_v44, %v1238_v40 }
 0x104   :  { %v644_v46 = vadd.f32 %v1176_v43, %v1700_v18  ;;  %v1710_v47 = vadd.f32 %v1237_v39, %v641_v42 }
 0x106   :  { %v1177_v48 = vpop.f32.mrb[8].mxu0  ;;  %v1712_v49 = vadd.f32 %v1240_v45, %v644_v46 }
 0x107   :  { %v1241_v50 = vpop.f32.mrb[8].mxu1  ;;  %v1178_v51 = vpop.f32.mrb[9].mxu0 }
 0x108   :  { %v1179_v52 = vadd.f32 %v1178_v51, %v1177_v48  ;;  %v1242_v53 = vpop.f32.mrb[9].mxu1  ;;  %v1180_v54 = vpop.f32.mrb[10].mxu0 }
 0x109   :  { %v1243_v55 = vadd.f32 %v1242_v53, %v1241_v50  ;;  %v1244_v56 = vpop.f32.mrb[10].mxu1  ;;  %v1181_v57 = vpop.f32.mrb[11].mxu0 }
 0x10a   :  { %v649_v58 = vadd.f32 %v1179_v52, %v1700_v18  ;;  %v1182_v59 = vadd.f32 %v1181_v57, %v1180_v54  ;;  %v1245_v60 = vpop.f32.mrb[11].mxu1 }
 0x10b   :  { %v1246_v61 = vadd.f32 %v1245_v60, %v1244_v56 }
 0x10c   :  { %v652_v62 = vadd.f32 %v1182_v59, %v1700_v18  ;;  %v1716_v63 = vadd.f32 %v1243_v55, %v649_v58 }
 0x10e   :  { %v1183_v0 = vpop.f32.mrb[12].mxu0  ;;  %v1718_v1 = vadd.f32 %v1246_v61, %v652_v62 }
 0x10f   :  { %v1247_v2 = vpop.f32.mrb[12].mxu1  ;;  %v1184_v3 = vpop.f32.mrb[13].mxu0 }
 0x110   :  { %v1185_v4 = vadd.f32 %v1184_v3, %v1183_v0  ;;  %v1248_v5 = vpop.f32.mrb[13].mxu1  ;;  %v1186_v6 = vpop.f32.mrb[14].mxu0 }
 0x111   :  { %v1249_v7 = vadd.f32 %v1248_v5, %v1247_v2  ;;  %v1250_v8 = vpop.f32.mrb[14].mxu1  ;;  %v1187_v9 = vpop.f32.mrb[15].mxu0 }
 0x112   :  { %v657_v10 = vadd.f32 %v1185_v4, %v1700_v18  ;;  %v1188_v11 = vadd.f32 %v1187_v9, %v1186_v6  ;;  %v1251_v12 = vpop.f32.mrb[15].mxu1 }
 0x113   :  { %v1252_v13 = vadd.f32 %v1251_v12, %v1250_v8 }
 0x114   :  { %v660_v14 = vadd.f32 %v1188_v11, %v1700_v18  ;;  %v1722_v15 = vadd.f32 %v1249_v7, %v657_v10 }
 0x116   :  { %v1189_v16 = vpop.f32.mrb[16].mxu0  ;;  %v1724_v17 = vadd.f32 %v1252_v13, %v660_v14 }
 0x117   :  { %v1253_v19 = vpop.f32.mrb[16].mxu1  ;;  %v1190_v20 = vpop.f32.mrb[17].mxu0 }
 0x118   :  { %v1191_v21 = vadd.f32 %v1190_v20, %v1189_v16  ;;  %v1254_v22 = vpop.f32.mrb[17].mxu1  ;;  %v1192_v23 = vpop.f32.mrb[18].mxu0 }
 0x119   :  { %v1255_v24 = vadd.f32 %v1254_v22, %v1253_v19  ;;  %v1256_v25 = vpop.f32.mrb[18].mxu1  ;;  %v1193_v26 = vpop.f32.mrb[19].mxu0 }
 0x11a   :  { %v665_v27 = vadd.f32 %v1191_v21, %v1700_v18  ;;  %v1194_v28 = vadd.f32 %v1193_v26, %v1192_v23  ;;  %v1257_v29 = vpop.f32.mrb[19].mxu1 }
 0x11b   :  { %v1258_v30 = vadd.f32 %v1257_v29, %v1256_v25 }
 0x11c   :  { %v668_v32 = vadd.f32 %v1194_v28, %v1700_v18  ;;  %v762_v34 = vadd.f32 %v1255_v24, %v665_v27 }
 0x11e   :  { %v1195_v35 = vpop.f32.mrb[20].mxu0  ;;  %v1728_v36 = vadd.f32 %v1258_v30, %v668_v32 }
 0x11f   :  { %v1259_v37 = vpop.f32.mrb[20].mxu1  ;;  %v1196_v38 = vpop.f32.mrb[21].mxu0 }
 0x120   :  { %v1197_v39 = vadd.f32 %v1196_v38, %v1195_v35  ;;  %v1260_v40 = vpop.f32.mrb[21].mxu1  ;;  %v1198_v41 = vpop.f32.mrb[22].mxu0 }
 0x121   :  { %v1261_v42 = vadd.f32 %v1260_v40, %v1259_v37  ;;  %v1262_v43 = vpop.f32.mrb[22].mxu1  ;;  %v1199_v44 = vpop.f32.mrb[23].mxu0 }
 0x122   :  { %v673_v45 = vadd.f32 %v1197_v39, %v1700_v18  ;;  %v1200_v46 = vadd.f32 %v1199_v44, %v1198_v41  ;;  %v1263_v48 = vpop.f32.mrb[23].mxu1 }
 0x123   :  { %v1264_v50 = vadd.f32 %v1263_v48, %v1262_v43 }
 0x124   :  { %v676_v51 = vadd.f32 %v1200_v46, %v1700_v18  ;;  %v770_v52 = vadd.f32 %v1261_v42, %v673_v45 }
 0x126   :  { %v1201_v53 = vpop.f32.mrb[24].mxu0  ;;  %v773_v54 = vadd.f32 %v1264_v50, %v676_v51 }
 0x127   :  { %v1265_v55 = vpop.f32.mrb[24].mxu1  ;;  %v1202_v56 = vpop.f32.mrb[25].mxu0 }
 0x128   :  { %v1203_v57 = vadd.f32 %v1202_v56, %v1201_v53  ;;  %v1266_v58 = vpop.f32.mrb[25].mxu1  ;;  %v1204_v59 = vpop.f32.mrb[26].mxu0 }
 0x129   :  { %v1267_v60 = vadd.f32 %v1266_v58, %v1265_v55  ;;  %v1268_v61 = vpop.f32.mrb[26].mxu1  ;;  %v1205_v62 = vpop.f32.mrb[27].mxu0 }
 0x12a   :  { %v681_v0 = vadd.f32 %v1203_v57, %v1700_v18  ;;  %v1206_v2 = vadd.f32 %v1205_v62, %v1204_v59  ;;  %v1269_v3 = vpop.f32.mrb[27].mxu1 }
 0x12b   :  { %v1270_v4 = vadd.f32 %v1269_v3, %v1268_v61 }
 0x12c   :  { %v684_v5 = vadd.f32 %v1206_v2, %v1700_v18  ;;  %v778_v6 = vadd.f32 %v1267_v60, %v681_v0 }
 0x12e   :  { %v1207_v7 = vpop.f32.mrb[28].mxu0  ;;  %v1734_v8 = vadd.f32 %v1270_v4, %v684_v5 }
 0x12f   :  { %v1271_v9 = vpop.f32.mrb[28].mxu1  ;;  %v1208_v10 = vpop.f32.mrb[29].mxu0 }
 0x130   :  { %v1209_v11 = vadd.f32 %v1208_v10, %v1207_v7  ;;  %v1272_v12 = vpop.f32.mrb[29].mxu1  ;;  %v1210_v13 = vpop.f32.mrb[30].mxu0 }
 0x131   :  { %v1273_v14 = vadd.f32 %v1272_v12, %v1271_v9  ;;  %v1274_v16 = vpop.f32.mrb[30].mxu1  ;;  %v1211_v19 = vpop.f32.mrb[31].mxu0 }
 0x132   :  { %v689_v20 = vadd.f32 %v1209_v11, %v1700_v18  ;;  %v1212_v21 = vadd.f32 %v1211_v19, %v1210_v13  ;;  %v1275_v22 = vpop.f32.mrb[31].mxu1 }
 0x133   :  { %v1276_v23 = vadd.f32 %v1275_v22, %v1274_v16 }
 0x134   :  { %v692_v24 = vadd.f32 %v1212_v21, %v1700_v18  ;;  %v786_v25 = vadd.f32 %v1273_v14, %v689_v20 }
 0x136   :  { %v1311_v26 = vpop.f32.mrb[32].mxu0  ;;  %v789_v27 = vadd.f32 %v1276_v23, %v692_v24 }
 0x137   :  { %v835_v28 = vadd.f32 %v1311_v26, %v1710_v47  ;;  %v1319_v29 = vpop.f32.mrb[32].mxu1  ;;  %v826_v30 = vpop.f32.mrb[33].mxu0 }
 0x138   :  { %v867_v32 = vadd.f32 %v1319_v29, %v770_v52  ;;  %v827_v35 = vadd.f32 %v826_v30, %v1704_v31  ;;  %v858_v37 = vpop.f32.mrb[33].mxu1  ;;  %v1312_v38 = vpop.f32.mrb[34].mxu0 }
 0x139   :  { %v859_v39 = vadd.f32 %v858_v37, %v762_v34  ;;  %v838_v40 = vadd.f32 %v1312_v38, %v1712_v49  ;;  %v1320_v41 = vpop.f32.mrb[34].mxu1  ;;  %v829_v42 = vpop.f32.mrb[35].mxu0  ;;  %v891_v45 = vmax.f32 %v835_v28, 0.0 }
 0x13a   :  { %v870_v43 = vadd.f32 %v1320_v41, %v773_v54  ;;  %v830_v18 = vadd.f32 %v829_v42, %v1706_v33  ;;  %v861_v44 = vpop.f32.mrb[35].mxu1  ;;  %v899_v48 = vmax.f32 %v867_v32, 0.0  ;;  %v889_v50 = vmax.f32 %v827_v35, 0.0 }
 0x13b   :  { %v892_v46 = vmax.f32 %v838_v40, 0.0  ;;  %v862_v47 = vadd.f32 %v861_v44, %v1728_v36  ;;  %v897_v31 = vmax.f32 %v859_v39, 0.0 }
 0x13c   :  { %v900_v51 = vmax.f32 %v870_v43, 0.0  ;;  %v890_v52 = vmax.f32 %v830_v18, 0.0 }
 0x13d   :  { %v1110_v53 = vpack.c.bf16 %v892_v46, %v891_v45  ;;  %v898_v55 = vmax.f32 %v862_v47, 0.0 }
 0x13e   :  { %v1130_v34 = vpack.c.bf16 %v900_v51, %v899_v48  ;;  %v1105_v56 = vpack.c.bf16 %v890_v52, %v889_v50  ;;  %v1315_v49 = vpop.f32.mrb[36].mxu0 }
 0x13f   :  { %1142 = vst [vmem:[%s1775_s3 + $0x8] sm:$0xff] %v1110_v53   ;;  %v1125_v33 = vpack.c.bf16 %v898_v55, %v897_v31  ;;  %v851_v54 = vadd.f32 %v1315_v49, %v1722_v15  ;;  %v1323_v57 = vpop.f32.mrb[36].mxu1  ;;  %v842_v58 = vpop.f32.mrb[37].mxu0 }
 0x140   :  { %1146 = vst [vmem:[%s1775_s3 + $0x28] sm:$0xff] %v1130_v34   ;;  %1106 = vst [vmem:[%s1775_s3] sm:$0xff] %v1105_v56   ;;  %v883_v36 = vadd.f32 %v1323_v57, %v786_v25  ;;  %v843_v59 = vadd.f32 %v842_v58, %v1716_v63  ;;  %v874_v60 = vpop.f32.mrb[37].mxu1  ;;  %v1316_v61 = vpop.f32.mrb[38].mxu0 }
 0x141   :  { %1145 = vst [vmem:[%s1775_s3 + $0x20] sm:$0xff] %v1125_v33   ;;  %v875_v15 = vadd.f32 %v874_v60, %v778_v6  ;;  %v854_v62 = vadd.f32 %v1316_v61, %v1724_v17  ;;  %v1324_v0 = vpop.f32.mrb[38].mxu1  ;;  %v845_v2 = vpop.f32.mrb[39].mxu0  ;;  %v895_v7 = vmax.f32 %v851_v54, 0.0 }
 0x142   :  { %v886_v3 = vadd.f32 %v1324_v0, %v789_v27  ;;  %v846_v4 = vadd.f32 %v845_v2, %v1718_v1  ;;  %v877_v5 = vpop.f32.mrb[39].mxu1  ;;  %v903_v63 = vmax.f32 %v883_v36, 0.0  ;;  %v893_v11 = vmax.f32 %v843_v59, 0.0 }
 0x143   :  { %v896_v9 = vmax.f32 %v854_v62, 0.0  ;;  %v878_v10 = vadd.f32 %v877_v5, %v1734_v8  ;;  %v901_v14 = vmax.f32 %v875_v15, 0.0 }
 0x144   :  { %v904_v12 = vmax.f32 %v886_v3, 0.0  ;;  %v894_v13 = vmax.f32 %v846_v4, 0.0 }
 0x145   :  { %v1120_v16 = vpack.c.bf16 %v896_v9, %v895_v7  ;;  %v902_v19 = vmax.f32 %v878_v10, 0.0 }
 0x146   :  { %v1140_v6 = vpack.c.bf16 %v904_v12, %v903_v63  ;;  %v1115_v20 = vpack.c.bf16 %v894_v13, %v893_v11 }
 0x147   :  { %1144 = vst [vmem:[%s1775_s3 + $0x18] sm:$0xff] %v1120_v16   ;;  %v1135_v17 = vpack.c.bf16 %v902_v19, %v901_v14 }
 0x148   :  { %1148 = vst [vmem:[%s1775_s3 + $0x38] sm:$0xff] %v1140_v6   ;;  %1143 = vst [vmem:[%s1775_s3 + $0x10] sm:$0xff] %v1115_v20  }
 0x149   :  { %1147 = vst [vmem:[%s1775_s3 + $0x30] sm:$0xff] %v1135_v17  }

// kernel: _lambda_.28
= control target key start
LH: loop header
LB: loop body
LE: loop exit
PB: predicated region body
PF: predicated region fallthrough
CT: control target
= control target key end

     0   :  { %v521_v1 = vmov 0   ;;  %v49_v25 = vlaneseq  ;;  %s709_s1 = inlined_call_operand.vmem [shape: bf16[128,256], index: 1, kind: input, shape index: {}]   ;;  %s710_s0 = inlined_call_operand.vmem [shape: bf16[128,128], index: 0, kind: input, shape index: {}]   ;;  %s711_s2 = inlined_call_operand.vmem [shape: f32[1,256], index: 2, kind: input, shape index: {}]   ;;  %s712_s3 = inlined_call_operand.vmem [shape: bf16[128,256], index: 3, kind: output, shape index: {}]  }
   0x1   :  { %v489_v0 = vld [vmem:[%s709_s1 + $0x4] ss:$8 sps:$4 sm:$0xff]   ;;  %219 = vmatprep.mubr.bf16.mxu0 %v521_v1  ;;  %259 = vmatprep.mubr.bf16.mxu1 %v521_v1  ;;  %v491_v2 = vld [vmem:[%s709_s1] ss:$8 sps:$4 sm:$0xff]   ;;  %v492_v3 = vld [vmem:[%s709_s1 + $0x14] ss:$8 sps:$4 sm:$0xff]  }
   0x2   :  { %187 = vmatprep.subr.bf16.mxu0 %v489_v0  ;;  %472 = vmatprep.subr.bf16.mxu1 %v489_v0  ;;  %v494_v4 = vld [vmem:[%s709_s1 + $0x10] ss:$8 sps:$4 sm:$0xff]   ;;  %v495_v5 = vld [vmem:[%s709_s1 + $0x24] ss:$8 sps:$4 sm:$0xff]   ;;  %v497_v6 = vld [vmem:[%s709_s1 + $0x20] ss:$8 sps:$4 sm:$0xff]  }
   0x3   :  { %188 = vmatpush1.bf16.msra.mxu0 %v491_v2  ;;  %480 = vmatpush1.bf16.msra.mxu1 %v491_v2  ;;  %v498_v7 = vld [vmem:[%s709_s1 + $0x34] ss:$8 sps:$4 sm:$0xff]   ;;  %v500_v8 = vld [vmem:[%s709_s1 + $0x30] ss:$8 sps:$4 sm:$0xff]   ;;  %v501_v9 = vld [vmem:[%s709_s1 + $0x44] ss:$8 sps:$4 sm:$0xff]  }
   0x4   :  { %189 = vmatprep.subr.bf16.mxu0 %v492_v3  ;;  %473 = vmatprep.subr.bf16.mxu1 %v492_v3  ;;  %v503_v10 = vld [vmem:[%s709_s1 + $0x40] ss:$8 sps:$4 sm:$0xff]   ;;  %v504_v11 = vld [vmem:[%s709_s1 + $0x54] ss:$8 sps:$4 sm:$0xff]   ;;  %v506_v12 = vld [vmem:[%s709_s1 + $0x50] ss:$8 sps:$4 sm:$0xff]  }
   0x5   :  { %v507_v13 = vld [vmem:[%s709_s1 + $0x64] ss:$8 sps:$4 sm:$0xff]   ;;  %v509_v14 = vld [vmem:[%s709_s1 + $0x60] ss:$8 sps:$4 sm:$0xff]   ;;  %v510_v15 = vld [vmem:[%s709_s1 + $0x74] ss:$8 sps:$4 sm:$0xff]  }
   0x6   :  { %v512_v16 = vld [vmem:[%s709_s1 + $0x70] ss:$8 sps:$4 sm:$0xff]   ;;  %v513_v17 = vld [vmem:[%s710_s0] sm:$0xff]   ;;  %v515_v19 = vld [vmem:[%s710_s0 + $0x8] sm:$0xff]   ;;  %v50_v26 = vshrl.u32 %v49_v25, 7 }
   0x7   :  { %190 = vmatpush1.bf16.msra.mxu0 %v494_v4  ;;  %481 = vmatpush1.bf16.msra.mxu1 %v494_v4  ;;  %v514_v18 = vld [vmem:[%s710_s0 + $0x20] sm:$0xff]   ;;  %v516_v20 = vld [vmem:[%s710_s0 + $0x28] sm:$0xff]   ;;  %v517_v21 = vld [vmem:[%s710_s0 + $0x10] sm:$0xff]  }
   0x8   :  { %191 = vmatprep.subr.bf16.mxu0 %v495_v5  ;;  %474 = vmatprep.subr.bf16.mxu1 %v495_v5  ;;  %v518_v22 = vld [vmem:[%s710_s0 + $0x30] sm:$0xff]   ;;  %v519_v23 = vld [vmem:[%s710_s0 + $0x18] sm:$0xff]   ;;  %v51_v27 = vsub.s32 0, %v50_v26  ;;  %v47_v28 = vld [vmem:[%s711_s2] sm:$0x3]  ;;  %v55_v29 = vsub.s32 1, %v50_v26 }
   0x9   :  { %v520_v24 = vld [vmem:[%s710_s0 + $0x38] sm:$0xff]  }
   0xa   :  { %v625_v30 = vrot.slane %v47_v28, %v51_v27  ;;  %v627_v31 = vrot.slane %v47_v28, %v55_v29 }
   0xb   :  { %192 = vmatpush1.bf16.msra.mxu0 %v497_v6  ;;  %482 = vmatpush1.bf16.msra.mxu1 %v497_v6 }
   0xc   :  { %193 = vmatprep.subr.bf16.mxu0 %v498_v7  ;;  %475 = vmatprep.subr.bf16.mxu1 %v498_v7 }
   0xf   :  { %194 = vmatpush1.bf16.msra.mxu0 %v500_v8  ;;  %483 = vmatpush1.bf16.msra.mxu1 %v500_v8 }
  0x10   :  { %195 = vmatprep.subr.bf16.mxu0 %v501_v9  ;;  %476 = vmatprep.subr.bf16.mxu1 %v501_v9 }
  0x13   :  { %196 = vmatpush1.bf16.msra.mxu0 %v503_v10  ;;  %484 = vmatpush1.bf16.msra.mxu1 %v503_v10 }
  0x14   :  { %197 = vmatprep.subr.bf16.mxu0 %v504_v11  ;;  %477 = vmatprep.subr.bf16.mxu1 %v504_v11 }
  0x17   :  { %198 = vmatpush1.bf16.msra.mxu0 %v506_v12  ;;  %485 = vmatpush1.bf16.msra.mxu1 %v506_v12 }
  0x18   :  { %199 = vmatprep.subr.bf16.mxu0 %v507_v13  ;;  %478 = vmatprep.subr.bf16.mxu1 %v507_v13 }
  0x1b   :  { %200 = vmatpush1.bf16.msra.mxu0 %v509_v14  ;;  %486 = vmatpush1.bf16.msra.mxu1 %v509_v14 }
  0x1c   :  { %201 = vmatprep.subr.bf16.mxu0 %v510_v15  ;;  %479 = vmatprep.subr.bf16.mxu1 %v510_v15 }
  0x1f   :  { %202 = vmatpush1.bf16.msra.mxu0 %v512_v16  ;;  %487 = vmatpush1.bf16.msra.mxu1 %v512_v16 }
  0x22   :  { %220 = vmatmul.mubr.bf16.vlgmr.msra.gmra.mrb[0].mxu0 %v513_v17  ;;  %260 = vmatmul.mubr.bf16.vlgmr.msra.gmra.mrb[0].mxu1 %v514_v18 }
  0x23   :  { %229 = vmatprep.mubr.bf16.mxu0 %v521_v1  ;;  %269 = vmatprep.mubr.bf16.mxu1 %v521_v1 }
  0x2a   :  { %230 = vmatmul.mubr.bf16.gmra.mrb[4].mxu0 %v515_v19  ;;  %270 = vmatmul.mubr.bf16.gmra.mrb[4].mxu1 %v516_v20 }
  0x2b   :  { %239 = vmatprep.mubr.bf16.mxu0 %v521_v1  ;;  %279 = vmatprep.mubr.bf16.mxu1 %v521_v1 }
  0x32   :  { %240 = vmatmul.mubr.bf16.gmra.mrb[8].mxu0 %v517_v21  ;;  %280 = vmatmul.mubr.bf16.gmra.mrb[8].mxu1 %v518_v22 }
  0x33   :  { %249 = vmatprep.mubr.bf16.mxu0 %v521_v1  ;;  %289 = vmatprep.mubr.bf16.mxu1 %v521_v1 }
  0x3a   :  { %250 = vmatmul.mubr.bf16.gmra.mrb[12].mxu0 %v519_v23  ;;  %290 = vmatmul.mubr.bf16.gmra.mrb[12].mxu1 %v520_v24 }
  0xf5   :  { %v221_v32 = vpop.f32.mrb[0].mxu0  ;;  %v261_v33 = vpop.f32.mrb[0].mxu1 }
  0xf6   :  { %v222_v34 = vadd.f32 %v221_v32, %v625_v30  ;;  %v262_v35 = vadd.f32 %v261_v33, %v625_v30  ;;  %v223_v36 = vpop.f32.mrb[1].mxu0  ;;  %v263_v37 = vpop.f32.mrb[1].mxu1 }
  0xf7   :  { %v224_v38 = vadd.f32 %v223_v36, %v627_v31  ;;  %v264_v39 = vadd.f32 %v263_v37, %v627_v31  ;;  %v225_v40 = vpop.f32.mrb[2].mxu0  ;;  %v265_v41 = vpop.f32.mrb[2].mxu1 }
  0xf8   :  { %v226_v42 = vadd.f32 %v225_v40, %v625_v30  ;;  %v266_v43 = vadd.f32 %v265_v41, %v625_v30  ;;  %v227_v44 = vpop.f32.mrb[3].mxu0  ;;  %v267_v45 = vpop.f32.mrb[3].mxu1 }
  0xf9   :  { %v456_v46 = vpack.c.bf16 %v224_v38, %v222_v34  ;;  %v464_v47 = vpack.c.bf16 %v264_v39, %v262_v35  ;;  %v228_v48 = vadd.f32 %v227_v44, %v627_v31  ;;  %v268_v49 = vadd.f32 %v267_v45, %v627_v31 }
  0xfb   :  { %396 = vst [vmem:[%s712_s3] sm:$0xff] %v456_v46  ;;  %404 = vst [vmem:[%s712_s3 + $0x40] sm:$0xff] %v464_v47  ;;  %v457_v50 = vpack.c.bf16 %v228_v48, %v226_v42  ;;  %v465_v51 = vpack.c.bf16 %v268_v49, %v266_v43 }
  0xfd   :  { %397 = vst [vmem:[%s712_s3 + $0x8] sm:$0xff] %v457_v50  ;;  %405 = vst [vmem:[%s712_s3 + $0x48] sm:$0xff] %v465_v51  ;;  %v231_v52 = vpop.f32.mrb[4].mxu0  ;;  %v271_v53 = vpop.f32.mrb[4].mxu1 }
  0xfe   :  { %v232_v54 = vadd.f32 %v231_v52, %v625_v30  ;;  %v272_v55 = vadd.f32 %v271_v53, %v625_v30  ;;  %v233_v56 = vpop.f32.mrb[5].mxu0  ;;  %v273_v57 = vpop.f32.mrb[5].mxu1 }
  0xff   :  { %v234_v58 = vadd.f32 %v233_v56, %v627_v31  ;;  %v274_v59 = vadd.f32 %v273_v57, %v627_v31  ;;  %v235_v60 = vpop.f32.mrb[6].mxu0  ;;  %v275_v61 = vpop.f32.mrb[6].mxu1 }
 0x100   :  { %v236_v62 = vadd.f32 %v235_v60, %v625_v30  ;;  %v276_v63 = vadd.f32 %v275_v61, %v625_v30  ;;  %v237_v0 = vpop.f32.mrb[7].mxu0  ;;  %v277_v1 = vpop.f32.mrb[7].mxu1 }
 0x101   :  { %v458_v2 = vpack.c.bf16 %v234_v58, %v232_v54  ;;  %v466_v3 = vpack.c.bf16 %v274_v59, %v272_v55  ;;  %v238_v4 = vadd.f32 %v237_v0, %v627_v31  ;;  %v278_v5 = vadd.f32 %v277_v1, %v627_v31 }
 0x103   :  { %398 = vst [vmem:[%s712_s3 + $0x10] sm:$0xff] %v458_v2  ;;  %406 = vst [vmem:[%s712_s3 + $0x50] sm:$0xff] %v466_v3  ;;  %v459_v6 = vpack.c.bf16 %v238_v4, %v236_v62  ;;  %v467_v7 = vpack.c.bf16 %v278_v5, %v276_v63 }
 0x105   :  { %399 = vst [vmem:[%s712_s3 + $0x18] sm:$0xff] %v459_v6  ;;  %407 = vst [vmem:[%s712_s3 + $0x58] sm:$0xff] %v467_v7  ;;  %v241_v8 = vpop.f32.mrb[8].mxu0  ;;  %v281_v9 = vpop.f32.mrb[8].mxu1 }
 0x106   :  { %v242_v10 = vadd.f32 %v241_v8, %v625_v30  ;;  %v282_v11 = vadd.f32 %v281_v9, %v625_v30  ;;  %v243_v12 = vpop.f32.mrb[9].mxu0  ;;  %v283_v13 = vpop.f32.mrb[9].mxu1 }
 0x107   :  { %v244_v14 = vadd.f32 %v243_v12, %v627_v31  ;;  %v284_v15 = vadd.f32 %v283_v13, %v627_v31  ;;  %v245_v16 = vpop.f32.mrb[10].mxu0  ;;  %v285_v17 = vpop.f32.mrb[10].mxu1 }
 0x108   :  { %v246_v18 = vadd.f32 %v245_v16, %v625_v30  ;;  %v286_v19 = vadd.f32 %v285_v17, %v625_v30  ;;  %v247_v20 = vpop.f32.mrb[11].mxu0  ;;  %v287_v21 = vpop.f32.mrb[11].mxu1 }
 0x109   :  { %v460_v22 = vpack.c.bf16 %v244_v14, %v242_v10  ;;  %v468_v23 = vpack.c.bf16 %v284_v15, %v282_v11  ;;  %v248_v24 = vadd.f32 %v247_v20, %v627_v31  ;;  %v288_v25 = vadd.f32 %v287_v21, %v627_v31 }
 0x10b   :  { %400 = vst [vmem:[%s712_s3 + $0x20] sm:$0xff] %v460_v22  ;;  %408 = vst [vmem:[%s712_s3 + $0x60] sm:$0xff] %v468_v23  ;;  %v461_v26 = vpack.c.bf16 %v248_v24, %v246_v18  ;;  %v469_v27 = vpack.c.bf16 %v288_v25, %v286_v19 }
 0x10d   :  { %401 = vst [vmem:[%s712_s3 + $0x28] sm:$0xff] %v461_v26  ;;  %409 = vst [vmem:[%s712_s3 + $0x68] sm:$0xff] %v469_v27  ;;  %v251_v28 = vpop.f32.mrb[12].mxu0  ;;  %v291_v29 = vpop.f32.mrb[12].mxu1 }
 0x10e   :  { %v252_v32 = vadd.f32 %v251_v28, %v625_v30  ;;  %v292_v33 = vadd.f32 %v291_v29, %v625_v30  ;;  %v253_v34 = vpop.f32.mrb[13].mxu0  ;;  %v293_v35 = vpop.f32.mrb[13].mxu1 }
 0x10f   :  { %v254_v36 = vadd.f32 %v253_v34, %v627_v31  ;;  %v294_v37 = vadd.f32 %v293_v35, %v627_v31  ;;  %v255_v38 = vpop.f32.mrb[14].mxu0  ;;  %v295_v39 = vpop.f32.mrb[14].mxu1 }
 0x110   :  { %v256_v40 = vadd.f32 %v255_v38, %v625_v30  ;;  %v296_v41 = vadd.f32 %v295_v39, %v625_v30  ;;  %v257_v42 = vpop.f32.mrb[15].mxu0  ;;  %v297_v43 = vpop.f32.mrb[15].mxu1 }
 0x111   :  { %v462_v44 = vpack.c.bf16 %v254_v36, %v252_v32  ;;  %v470_v45 = vpack.c.bf16 %v294_v37, %v292_v33  ;;  %v258_v46 = vadd.f32 %v257_v42, %v627_v31  ;;  %v298_v47 = vadd.f32 %v297_v43, %v627_v31 }
 0x113   :  { %402 = vst [vmem:[%s712_s3 + $0x30] sm:$0xff] %v462_v44  ;;  %410 = vst [vmem:[%s712_s3 + $0x70] sm:$0xff] %v470_v45  ;;  %v463_v48 = vpack.c.bf16 %v258_v46, %v256_v40  ;;  %v471_v49 = vpack.c.bf16 %v298_v47, %v296_v41 }
 0x115   :  { %403 = vst [vmem:[%s712_s3 + $0x38] sm:$0xff] %v463_v48  ;;  %411 = vst [vmem:[%s712_s3 + $0x78] sm:$0xff] %v471_v49 }

// kernel: _lambda_.29
= control target key start
LH: loop header
LB: loop body
LE: loop exit
PB: predicated region body
PF: predicated region fallthrough
CT: control target
= control target key end

     0   :  { %v636_v1 = vmov 0   ;;  %v52_v25 = vlaneseq  ;;  %s957_s1 = inlined_call_operand.vmem [shape: bf16[128,256], index: 1, kind: input, shape index: {}]   ;;  %s958_s0 = inlined_call_operand.vmem [shape: bf16[128,128], index: 0, kind: input, shape index: {}]   ;;  %s959_s2 = inlined_call_operand.vmem [shape: f32[1,256], index: 2, kind: input, shape index: {}]   ;;  %s960_s3 = inlined_call_operand.vmem [shape: bf16[128,256], index: 3, kind: input, shape index: {}]   ;;  %s961_s4 = inlined_call_operand.vmem [shape: bf16[128,256], index: 4, kind: output, shape index: {}]  }
   0x1   :  { %v604_v0 = vld [vmem:[%s957_s1 + $0x4] ss:$8 sps:$4 sm:$0xff]   ;;  %222 = vmatprep.mubr.bf16.mxu0 %v636_v1  ;;  %262 = vmatprep.mubr.bf16.mxu1 %v636_v1  ;;  %v606_v2 = vld [vmem:[%s957_s1] ss:$8 sps:$4 sm:$0xff]   ;;  %v607_v3 = vld [vmem:[%s957_s1 + $0x14] ss:$8 sps:$4 sm:$0xff]  }
   0x2   :  { %190 = vmatprep.subr.bf16.mxu0 %v604_v0  ;;  %587 = vmatprep.subr.bf16.mxu1 %v604_v0  ;;  %v609_v4 = vld [vmem:[%s957_s1 + $0x10] ss:$8 sps:$4 sm:$0xff]   ;;  %v610_v5 = vld [vmem:[%s957_s1 + $0x24] ss:$8 sps:$4 sm:$0xff]   ;;  %v612_v6 = vld [vmem:[%s957_s1 + $0x20] ss:$8 sps:$4 sm:$0xff]  }
   0x3   :  { %191 = vmatpush1.bf16.msra.mxu0 %v606_v2  ;;  %595 = vmatpush1.bf16.msra.mxu1 %v606_v2  ;;  %v613_v7 = vld [vmem:[%s957_s1 + $0x34] ss:$8 sps:$4 sm:$0xff]   ;;  %v615_v8 = vld [vmem:[%s957_s1 + $0x30] ss:$8 sps:$4 sm:$0xff]   ;;  %v616_v9 = vld [vmem:[%s957_s1 + $0x44] ss:$8 sps:$4 sm:$0xff]  }
   0x4   :  { %192 = vmatprep.subr.bf16.mxu0 %v607_v3  ;;  %588 = vmatprep.subr.bf16.mxu1 %v607_v3  ;;  %v618_v10 = vld [vmem:[%s957_s1 + $0x40] ss:$8 sps:$4 sm:$0xff]   ;;  %v619_v11 = vld [vmem:[%s957_s1 + $0x54] ss:$8 sps:$4 sm:$0xff]   ;;  %v621_v12 = vld [vmem:[%s957_s1 + $0x50] ss:$8 sps:$4 sm:$0xff]  }
   0x5   :  { %v622_v13 = vld [vmem:[%s957_s1 + $0x64] ss:$8 sps:$4 sm:$0xff]   ;;  %v624_v14 = vld [vmem:[%s957_s1 + $0x60] ss:$8 sps:$4 sm:$0xff]   ;;  %v625_v15 = vld [vmem:[%s957_s1 + $0x74] ss:$8 sps:$4 sm:$0xff]  }
   0x6   :  { %v627_v16 = vld [vmem:[%s957_s1 + $0x70] ss:$8 sps:$4 sm:$0xff]   ;;  %v628_v17 = vld [vmem:[%s958_s0] sm:$0xff]   ;;  %v630_v19 = vld [vmem:[%s958_s0 + $0x8] sm:$0xff]   ;;  %v53_v26 = vshrl.u32 %v52_v25, 7 }
   0x7   :  { %193 = vmatpush1.bf16.msra.mxu0 %v609_v4  ;;  %596 = vmatpush1.bf16.msra.mxu1 %v609_v4  ;;  %v629_v18 = vld [vmem:[%s958_s0 + $0x20] sm:$0xff]   ;;  %v631_v20 = vld [vmem:[%s958_s0 + $0x28] sm:$0xff]   ;;  %v632_v21 = vld [vmem:[%s958_s0 + $0x10] sm:$0xff]  }
   0x8   :  { %194 = vmatprep.subr.bf16.mxu0 %v610_v5  ;;  %589 = vmatprep.subr.bf16.mxu1 %v610_v5  ;;  %v633_v22 = vld [vmem:[%s958_s0 + $0x30] sm:$0xff]   ;;  %v634_v23 = vld [vmem:[%s958_s0 + $0x18] sm:$0xff]   ;;  %v54_v27 = vsub.s32 0, %v53_v26  ;;  %v58_v28 = vsub.s32 1, %v53_v26  ;;  %v50_v29 = vld [vmem:[%s959_s2] sm:$0x3] }
   0x9   :  { %v635_v24 = vld [vmem:[%s958_s0 + $0x38] sm:$0xff]   ;;  %v303_v30 = vld [vmem:[%s960_s3] sm:$0xff]  ;;  %v304_v32 = vld [vmem:[%s960_s3 + $0x8] sm:$0xff] }
   0xa   :  { %v311_v31 = vld [vmem:[%s960_s3 + $0x40] sm:$0xff]  ;;  %v312_v33 = vld [vmem:[%s960_s3 + $0x48] sm:$0xff]  ;;  %v757_v34 = vrot.slane %v50_v29, %v54_v27  ;;  %v759_v35 = vrot.slane %v50_v29, %v58_v28  ;;  %v764_v36 = vld [vmem:[%s960_s3 + $0x10] sm:$0xff]  ;;  %v319_v38 = vunpack.c.l.bf16 %v303_v30  ;;  %v320_v40 = vunpack.c.h.bf16 %v303_v30 }
   0xb   :  { %195 = vmatpush1.bf16.msra.mxu0 %v612_v6  ;;  %597 = vmatpush1.bf16.msra.mxu1 %v612_v6  ;;  %v769_v37 = vld [vmem:[%s960_s3 + $0x50] sm:$0xff]  ;;  %v335_v39 = vunpack.c.l.bf16 %v311_v31  ;;  %v336_v41 = vunpack.c.h.bf16 %v311_v31  ;;  %v774_v42 = vld [vmem:[%s960_s3 + $0x18] sm:$0xff]  ;;  %v321_v44 = vunpack.c.l.bf16 %v304_v32  ;;  %v337_v45 = vunpack.c.l.bf16 %v312_v33  ;;  %v784_v48 = vld [vmem:[%s960_s3 + $0x20] sm:$0xff] }
   0xc   :  { %196 = vmatprep.subr.bf16.mxu0 %v613_v7  ;;  %590 = vmatprep.subr.bf16.mxu1 %v613_v7  ;;  %v779_v43 = vld [vmem:[%s960_s3 + $0x58] sm:$0xff]  ;;  %v322_v46 = vunpack.c.h.bf16 %v304_v32  ;;  %v338_v47 = vunpack.c.h.bf16 %v312_v33  ;;  %v789_v49 = vld [vmem:[%s960_s3 + $0x60] sm:$0xff]  ;;  %v323_v50 = vunpack.c.l.bf16 %v764_v36  ;;  %v339_v51 = vunpack.c.l.bf16 %v769_v37 }
   0xd   :  { %v324_v52 = vunpack.c.h.bf16 %v764_v36  ;;  %v340_v53 = vunpack.c.h.bf16 %v769_v37  ;;  %v325_v56 = vunpack.c.l.bf16 %v774_v42  ;;  %v341_v57 = vunpack.c.l.bf16 %v779_v43 }
   0xe   :  { %v326_v58 = vunpack.c.h.bf16 %v774_v42  ;;  %v342_v59 = vunpack.c.h.bf16 %v779_v43  ;;  %v327_v0 = vunpack.c.l.bf16 %v784_v48  ;;  %v328_v6 = vunpack.c.h.bf16 %v784_v48 }
   0xf   :  { %197 = vmatpush1.bf16.msra.mxu0 %v615_v8  ;;  %598 = vmatpush1.bf16.msra.mxu1 %v615_v8  ;;  %v344_v7 = vunpack.c.h.bf16 %v789_v49 }
  0x10   :  { %198 = vmatprep.subr.bf16.mxu0 %v616_v9  ;;  %591 = vmatprep.subr.bf16.mxu1 %v616_v9 }
  0x13   :  { %199 = vmatpush1.bf16.msra.mxu0 %v618_v10  ;;  %599 = vmatpush1.bf16.msra.mxu1 %v618_v10 }
  0x14   :  { %200 = vmatprep.subr.bf16.mxu0 %v619_v11  ;;  %592 = vmatprep.subr.bf16.mxu1 %v619_v11 }
  0x17   :  { %201 = vmatpush1.bf16.msra.mxu0 %v621_v12  ;;  %600 = vmatpush1.bf16.msra.mxu1 %v621_v12 }
  0x18   :  { %202 = vmatprep.subr.bf16.mxu0 %v622_v13  ;;  %593 = vmatprep.subr.bf16.mxu1 %v622_v13 }
  0x1b   :  { %203 = vmatpush1.bf16.msra.mxu0 %v624_v14  ;;  %601 = vmatpush1.bf16.msra.mxu1 %v624_v14 }
  0x1c   :  { %204 = vmatprep.subr.bf16.mxu0 %v625_v15  ;;  %594 = vmatprep.subr.bf16.mxu1 %v625_v15 }
  0x1f   :  { %205 = vmatpush1.bf16.msra.mxu0 %v627_v16  ;;  %602 = vmatpush1.bf16.msra.mxu1 %v627_v16 }
  0x22   :  { %223 = vmatmul.mubr.bf16.vlgmr.msra.gmra.mrb[0].mxu0 %v628_v17  ;;  %263 = vmatmul.mubr.bf16.vlgmr.msra.gmra.mrb[0].mxu1 %v629_v18  ;;  %v814_v18 = vld [vmem:[%s960_s3 + $0x28] sm:$0xff] }
  0x23   :  { %232 = vmatprep.mubr.bf16.mxu0 %v636_v1  ;;  %272 = vmatprep.mubr.bf16.mxu1 %v636_v1  ;;  %v329_v30 = vunpack.c.l.bf16 %v814_v18 }
  0x2a   :  { %233 = vmatmul.mubr.bf16.gmra.mrb[4].mxu0 %v630_v19  ;;  %273 = vmatmul.mubr.bf16.gmra.mrb[4].mxu1 %v631_v20  ;;  %v819_v19 = vld [vmem:[%s960_s3 + $0x68] sm:$0xff] }
  0x2b   :  { %242 = vmatprep.mubr.bf16.mxu0 %v636_v1  ;;  %282 = vmatprep.mubr.bf16.mxu1 %v636_v1  ;;  %v345_v31 = vunpack.c.l.bf16 %v819_v19 }
  0x32   :  { %243 = vmatmul.mubr.bf16.gmra.mrb[8].mxu0 %v632_v21  ;;  %283 = vmatmul.mubr.bf16.gmra.mrb[8].mxu1 %v633_v22 }
  0x33   :  { %252 = vmatprep.mubr.bf16.mxu0 %v636_v1  ;;  %292 = vmatprep.mubr.bf16.mxu1 %v636_v1  ;;  %v343_v1 = vunpack.c.l.bf16 %v789_v49 }
  0x3a   :  { %253 = vmatmul.mubr.bf16.gmra.mrb[12].mxu0 %v634_v23  ;;  %293 = vmatmul.mubr.bf16.gmra.mrb[12].mxu1 %v635_v24 }
  0xf5   :  { %v224_v54 = vpop.f32.mrb[0].mxu0  ;;  %v264_v55 = vpop.f32.mrb[0].mxu1 }
  0xf6   :  { %v225_v60 = vadd.f32 %v224_v54, %v757_v34  ;;  %v265_v61 = vadd.f32 %v264_v55, %v757_v34  ;;  %v226_v62 = vpop.f32.mrb[1].mxu0  ;;  %v266_v63 = vpop.f32.mrb[1].mxu1 }
  0xf7   :  { %v227_v2 = vadd.f32 %v226_v62, %v759_v35  ;;  %v267_v3 = vadd.f32 %v266_v63, %v759_v35  ;;  %v228_v4 = vpop.f32.mrb[2].mxu0  ;;  %v268_v5 = vpop.f32.mrb[2].mxu1 }
  0xf8   :  { %v351_v8 = vadd.f32 %v319_v38, %v225_v60  ;;  %v367_v9 = vadd.f32 %v335_v39, %v265_v61  ;;  %v229_v10 = vadd.f32 %v228_v4, %v757_v34  ;;  %v269_v11 = vadd.f32 %v268_v5, %v757_v34  ;;  %v230_v12 = vpop.f32.mrb[3].mxu0  ;;  %v270_v13 = vpop.f32.mrb[3].mxu1 }
  0xf9   :  { %v352_v14 = vadd.f32 %v320_v40, %v227_v2  ;;  %v368_v15 = vadd.f32 %v336_v41, %v267_v3  ;;  %v231_v16 = vadd.f32 %v230_v12, %v759_v35  ;;  %v271_v17 = vadd.f32 %v270_v13, %v759_v35 }
  0xfa   :  { %v383_v20 = vmax.f32 %v351_v8, 0.0  ;;  %v399_v21 = vmax.f32 %v367_v9, 0.0  ;;  %v353_v22 = vadd.f32 %v321_v44, %v229_v10  ;;  %v369_v23 = vadd.f32 %v337_v45, %v269_v11 }
  0xfb   :  { %v384_v24 = vmax.f32 %v352_v14, 0.0  ;;  %v400_v25 = vmax.f32 %v368_v15, 0.0  ;;  %v354_v26 = vadd.f32 %v322_v46, %v231_v16  ;;  %v370_v27 = vadd.f32 %v338_v47, %v271_v17  ;;  %v856_v14 = vld [vmem:[%s960_s3 + $0x30] sm:$0xff] }
  0xfc   :  { %v385_v28 = vmax.f32 %v353_v22, 0.0  ;;  %v401_v29 = vmax.f32 %v369_v23, 0.0  ;;  %v330_v46 = vunpack.c.h.bf16 %v814_v18  ;;  %v346_v47 = vunpack.c.h.bf16 %v819_v19  ;;  %v861_v15 = vld [vmem:[%s960_s3 + $0x70] sm:$0xff] }
  0xfd   :  { %v571_v32 = vpack.c.bf16 %v384_v24, %v383_v20  ;;  %v579_v33 = vpack.c.bf16 %v400_v25, %v399_v21  ;;  %v386_v38 = vmax.f32 %v354_v26, 0.0  ;;  %v402_v39 = vmax.f32 %v370_v27, 0.0  ;;  %v234_v40 = vpop.f32.mrb[4].mxu0  ;;  %v274_v41 = vpop.f32.mrb[4].mxu1 }
  0xfe   :  { %v235_v54 = vadd.f32 %v234_v40, %v757_v34  ;;  %v275_v44 = vadd.f32 %v274_v41, %v757_v34  ;;  %v236_v45 = vpop.f32.mrb[5].mxu0  ;;  %v276_v55 = vpop.f32.mrb[5].mxu1  ;;  %v331_v24 = vunpack.c.l.bf16 %v856_v14  ;;  %v347_v25 = vunpack.c.l.bf16 %v861_v15 }
  0xff   :  { %511 = vst [vmem:[%s961_s4] sm:$0xff] %v571_v32  ;;  %519 = vst [vmem:[%s961_s4 + $0x40] sm:$0xff] %v579_v33  ;;  %v572_v60 = vpack.c.bf16 %v386_v38, %v385_v28  ;;  %v580_v61 = vpack.c.bf16 %v402_v39, %v401_v29  ;;  %v237_v62 = vadd.f32 %v236_v45, %v759_v35  ;;  %v238_v2 = vpop.f32.mrb[6].mxu0  ;;  %v278_v3 = vpop.f32.mrb[6].mxu1  ;;  %v332_v43 = vunpack.c.h.bf16 %v856_v14 }
 0x100   :  { %v277_v63 = vadd.f32 %v276_v55, %v759_v35  ;;  %v355_v4 = vadd.f32 %v323_v50, %v235_v54  ;;  %v371_v5 = vadd.f32 %v339_v51, %v275_v44  ;;  %v239_v8 = vadd.f32 %v238_v2, %v757_v34  ;;  %v240_v10 = vpop.f32.mrb[7].mxu0  ;;  %v280_v11 = vpop.f32.mrb[7].mxu1 }
 0x101   :  { %v279_v9 = vadd.f32 %v278_v3, %v757_v34  ;;  %512 = vst [vmem:[%s961_s4 + $0x8] sm:$0xff] %v572_v60  ;;  %520 = vst [vmem:[%s961_s4 + $0x48] sm:$0xff] %v580_v61  ;;  %v356_v50 = vadd.f32 %v324_v52, %v237_v62  ;;  %v241_v12 = vadd.f32 %v240_v10, %v759_v35 }
 0x102   :  { %v372_v51 = vadd.f32 %v340_v53, %v277_v63  ;;  %v281_v13 = vadd.f32 %v280_v11, %v759_v35  ;;  %v387_v16 = vmax.f32 %v355_v4, 0.0  ;;  %v403_v36 = vmax.f32 %v371_v5, 0.0  ;;  %v310_v4 = vld [vmem:[%s960_s3 + $0x38] sm:$0xff] }
 0x103   :  { %v357_v37 = vadd.f32 %v325_v56, %v239_v8  ;;  %v373_v52 = vadd.f32 %v341_v57, %v279_v9  ;;  %v388_v53 = vmax.f32 %v356_v50, 0.0  ;;  %v358_v20 = vadd.f32 %v326_v58, %v241_v12  ;;  %v318_v5 = vld [vmem:[%s960_s3 + $0x78] sm:$0xff] }
 0x104   :  { %v404_v17 = vmax.f32 %v372_v51, 0.0  ;;  %v374_v21 = vadd.f32 %v342_v59, %v281_v13  ;;  %v348_v59 = vunpack.c.h.bf16 %v861_v15  ;;  %v333_v12 = vunpack.c.l.bf16 %v310_v4 }
 0x105   :  { %v389_v22 = vmax.f32 %v357_v37, 0.0  ;;  %v405_v23 = vmax.f32 %v373_v52, 0.0  ;;  %v573_v26 = vpack.c.bf16 %v388_v53, %v387_v16  ;;  %v390_v56 = vmax.f32 %v358_v20, 0.0  ;;  %v244_v29 = vpop.f32.mrb[8].mxu0  ;;  %v284_v57 = vpop.f32.mrb[8].mxu1 }
 0x106   :  { %v581_v27 = vpack.c.bf16 %v404_v17, %v403_v36  ;;  %v406_v28 = vmax.f32 %v374_v21, 0.0  ;;  %v245_v32 = vadd.f32 %v244_v29, %v757_v34  ;;  %v285_v42 = vadd.f32 %v284_v57, %v757_v34  ;;  %v246_v58 = vpop.f32.mrb[9].mxu0  ;;  %v286_v33 = vpop.f32.mrb[9].mxu1 }
 0x107   :  { %513 = vst [vmem:[%s961_s4 + $0x10] sm:$0xff] %v573_v26  ;;  %v574_v38 = vpack.c.bf16 %v390_v56, %v389_v22  ;;  %v247_v40 = vadd.f32 %v246_v58, %v759_v35  ;;  %v287_v41 = vadd.f32 %v286_v33, %v759_v35  ;;  %v248_v54 = vpop.f32.mrb[10].mxu0  ;;  %v288_v44 = vpop.f32.mrb[10].mxu1  ;;  %v349_v13 = vunpack.c.l.bf16 %v318_v5 }
 0x108   :  { %521 = vst [vmem:[%s961_s4 + $0x50] sm:$0xff] %v581_v27  ;;  %v582_v39 = vpack.c.bf16 %v406_v28, %v405_v23  ;;  %v359_v45 = vadd.f32 %v327_v0, %v245_v32  ;;  %v375_v55 = vadd.f32 %v343_v1, %v285_v42  ;;  %v249_v60 = vadd.f32 %v248_v54, %v757_v34  ;;  %v250_v62 = vpop.f32.mrb[11].mxu0  ;;  %v290_v63 = vpop.f32.mrb[11].mxu1 }
 0x109   :  { %v289_v61 = vadd.f32 %v288_v44, %v757_v34  ;;  %514 = vst [vmem:[%s961_s4 + $0x18] sm:$0xff] %v574_v38  ;;  %v360_v0 = vadd.f32 %v328_v6, %v247_v40  ;;  %v376_v1 = vadd.f32 %v344_v7, %v287_v41  ;;  %v251_v2 = vadd.f32 %v250_v62, %v759_v35 }
 0x10a   :  { %522 = vst [vmem:[%s961_s4 + $0x58] sm:$0xff] %v582_v39  ;;  %v291_v3 = vadd.f32 %v290_v63, %v759_v35  ;;  %v391_v8 = vmax.f32 %v359_v45, 0.0  ;;  %v407_v9 = vmax.f32 %v375_v55, 0.0  ;;  %v361_v48 = vadd.f32 %v329_v30, %v249_v60 }
 0x10b   :  { %v377_v49 = vadd.f32 %v345_v31, %v289_v61  ;;  %v392_v6 = vmax.f32 %v360_v0, 0.0  ;;  %v408_v7 = vmax.f32 %v376_v1, 0.0  ;;  %v362_v10 = vadd.f32 %v330_v46, %v251_v2 }
 0x10c   :  { %v378_v11 = vadd.f32 %v346_v47, %v291_v3  ;;  %v393_v50 = vmax.f32 %v361_v48, 0.0  ;;  %v334_v46 = vunpack.c.h.bf16 %v310_v4  ;;  %v350_v21 = vunpack.c.h.bf16 %v318_v5 }
 0x10d   :  { %v409_v51 = vmax.f32 %v377_v49, 0.0  ;;  %v575_v16 = vpack.c.bf16 %v392_v6, %v391_v8  ;;  %v583_v36 = vpack.c.bf16 %v408_v7, %v407_v9  ;;  %v394_v37 = vmax.f32 %v362_v10, 0.0  ;;  %v254_v30 = vpop.f32.mrb[12].mxu0  ;;  %v294_v53 = vpop.f32.mrb[12].mxu1 }
 0x10e   :  { %v410_v52 = vmax.f32 %v378_v11, 0.0  ;;  %v255_v31 = vadd.f32 %v254_v30, %v757_v34  ;;  %v295_v17 = vadd.f32 %v294_v53, %v757_v34  ;;  %v256_v20 = vpop.f32.mrb[13].mxu0  ;;  %v296_v18 = vpop.f32.mrb[13].mxu1 }
 0x10f   :  { %515 = vst [vmem:[%s961_s4 + $0x20] sm:$0xff] %v575_v16  ;;  %523 = vst [vmem:[%s961_s4 + $0x60] sm:$0xff] %v583_v36  ;;  %v576_v19 = vpack.c.bf16 %v394_v37, %v393_v50  ;;  %v257_v22 = vadd.f32 %v256_v20, %v759_v35  ;;  %v297_v23 = vadd.f32 %v296_v18, %v759_v35  ;;  %v258_v26 = vpop.f32.mrb[14].mxu0  ;;  %v298_v27 = vpop.f32.mrb[14].mxu1 }
 0x110   :  { %v584_v47 = vpack.c.bf16 %v410_v52, %v409_v51  ;;  %v363_v56 = vadd.f32 %v331_v24, %v255_v31  ;;  %v379_v28 = vadd.f32 %v347_v25, %v295_v17  ;;  %v259_v29 = vadd.f32 %v258_v26, %v757_v34  ;;  %v260_v32 = vpop.f32.mrb[15].mxu0  ;;  %v300_v42 = vpop.f32.mrb[15].mxu1 }
 0x111   :  { %v299_v57 = vadd.f32 %v298_v27, %v757_v34  ;;  %516 = vst [vmem:[%s961_s4 + $0x28] sm:$0xff] %v576_v19  ;;  %v364_v24 = vadd.f32 %v332_v43, %v257_v22  ;;  %v380_v25 = vadd.f32 %v348_v59, %v297_v23  ;;  %v261_v58 = vadd.f32 %v260_v32, %v759_v35 }
 0x112   :  { %524 = vst [vmem:[%s961_s4 + $0x68] sm:$0xff] %v584_v47  ;;  %v301_v34 = vadd.f32 %v300_v42, %v759_v35  ;;  %v395_v33 = vmax.f32 %v363_v56, 0.0  ;;  %v411_v38 = vmax.f32 %v379_v28, 0.0  ;;  %v365_v39 = vadd.f32 %v333_v12, %v259_v29 }
 0x113   :  { %v381_v40 = vadd.f32 %v349_v13, %v299_v57  ;;  %v396_v41 = vmax.f32 %v364_v24, 0.0  ;;  %v412_v54 = vmax.f32 %v380_v25, 0.0  ;;  %v366_v44 = vadd.f32 %v334_v46, %v261_v58 }
 0x114   :  { %v382_v45 = vadd.f32 %v350_v21, %v301_v34  ;;  %v397_v55 = vmax.f32 %v365_v39, 0.0 }
 0x115   :  { %v413_v60 = vmax.f32 %v381_v40, 0.0  ;;  %v577_v61 = vpack.c.bf16 %v396_v41, %v395_v33  ;;  %v585_v14 = vpack.c.bf16 %v412_v54, %v411_v38  ;;  %v398_v43 = vmax.f32 %v366_v44, 0.0 }
 0x116   :  { %v414_v62 = vmax.f32 %v382_v45, 0.0 }
 0x117   :  { %517 = vst [vmem:[%s961_s4 + $0x30] sm:$0xff] %v577_v61  ;;  %525 = vst [vmem:[%s961_s4 + $0x70] sm:$0xff] %v585_v14  ;;  %v578_v35 = vpack.c.bf16 %v398_v43, %v397_v55 }
 0x118   :  { %v586_v15 = vpack.c.bf16 %v414_v62, %v413_v60 }
 0x119   :  { %518 = vst [vmem:[%s961_s4 + $0x38] sm:$0xff] %v578_v35 }
 0x11a   :  { %526 = vst [vmem:[%s961_s4 + $0x78] sm:$0xff] %v586_v15 }

// kernel: _lambda_.30
= control target key start
LH: loop header
LB: loop body
LE: loop exit
PB: predicated region body
PF: predicated region fallthrough
CT: control target
= control target key end

     0   :  { %s836_s1 = inlined_call_operand.vmem [shape: bf16[256,128], index: 1, kind: input, shape index: {}]   ;;  %s837_s0 = inlined_call_operand.vmem [shape: bf16[128,256], index: 0, kind: input, shape index: {}]   ;;  %s838_s2 = inlined_call_operand.vmem [shape: f32[1,128], index: 2, kind: input, shape index: {}]   ;;  %s839_s3 = inlined_call_operand.vmem [shape: bf16[128,128], index: 3, kind: output, shape index: {}]  }
   0x1   :  { %v635_v0 = vld [vmem:[%s836_s1 + $0x40] sm:$0xff]   ;;  %v637_v2 = vld [vmem:[%s836_s1 + $0x48] sm:$0xff]   ;;  %v639_v4 = vld [vmem:[%s836_s1 + $0x50] sm:$0xff]  }
   0x2   :  { %v636_v1 = vld [vmem:[%s836_s1] sm:$0xff]   ;;  %555 = vmatprep.subr.bf16.mxu0 %v635_v0  ;;  %619 = vmatprep.subr.bf16.mxu1 %v635_v0  ;;  %v638_v3 = vld [vmem:[%s836_s1 + $0x8] sm:$0xff]   ;;  %v640_v5 = vld [vmem:[%s836_s1 + $0x10] sm:$0xff]  }
   0x3   :  { %556 = vmatpush3.bf16.msra.mxu0 %v636_v1  ;;  %627 = vmatpush3.bf16.msra.mxu1 %v636_v1  ;;  %v641_v6 = vld [vmem:[%s836_s1 + $0x58] sm:$0xff]   ;;  %v643_v8 = vld [vmem:[%s836_s1 + $0x60] sm:$0xff]   ;;  %v645_v10 = vld [vmem:[%s836_s1 + $0x68] sm:$0xff]  }
   0x4   :  { %557 = vmatprep.subr.bf16.mxu0 %v637_v2  ;;  %620 = vmatprep.subr.bf16.mxu1 %v637_v2  ;;  %v642_v7 = vld [vmem:[%s836_s1 + $0x18] sm:$0xff]   ;;  %v644_v9 = vld [vmem:[%s836_s1 + $0x20] sm:$0xff]   ;;  %v646_v13 = vld [vmem:[%s836_s1 + $0x28] sm:$0xff]  }
   0x5   :  { %v653_v11 = vld [vmem:[%s837_s0 + $0x4] ss:$8 sps:$4 sm:$0xff]   ;;  %v647_v14 = vld [vmem:[%s836_s1 + $0x70] sm:$0xff]   ;;  %v649_v16 = vld [vmem:[%s836_s1 + $0x78] sm:$0xff]  }
   0x6   :  { %v656_v12 = vld [vmem:[%s837_s0 + $0x44] ss:$8 sps:$4 sm:$0xff]   ;;  %278 = vmatprep.mubr.bf16.mxu0 %v653_v11  ;;  %v648_v15 = vld [vmem:[%s836_s1 + $0x30] sm:$0xff]   ;;  %v650_v17 = vld [vmem:[%s836_s1 + $0x38] sm:$0xff]  }
   0x7   :  { %558 = vmatpush3.bf16.msra.mxu0 %v638_v3  ;;  %628 = vmatpush3.bf16.msra.mxu1 %v638_v3  ;;  %v651_v18 = vld [vmem:[%s837_s0] ss:$8 sps:$4 sm:$0xff]   ;;  %v657_v20 = vld [vmem:[%s837_s0 + $0x14] ss:$8 sps:$4 sm:$0xff]   ;;  %v661_v22 = vld [vmem:[%s837_s0 + $0x10] ss:$8 sps:$4 sm:$0xff]  }
   0x8   :  { %559 = vmatprep.subr.bf16.mxu0 %v639_v4  ;;  %621 = vmatprep.subr.bf16.mxu1 %v639_v4  ;;  %v654_v19 = vld [vmem:[%s837_s0 + $0x40] ss:$8 sps:$4 sm:$0xff]   ;;  %v659_v21 = vld [vmem:[%s837_s0 + $0x54] ss:$8 sps:$4 sm:$0xff]   ;;  %v662_v23 = vld [vmem:[%s837_s0 + $0x50] ss:$8 sps:$4 sm:$0xff]  }
   0x9   :  { %310 = vmatprep.mubr.bf16.mxu1 %v656_v12  ;;  %v663_v24 = vld [vmem:[%s837_s0 + $0x24] ss:$8 sps:$4 sm:$0xff]   ;;  %v667_v26 = vld [vmem:[%s837_s0 + $0x20] ss:$8 sps:$4 sm:$0xff]   ;;  %v669_v28 = vld [vmem:[%s837_s0 + $0x34] ss:$8 sps:$4 sm:$0xff]  }
   0xa   :  { %v665_v25 = vld [vmem:[%s837_s0 + $0x64] ss:$8 sps:$4 sm:$0xff]   ;;  %v668_v27 = vld [vmem:[%s837_s0 + $0x60] ss:$8 sps:$4 sm:$0xff]   ;;  %v671_v29 = vld [vmem:[%s837_s0 + $0x74] ss:$8 sps:$4 sm:$0xff]  }
   0xb   :  { %560 = vmatpush3.bf16.msra.mxu0 %v640_v5  ;;  %629 = vmatpush3.bf16.msra.mxu1 %v640_v5  ;;  %v673_v30 = vld [vmem:[%s837_s0 + $0x30] ss:$8 sps:$4 sm:$0xff]   ;;  %v794_v34 = vld [vmem:[%s838_s2] ss:$0 sm:$0xff] }
   0xc   :  { %561 = vmatprep.subr.bf16.mxu0 %v641_v6  ;;  %622 = vmatprep.subr.bf16.mxu1 %v641_v6  ;;  %v674_v31 = vld [vmem:[%s837_s0 + $0x70] ss:$8 sps:$4 sm:$0xff]  }
   0xf   :  { %562 = vmatpush3.bf16.msra.mxu0 %v642_v7  ;;  %630 = vmatpush3.bf16.msra.mxu1 %v642_v7 }
  0x10   :  { %563 = vmatprep.subr.bf16.mxu0 %v643_v8  ;;  %623 = vmatprep.subr.bf16.mxu1 %v643_v8 }
  0x13   :  { %564 = vmatpush3.bf16.msra.mxu0 %v644_v9  ;;  %631 = vmatpush3.bf16.msra.mxu1 %v644_v9 }
  0x14   :  { %565 = vmatprep.subr.bf16.mxu0 %v645_v10  ;;  %624 = vmatprep.subr.bf16.mxu1 %v645_v10 }
  0x17   :  { %566 = vmatpush3.bf16.msra.mxu0 %v646_v13  ;;  %632 = vmatpush3.bf16.msra.mxu1 %v646_v13 }
  0x18   :  { %567 = vmatprep.subr.bf16.mxu0 %v647_v14  ;;  %625 = vmatprep.subr.bf16.mxu1 %v647_v14 }
  0x1b   :  { %568 = vmatpush3.bf16.msra.mxu0 %v648_v15  ;;  %633 = vmatpush3.bf16.msra.mxu1 %v648_v15 }
  0x1c   :  { %569 = vmatprep.subr.bf16.mxu0 %v649_v16  ;;  %626 = vmatprep.subr.bf16.mxu1 %v649_v16 }
  0x1f   :  { %570 = vmatpush3.bf16.msra.mxu0 %v650_v17  ;;  %634 = vmatpush3.bf16.msra.mxu1 %v650_v17 }
  0x22   :  { %279 = vmatmul.mubr.bf16.vlgmr.msra.gmra.mrb[0].mxu0 %v651_v18  ;;  %311 = vmatmul.mubr.bf16.vlgmr.msra.gmra.mrb[0].mxu1 %v654_v19 }
  0x23   :  { %286 = vmatprep.mubr.bf16.mxu0 %v657_v20  ;;  %318 = vmatprep.mubr.bf16.mxu1 %v659_v21 }
  0x2a   :  { %287 = vmatmul.mubr.bf16.gmra.mrb[4].mxu0 %v661_v22  ;;  %319 = vmatmul.mubr.bf16.gmra.mrb[4].mxu1 %v662_v23 }
  0x2b   :  { %294 = vmatprep.mubr.bf16.mxu0 %v663_v24  ;;  %326 = vmatprep.mubr.bf16.mxu1 %v665_v25 }
  0x32   :  { %295 = vmatmul.mubr.bf16.gmra.mrb[8].mxu0 %v667_v26  ;;  %327 = vmatmul.mubr.bf16.gmra.mrb[8].mxu1 %v668_v27 }
  0x33   :  { %302 = vmatprep.mubr.bf16.mxu0 %v669_v28  ;;  %334 = vmatprep.mubr.bf16.mxu1 %v671_v29 }
  0x3a   :  { %303 = vmatmul.mubr.bf16.gmra.mrb[12].mxu0 %v673_v30  ;;  %335 = vmatmul.mubr.bf16.gmra.mrb[12].mxu1 %v674_v31 }
  0xf5   :  { %v571_v32 = vpop.f32.mrb[0].mxu0  ;;  %v595_v33 = vpop.f32.mrb[0].mxu1 }
  0xf6   :  { %v572_v35 = vpop.f32.mrb[1].mxu0  ;;  %v596_v36 = vpop.f32.mrb[1].mxu1 }
  0xf7   :  { %v573_v37 = vadd.f32 %v572_v35, %v571_v32  ;;  %v597_v38 = vadd.f32 %v596_v36, %v595_v33  ;;  %v574_v39 = vpop.f32.mrb[2].mxu0  ;;  %v598_v40 = vpop.f32.mrb[2].mxu1 }
  0xf8   :  { %v575_v41 = vpop.f32.mrb[3].mxu0  ;;  %v599_v42 = vpop.f32.mrb[3].mxu1 }
  0xf9   :  { %v281_v43 = vadd.f32 %v573_v37, %v794_v34  ;;  %v313_v44 = vadd.f32 %v597_v38, %v794_v34  ;;  %v576_v45 = vadd.f32 %v575_v41, %v574_v39  ;;  %v600_v46 = vadd.f32 %v599_v42, %v598_v40 }
  0xfb   :  { %v284_v47 = vadd.f32 %v576_v45, %v794_v34  ;;  %v316_v48 = vadd.f32 %v600_v46, %v794_v34  ;;  %v343_v49 = vmax.f32 %v281_v43, 0.0  ;;  %v351_v50 = vmax.f32 %v313_v44, 0.0 }
  0xfd   :  { %v344_v51 = vmax.f32 %v284_v47, 0.0  ;;  %v352_v52 = vmax.f32 %v316_v48, 0.0  ;;  %v577_v53 = vpop.f32.mrb[4].mxu0  ;;  %v601_v54 = vpop.f32.mrb[4].mxu1 }
  0xfe   :  { %v578_v55 = vpop.f32.mrb[5].mxu0  ;;  %v602_v56 = vpop.f32.mrb[5].mxu1 }
  0xff   :  { %v511_v57 = vpack.c.bf16 %v344_v51, %v343_v49  ;;  %v531_v58 = vpack.c.bf16 %v352_v52, %v351_v50  ;;  %v579_v59 = vadd.f32 %v578_v55, %v577_v53  ;;  %v603_v60 = vadd.f32 %v602_v56, %v601_v54  ;;  %v580_v61 = vpop.f32.mrb[6].mxu0  ;;  %v604_v62 = vpop.f32.mrb[6].mxu1 }
 0x100   :  { %v581_v63 = vpop.f32.mrb[7].mxu0  ;;  %v605_v0 = vpop.f32.mrb[7].mxu1 }
 0x101   :  { %512 = vst [vmem:[%s839_s3] sm:$0xff] %v511_v57   ;;  %551 = vst [vmem:[%s839_s3 + $0x20] sm:$0xff] %v531_v58   ;;  %v289_v1 = vadd.f32 %v579_v59, %v794_v34  ;;  %v321_v2 = vadd.f32 %v603_v60, %v794_v34  ;;  %v582_v3 = vadd.f32 %v581_v63, %v580_v61 }
 0x102   :  { %v606_v4 = vadd.f32 %v605_v0, %v604_v62 }
 0x103   :  { %v292_v5 = vadd.f32 %v582_v3, %v794_v34  ;;  %v345_v7 = vmax.f32 %v289_v1, 0.0  ;;  %v353_v8 = vmax.f32 %v321_v2, 0.0 }
 0x104   :  { %v324_v6 = vadd.f32 %v606_v4, %v794_v34 }
 0x105   :  { %v346_v9 = vmax.f32 %v292_v5, 0.0  ;;  %v583_v11 = vpop.f32.mrb[8].mxu0  ;;  %v607_v12 = vpop.f32.mrb[8].mxu1 }
 0x106   :  { %v354_v10 = vmax.f32 %v324_v6, 0.0  ;;  %v584_v13 = vpop.f32.mrb[9].mxu0  ;;  %v608_v14 = vpop.f32.mrb[9].mxu1 }
 0x107   :  { %v516_v15 = vpack.c.bf16 %v346_v9, %v345_v7  ;;  %v585_v17 = vadd.f32 %v584_v13, %v583_v11  ;;  %v609_v18 = vadd.f32 %v608_v14, %v607_v12  ;;  %v586_v19 = vpop.f32.mrb[10].mxu0  ;;  %v610_v20 = vpop.f32.mrb[10].mxu1 }
 0x108   :  { %v536_v16 = vpack.c.bf16 %v354_v10, %v353_v8  ;;  %v587_v21 = vpop.f32.mrb[11].mxu0  ;;  %v611_v22 = vpop.f32.mrb[11].mxu1 }
 0x109   :  { %548 = vst [vmem:[%s839_s3 + $0x8] sm:$0xff] %v516_v15   ;;  %v297_v23 = vadd.f32 %v585_v17, %v794_v34  ;;  %v329_v24 = vadd.f32 %v609_v18, %v794_v34  ;;  %v588_v25 = vadd.f32 %v587_v21, %v586_v19  ;;  %v612_v26 = vadd.f32 %v611_v22, %v610_v20 }
 0x10a   :  { %552 = vst [vmem:[%s839_s3 + $0x28] sm:$0xff] %v536_v16  }
 0x10b   :  { %v300_v27 = vadd.f32 %v588_v25, %v794_v34  ;;  %v332_v28 = vadd.f32 %v612_v26, %v794_v34  ;;  %v347_v29 = vmax.f32 %v297_v23, 0.0  ;;  %v355_v30 = vmax.f32 %v329_v24, 0.0 }
 0x10d   :  { %v348_v31 = vmax.f32 %v300_v27, 0.0  ;;  %v356_v32 = vmax.f32 %v332_v28, 0.0  ;;  %v589_v33 = vpop.f32.mrb[12].mxu0  ;;  %v613_v35 = vpop.f32.mrb[12].mxu1 }
 0x10e   :  { %v590_v36 = vpop.f32.mrb[13].mxu0  ;;  %v614_v37 = vpop.f32.mrb[13].mxu1 }
 0x10f   :  { %v521_v38 = vpack.c.bf16 %v348_v31, %v347_v29  ;;  %v541_v39 = vpack.c.bf16 %v356_v32, %v355_v30  ;;  %v591_v40 = vadd.f32 %v590_v36, %v589_v33  ;;  %v615_v41 = vadd.f32 %v614_v37, %v613_v35  ;;  %v592_v42 = vpop.f32.mrb[14].mxu0  ;;  %v616_v43 = vpop.f32.mrb[14].mxu1 }
 0x110   :  { %v593_v44 = vpop.f32.mrb[15].mxu0  ;;  %v617_v45 = vpop.f32.mrb[15].mxu1 }
 0x111   :  { %549 = vst [vmem:[%s839_s3 + $0x10] sm:$0xff] %v521_v38   ;;  %553 = vst [vmem:[%s839_s3 + $0x30] sm:$0xff] %v541_v39   ;;  %v305_v46 = vadd.f32 %v591_v40, %v794_v34  ;;  %v337_v47 = vadd.f32 %v615_v41, %v794_v34  ;;  %v594_v48 = vadd.f32 %v593_v44, %v592_v42 }
 0x112   :  { %v618_v49 = vadd.f32 %v617_v45, %v616_v43 }
 0x113   :  { %v308_v50 = vadd.f32 %v594_v48, %v794_v34  ;;  %v349_v52 = vmax.f32 %v305_v46, 0.0  ;;  %v357_v53 = vmax.f32 %v337_v47, 0.0 }
 0x114   :  { %v340_v51 = vadd.f32 %v618_v49, %v794_v34 }
 0x115   :  { %v350_v54 = vmax.f32 %v308_v50, 0.0 }
 0x116   :  { %v358_v55 = vmax.f32 %v340_v51, 0.0 }
 0x117   :  { %v526_v56 = vpack.c.bf16 %v350_v54, %v349_v52 }
 0x118   :  { %v546_v57 = vpack.c.bf16 %v358_v55, %v357_v53 }
 0x119   :  { %550 = vst [vmem:[%s839_s3 + $0x18] sm:$0xff] %v526_v56  }
 0x11a   :  { %554 = vst [vmem:[%s839_s3 + $0x38] sm:$0xff] %v546_v57  }

// kernel: _lambda_.39
= control target key start
LH: loop header
LB: loop body
LE: loop exit
PB: predicated region body
PF: predicated region fallthrough
CT: control target
= control target key end

     0   :  { %v571_v1 = vmov 0   ;;  %v56_v35 = vlaneseq  ;;  %s786_s1 = inlined_call_operand.vmem [shape: bf16[128,512], index: 1, kind: input, shape index: {}]   ;;  %s787_s0 = inlined_call_operand.vmem [shape: bf16[32,128], index: 0, kind: input, shape index: {}]   ;;  %s788_s2 = inlined_call_operand.vmem [shape: f32[1,512], index: 2, kind: input, shape index: {}]   ;;  %s789_s3 = inlined_call_operand.vmem [shape: bf16[32,512], index: 3, kind: input, shape index: {}]   ;;  %s790_s4 = inlined_call_operand.vmem [shape: bf16[32,512], index: 4, kind: output, shape index: {}]  }
   0x1   :  { %v521_v0 = vld [vmem:[%s786_s1 + $0x4] ss:$16 sps:$4 sm:$0xff]   ;;  %280 = vmatprep.mubr.bf16.mxu0 %v571_v1  ;;  %333 = vmatprep.mubr.bf16.mxu1 %v571_v1  ;;  %v523_v2 = vld [vmem:[%s786_s1 + $0xc] ss:$16 sps:$4 sm:$0xff]   ;;  %v525_v3 = vld [vmem:[%s786_s1] ss:$16 sps:$4 sm:$0xff]  }
   0x2   :  { %248 = vmatprep.subr.bf16.mxu0 %v521_v0  ;;  %v526_v4 = vld [vmem:[%s786_s1 + $0x8] ss:$16 sps:$4 sm:$0xff]   ;;  %301 = vmatprep.subr.bf16.mxu1 %v523_v2  ;;  %v527_v5 = vld [vmem:[%s786_s1 + $0x24] ss:$16 sps:$4 sm:$0xff]   ;;  %v529_v6 = vld [vmem:[%s786_s1 + $0x2c] ss:$16 sps:$4 sm:$0xff]  }
   0x3   :  { %249 = vmatpush1.bf16.msra.mxu0 %v525_v3  ;;  %302 = vmatpush1.bf16.msra.mxu1 %v526_v4  ;;  %v531_v7 = vld [vmem:[%s786_s1 + $0x20] ss:$16 sps:$4 sm:$0xff]   ;;  %v532_v8 = vld [vmem:[%s786_s1 + $0x28] ss:$16 sps:$4 sm:$0xff]   ;;  %v533_v9 = vld [vmem:[%s786_s1 + $0x44] ss:$16 sps:$4 sm:$0xff]  }
   0x4   :  { %250 = vmatprep.subr.bf16.mxu0 %v527_v5  ;;  %303 = vmatprep.subr.bf16.mxu1 %v529_v6  ;;  %v535_v10 = vld [vmem:[%s786_s1 + $0x4c] ss:$16 sps:$4 sm:$0xff]   ;;  %v537_v11 = vld [vmem:[%s786_s1 + $0x40] ss:$16 sps:$4 sm:$0xff]   ;;  %v538_v12 = vld [vmem:[%s786_s1 + $0x48] ss:$16 sps:$4 sm:$0xff]  }
   0x5   :  { %v539_v13 = vld [vmem:[%s786_s1 + $0x64] ss:$16 sps:$4 sm:$0xff]   ;;  %v541_v14 = vld [vmem:[%s786_s1 + $0x6c] ss:$16 sps:$4 sm:$0xff]   ;;  %v543_v15 = vld [vmem:[%s786_s1 + $0x60] ss:$16 sps:$4 sm:$0xff]  }
   0x6   :  { %v544_v16 = vld [vmem:[%s786_s1 + $0x68] ss:$16 sps:$4 sm:$0xff]   ;;  %v545_v17 = vld [vmem:[%s786_s1 + $0x84] ss:$16 sps:$4 sm:$0xff]   ;;  %v547_v18 = vld [vmem:[%s786_s1 + $0x8c] ss:$16 sps:$4 sm:$0xff]  }
   0x7   :  { %251 = vmatpush1.bf16.msra.mxu0 %v531_v7  ;;  %304 = vmatpush1.bf16.msra.mxu1 %v532_v8  ;;  %v549_v19 = vld [vmem:[%s786_s1 + $0x80] ss:$16 sps:$4 sm:$0xff]   ;;  %v550_v20 = vld [vmem:[%s786_s1 + $0x88] ss:$16 sps:$4 sm:$0xff]   ;;  %v551_v21 = vld [vmem:[%s786_s1 + $0xa4] ss:$16 sps:$4 sm:$0xff]  }
   0x8   :  { %252 = vmatprep.subr.bf16.mxu0 %v533_v9  ;;  %305 = vmatprep.subr.bf16.mxu1 %v535_v10  ;;  %v553_v22 = vld [vmem:[%s786_s1 + $0xac] ss:$16 sps:$4 sm:$0xff]   ;;  %v555_v23 = vld [vmem:[%s786_s1 + $0xa0] ss:$16 sps:$4 sm:$0xff]   ;;  %v556_v24 = vld [vmem:[%s786_s1 + $0xa8] ss:$16 sps:$4 sm:$0xff]  }
   0x9   :  { %v557_v25 = vld [vmem:[%s786_s1 + $0xc4] ss:$16 sps:$4 sm:$0xff]   ;;  %v559_v26 = vld [vmem:[%s786_s1 + $0xcc] ss:$16 sps:$4 sm:$0xff]   ;;  %v561_v27 = vld [vmem:[%s786_s1 + $0xc0] ss:$16 sps:$4 sm:$0xff]  }
   0xa   :  { %v562_v28 = vld [vmem:[%s786_s1 + $0xc8] ss:$16 sps:$4 sm:$0xff]   ;;  %v563_v29 = vld [vmem:[%s786_s1 + $0xe4] ss:$16 sps:$4 sm:$0xff]   ;;  %v565_v30 = vld [vmem:[%s786_s1 + $0xec] ss:$16 sps:$4 sm:$0xff]  }
   0xb   :  { %253 = vmatpush1.bf16.msra.mxu0 %v537_v11  ;;  %306 = vmatpush1.bf16.msra.mxu1 %v538_v12  ;;  %v567_v31 = vld [vmem:[%s786_s1 + $0xe0] ss:$16 sps:$4 sm:$0xff]   ;;  %v568_v32 = vld [vmem:[%s786_s1 + $0xe8] ss:$16 sps:$4 sm:$0xff]   ;;  %v57_v36 = vshrl.u32 %v56_v35, 7 }
   0xc   :  { %254 = vmatprep.subr.bf16.mxu0 %v539_v13  ;;  %307 = vmatprep.subr.bf16.mxu1 %v541_v14  ;;  %v569_v33 = vld [vmem:[%s787_s0] sm:$0xff]   ;;  %v570_v34 = vld [vmem:[%s787_s0 + $0x8] sm:$0xff]   ;;  %v356_v46 = vld [vmem:[%s789_s3 + $0x10] sm:$0xff] }
   0xd   :  { %v58_v37 = vsub.s32 0, %v57_v36  ;;  %v66_v38 = vsub.s32 2, %v57_v36  ;;  %v54_v39 = vld [vmem:[%s788_s2] sm:$0xf]  ;;  %v62_v40 = vsub.s32 1, %v57_v36  ;;  %v70_v41 = vsub.s32 3, %v57_v36 }
   0xe   :  { %v354_v42 = vld [vmem:[%s789_s3] sm:$0xff]  ;;  %v355_v43 = vld [vmem:[%s789_s3 + $0x8] sm:$0xff]  ;;  %v357_v47 = vld [vmem:[%s789_s3 + $0x18] sm:$0xff]  ;;  %v366_v58 = vunpack.c.l.bf16 %v356_v46  ;;  %v367_v60 = vunpack.c.h.bf16 %v356_v46 }
   0xf   :  { %255 = vmatpush1.bf16.msra.mxu0 %v543_v15  ;;  %308 = vmatpush1.bf16.msra.mxu1 %v544_v16  ;;  %v712_v44 = vrot.slane %v54_v39, %v58_v37  ;;  %v714_v45 = vrot.slane %v54_v39, %v66_v38  ;;  %v722_v48 = vrot.slane %v54_v39, %v62_v40  ;;  %v729_v50 = vld [vmem:[%s789_s3 + $0x20] sm:$0xff]  ;;  %v734_v51 = vld [vmem:[%s789_s3 + $0x28] sm:$0xff]  ;;  %v362_v52 = vunpack.c.l.bf16 %v354_v42 }
  0x10   :  { %256 = vmatprep.subr.bf16.mxu0 %v545_v17  ;;  %309 = vmatprep.subr.bf16.mxu1 %v547_v18  ;;  %v724_v49 = vrot.slane %v54_v39, %v70_v41  ;;  %v364_v53 = vunpack.c.l.bf16 %v355_v43  ;;  %v363_v54 = vunpack.c.h.bf16 %v354_v42  ;;  %v365_v55 = vunpack.c.h.bf16 %v355_v43 }
  0x11   :  { %v368_v59 = vunpack.c.l.bf16 %v357_v47  ;;  %v369_v61 = vunpack.c.h.bf16 %v357_v47  ;;  %v370_v2 = vunpack.c.l.bf16 %v729_v50  ;;  %v372_v3 = vunpack.c.l.bf16 %v734_v51 }
  0x12   :  { %v371_v8 = vunpack.c.h.bf16 %v729_v50  ;;  %v373_v9 = vunpack.c.h.bf16 %v734_v51 }
  0x13   :  { %257 = vmatpush1.bf16.msra.mxu0 %v549_v19  ;;  %310 = vmatpush1.bf16.msra.mxu1 %v550_v20  ;;  %v360_v20 = vld [vmem:[%s789_s3 + $0x30] sm:$0xff] }
  0x14   :  { %258 = vmatprep.subr.bf16.mxu0 %v551_v21  ;;  %311 = vmatprep.subr.bf16.mxu1 %v553_v22  ;;  %v361_v21 = vld [vmem:[%s789_s3 + $0x38] sm:$0xff]  ;;  %v375_v46 = vunpack.c.h.bf16 %v360_v20 }
  0x15   :  { %v377_v47 = vunpack.c.h.bf16 %v361_v21 }
  0x17   :  { %259 = vmatpush1.bf16.msra.mxu0 %v555_v23  ;;  %312 = vmatpush1.bf16.msra.mxu1 %v556_v24 }
  0x18   :  { %260 = vmatprep.subr.bf16.mxu0 %v557_v25  ;;  %313 = vmatprep.subr.bf16.mxu1 %v559_v26 }
  0x1b   :  { %261 = vmatpush1.bf16.msra.mxu0 %v561_v27  ;;  %314 = vmatpush1.bf16.msra.mxu1 %v562_v28 }
  0x1c   :  { %262 = vmatprep.subr.bf16.mxu0 %v563_v29  ;;  %315 = vmatprep.subr.bf16.mxu1 %v565_v30 }
  0x1f   :  { %263 = vmatpush1.bf16.msra.mxu0 %v567_v31  ;;  %316 = vmatpush1.bf16.msra.mxu1 %v568_v32  ;;  %v374_v32 = vunpack.c.l.bf16 %v360_v20 }
  0x22   :  { %281 = vmatmul.mubr.bf16.vlgmr.msra.gmra.mrb[0].mxu0 %v569_v33  ;;  %334 = vmatmul.mubr.bf16.vlgmr.msra.gmra.mrb[0].mxu1 %v569_v33  ;;  %v376_v33 = vunpack.c.l.bf16 %v361_v21 }
  0x23   :  { %290 = vmatprep.mubr.bf16.mxu0 %v571_v1  ;;  %343 = vmatprep.mubr.bf16.mxu1 %v571_v1 }
  0x2a   :  { %291 = vmatmul.mubr.bf16.gmra.mrb[4].mxu0 %v570_v34  ;;  %344 = vmatmul.mubr.bf16.gmra.mrb[4].mxu1 %v570_v34 }
  0xf5   :  { %v282_v56 = vpop.f32.mrb[0].mxu0  ;;  %v335_v57 = vpop.f32.mrb[0].mxu1 }
  0xf6   :  { %v283_v62 = vadd.f32 %v282_v56, %v712_v44  ;;  %v336_v63 = vadd.f32 %v335_v57, %v714_v45  ;;  %v284_v0 = vpop.f32.mrb[1].mxu0  ;;  %v337_v1 = vpop.f32.mrb[1].mxu1 }
  0xf7   :  { %v285_v4 = vadd.f32 %v284_v0, %v722_v48  ;;  %v338_v5 = vadd.f32 %v337_v1, %v724_v49  ;;  %v286_v6 = vpop.f32.mrb[2].mxu0  ;;  %v339_v7 = vpop.f32.mrb[2].mxu1 }
  0xf8   :  { %v378_v10 = vadd.f32 %v362_v52, %v283_v62  ;;  %v380_v11 = vadd.f32 %v364_v53, %v336_v63  ;;  %v287_v12 = vadd.f32 %v286_v6, %v712_v44  ;;  %v340_v13 = vadd.f32 %v339_v7, %v714_v45  ;;  %v288_v14 = vpop.f32.mrb[3].mxu0  ;;  %v341_v15 = vpop.f32.mrb[3].mxu1 }
  0xf9   :  { %v379_v16 = vadd.f32 %v363_v54, %v285_v4  ;;  %v381_v17 = vadd.f32 %v365_v55, %v338_v5  ;;  %v289_v18 = vadd.f32 %v288_v14, %v722_v48  ;;  %v342_v19 = vadd.f32 %v341_v15, %v724_v49 }
  0xfa   :  { %v394_v22 = vmax.f32 %v378_v10, 0.0  ;;  %v396_v23 = vmax.f32 %v380_v11, 0.0  ;;  %v382_v24 = vadd.f32 %v366_v58, %v287_v12  ;;  %v384_v25 = vadd.f32 %v368_v59, %v340_v13 }
  0xfb   :  { %v395_v26 = vmax.f32 %v379_v16, 0.0  ;;  %v397_v27 = vmax.f32 %v381_v17, 0.0  ;;  %v383_v28 = vadd.f32 %v367_v60, %v289_v18  ;;  %v385_v29 = vadd.f32 %v369_v61, %v342_v19 }
  0xfc   :  { %v398_v30 = vmax.f32 %v382_v24, 0.0  ;;  %v400_v31 = vmax.f32 %v384_v25, 0.0 }
  0xfd   :  { %v512_v34 = vpack.c.bf16 %v395_v26, %v394_v22  ;;  %v513_v35 = vpack.c.bf16 %v397_v27, %v396_v23  ;;  %v399_v36 = vmax.f32 %v383_v28, 0.0  ;;  %v401_v37 = vmax.f32 %v385_v29, 0.0  ;;  %v292_v38 = vpop.f32.mrb[4].mxu0  ;;  %v345_v39 = vpop.f32.mrb[4].mxu1 }
  0xfe   :  { %v293_v40 = vadd.f32 %v292_v38, %v712_v44  ;;  %v346_v41 = vadd.f32 %v345_v39, %v714_v45  ;;  %v294_v42 = vpop.f32.mrb[5].mxu0  ;;  %v347_v43 = vpop.f32.mrb[5].mxu1 }
  0xff   :  { %458 = vst [vmem:[%s790_s4] sm:$0xff] %v512_v34  ;;  %459 = vst [vmem:[%s790_s4 + $0x8] sm:$0xff] %v513_v35  ;;  %v514_v50 = vpack.c.bf16 %v399_v36, %v398_v30  ;;  %v515_v51 = vpack.c.bf16 %v401_v37, %v400_v31  ;;  %v295_v52 = vadd.f32 %v294_v42, %v722_v48  ;;  %v296_v54 = vpop.f32.mrb[6].mxu0  ;;  %v349_v55 = vpop.f32.mrb[6].mxu1 }
 0x100   :  { %v348_v53 = vadd.f32 %v347_v43, %v724_v49  ;;  %v386_v56 = vadd.f32 %v370_v2, %v293_v40  ;;  %v388_v57 = vadd.f32 %v372_v3, %v346_v41  ;;  %v297_v58 = vadd.f32 %v296_v54, %v712_v44  ;;  %v298_v60 = vpop.f32.mrb[7].mxu0  ;;  %v351_v61 = vpop.f32.mrb[7].mxu1 }
 0x101   :  { %v350_v59 = vadd.f32 %v349_v55, %v714_v45  ;;  %460 = vst [vmem:[%s790_s4 + $0x10] sm:$0xff] %v514_v50  ;;  %461 = vst [vmem:[%s790_s4 + $0x18] sm:$0xff] %v515_v51  ;;  %v387_v62 = vadd.f32 %v371_v8, %v295_v52  ;;  %v299_v0 = vadd.f32 %v298_v60, %v722_v48 }
 0x102   :  { %v389_v63 = vadd.f32 %v373_v9, %v348_v53  ;;  %v352_v1 = vadd.f32 %v351_v61, %v724_v49  ;;  %v402_v2 = vmax.f32 %v386_v56, 0.0  ;;  %v404_v44 = vmax.f32 %v388_v57, 0.0 }
 0x103   :  { %v390_v3 = vadd.f32 %v374_v32, %v297_v58  ;;  %v392_v45 = vadd.f32 %v376_v33, %v350_v59  ;;  %v403_v4 = vmax.f32 %v387_v62, 0.0  ;;  %v391_v6 = vadd.f32 %v375_v46, %v299_v0 }
 0x104   :  { %v405_v5 = vmax.f32 %v389_v63, 0.0  ;;  %v393_v7 = vadd.f32 %v377_v47, %v352_v1 }
 0x105   :  { %v406_v10 = vmax.f32 %v390_v3, 0.0  ;;  %v408_v11 = vmax.f32 %v392_v45, 0.0  ;;  %v516_v12 = vpack.c.bf16 %v403_v4, %v402_v2  ;;  %v407_v14 = vmax.f32 %v391_v6, 0.0 }
 0x106   :  { %v517_v13 = vpack.c.bf16 %v405_v5, %v404_v44  ;;  %v409_v15 = vmax.f32 %v393_v7, 0.0 }
 0x107   :  { %462 = vst [vmem:[%s790_s4 + $0x20] sm:$0xff] %v516_v12  ;;  %v518_v48 = vpack.c.bf16 %v407_v14, %v406_v10 }
 0x108   :  { %463 = vst [vmem:[%s790_s4 + $0x28] sm:$0xff] %v517_v13  ;;  %v519_v49 = vpack.c.bf16 %v409_v15, %v408_v11 }
 0x109   :  { %464 = vst [vmem:[%s790_s4 + $0x30] sm:$0xff] %v518_v48 }
 0x10a   :  { %465 = vst [vmem:[%s790_s4 + $0x38] sm:$0xff] %v519_v49 }

// kernel: _lambda_.38
= control target key start
LH: loop header
LB: loop body
LE: loop exit
PB: predicated region body
PF: predicated region fallthrough
CT: control target
= control target key end

     0   :  { %s1047_s1 = inlined_call_operand.vmem [shape: bf16[256,512], index: 1, kind: input, shape index: {}]   ;;  %s1048_s0 = inlined_call_operand.vmem [shape: bf16[32,256], index: 0, kind: input, shape index: {}]   ;;  %s1049_s2 = inlined_call_operand.vmem [shape: f32[1,512], index: 2, kind: input, shape index: {}]   ;;  %s1050_s3 = inlined_call_operand.vmem [shape: bf16[32,512], index: 3, kind: output, shape index: {}]  }
   0x1   :  { %v694_v0 = vld [vmem:[%s1047_s1 + $0x4] ss:$16 sps:$4 sm:$0xff]   ;;  %v696_v1 = vld [vmem:[%s1047_s1 + $0xc] ss:$16 sps:$4 sm:$0xff]   ;;  %v698_v2 = vld [vmem:[%s1047_s1] ss:$16 sps:$4 sm:$0xff]  }
   0x2   :  { %444 = vmatprep.subr.bf16.mxu0 %v694_v0  ;;  %v699_v3 = vld [vmem:[%s1047_s1 + $0x8] ss:$16 sps:$4 sm:$0xff]   ;;  %497 = vmatprep.subr.bf16.mxu1 %v696_v1  ;;  %v700_v4 = vld [vmem:[%s1047_s1 + $0x24] ss:$16 sps:$4 sm:$0xff]   ;;  %v702_v5 = vld [vmem:[%s1047_s1 + $0x2c] ss:$16 sps:$4 sm:$0xff]  }
   0x3   :  { %445 = vmatpush1.bf16.msra.mxu0 %v698_v2  ;;  %498 = vmatpush1.bf16.msra.mxu1 %v699_v3  ;;  %v704_v6 = vld [vmem:[%s1047_s1 + $0x20] ss:$16 sps:$4 sm:$0xff]   ;;  %v705_v7 = vld [vmem:[%s1047_s1 + $0x28] ss:$16 sps:$4 sm:$0xff]   ;;  %v706_v8 = vld [vmem:[%s1047_s1 + $0x44] ss:$16 sps:$4 sm:$0xff]  }
   0x4   :  { %446 = vmatprep.subr.bf16.mxu0 %v700_v4  ;;  %499 = vmatprep.subr.bf16.mxu1 %v702_v5  ;;  %v708_v9 = vld [vmem:[%s1047_s1 + $0x4c] ss:$16 sps:$4 sm:$0xff]   ;;  %v710_v10 = vld [vmem:[%s1047_s1 + $0x40] ss:$16 sps:$4 sm:$0xff]   ;;  %v711_v11 = vld [vmem:[%s1047_s1 + $0x48] ss:$16 sps:$4 sm:$0xff]   ;;  %v84_v4 = vlaneseq }
   0x5   :  { %v712_v12 = vld [vmem:[%s1047_s1 + $0x64] ss:$16 sps:$4 sm:$0xff]   ;;  %v714_v13 = vld [vmem:[%s1047_s1 + $0x6c] ss:$16 sps:$4 sm:$0xff]   ;;  %v716_v14 = vld [vmem:[%s1047_s1 + $0x60] ss:$16 sps:$4 sm:$0xff]  }
   0x6   :  { %v717_v15 = vld [vmem:[%s1047_s1 + $0x68] ss:$16 sps:$4 sm:$0xff]   ;;  %v718_v16 = vld [vmem:[%s1047_s1 + $0x84] ss:$16 sps:$4 sm:$0xff]   ;;  %v720_v17 = vld [vmem:[%s1047_s1 + $0x8c] ss:$16 sps:$4 sm:$0xff]  }
   0x7   :  { %447 = vmatpush1.bf16.msra.mxu0 %v704_v6  ;;  %500 = vmatpush1.bf16.msra.mxu1 %v705_v7  ;;  %v722_v18 = vld [vmem:[%s1047_s1 + $0x80] ss:$16 sps:$4 sm:$0xff]   ;;  %v723_v19 = vld [vmem:[%s1047_s1 + $0x88] ss:$16 sps:$4 sm:$0xff]   ;;  %v724_v20 = vld [vmem:[%s1047_s1 + $0xa4] ss:$16 sps:$4 sm:$0xff]  }
   0x8   :  { %448 = vmatprep.subr.bf16.mxu0 %v706_v8  ;;  %501 = vmatprep.subr.bf16.mxu1 %v708_v9  ;;  %v726_v21 = vld [vmem:[%s1047_s1 + $0xac] ss:$16 sps:$4 sm:$0xff]   ;;  %v728_v22 = vld [vmem:[%s1047_s1 + $0xa0] ss:$16 sps:$4 sm:$0xff]   ;;  %v729_v23 = vld [vmem:[%s1047_s1 + $0xa8] ss:$16 sps:$4 sm:$0xff]  }
   0x9   :  { %v730_v24 = vld [vmem:[%s1047_s1 + $0xc4] ss:$16 sps:$4 sm:$0xff]   ;;  %v732_v25 = vld [vmem:[%s1047_s1 + $0xcc] ss:$16 sps:$4 sm:$0xff]   ;;  %v734_v26 = vld [vmem:[%s1047_s1 + $0xc0] ss:$16 sps:$4 sm:$0xff]  }
   0xa   :  { %v735_v27 = vld [vmem:[%s1047_s1 + $0xc8] ss:$16 sps:$4 sm:$0xff]   ;;  %v736_v28 = vld [vmem:[%s1047_s1 + $0xe4] ss:$16 sps:$4 sm:$0xff]   ;;  %v738_v29 = vld [vmem:[%s1047_s1 + $0xec] ss:$16 sps:$4 sm:$0xff]  }
   0xb   :  { %449 = vmatpush1.bf16.msra.mxu0 %v710_v10  ;;  %502 = vmatpush1.bf16.msra.mxu1 %v711_v11  ;;  %v740_v30 = vld [vmem:[%s1047_s1 + $0xe0] ss:$16 sps:$4 sm:$0xff]   ;;  %v741_v31 = vld [vmem:[%s1047_s1 + $0xe8] ss:$16 sps:$4 sm:$0xff]   ;;  %v742_v32 = vld [vmem:[%s1047_s1 + $0x104] ss:$16 sps:$4 sm:$0xff]  }
   0xc   :  { %450 = vmatprep.subr.bf16.mxu0 %v712_v12  ;;  %503 = vmatprep.subr.bf16.mxu1 %v714_v13  ;;  %v744_v33 = vld [vmem:[%s1047_s1 + $0x10c] ss:$16 sps:$4 sm:$0xff]   ;;  %v746_v34 = vld [vmem:[%s1047_s1 + $0x100] ss:$16 sps:$4 sm:$0xff]   ;;  %v747_v35 = vld [vmem:[%s1047_s1 + $0x108] ss:$16 sps:$4 sm:$0xff]  }
   0xd   :  { %v748_v36 = vld [vmem:[%s1047_s1 + $0x124] ss:$16 sps:$4 sm:$0xff]   ;;  %v750_v37 = vld [vmem:[%s1047_s1 + $0x12c] ss:$16 sps:$4 sm:$0xff]   ;;  %v752_v38 = vld [vmem:[%s1047_s1 + $0x120] ss:$16 sps:$4 sm:$0xff]  }
   0xe   :  { %v753_v39 = vld [vmem:[%s1047_s1 + $0x128] ss:$16 sps:$4 sm:$0xff]   ;;  %v754_v40 = vld [vmem:[%s1047_s1 + $0x144] ss:$16 sps:$4 sm:$0xff]   ;;  %v756_v41 = vld [vmem:[%s1047_s1 + $0x14c] ss:$16 sps:$4 sm:$0xff]  }
   0xf   :  { %451 = vmatpush1.bf16.msra.mxu0 %v716_v14  ;;  %504 = vmatpush1.bf16.msra.mxu1 %v717_v15  ;;  %v758_v42 = vld [vmem:[%s1047_s1 + $0x140] ss:$16 sps:$4 sm:$0xff]   ;;  %v759_v43 = vld [vmem:[%s1047_s1 + $0x148] ss:$16 sps:$4 sm:$0xff]   ;;  %v760_v44 = vld [vmem:[%s1047_s1 + $0x164] ss:$16 sps:$4 sm:$0xff]  }
  0x10   :  { %452 = vmatprep.subr.bf16.mxu0 %v718_v16  ;;  %505 = vmatprep.subr.bf16.mxu1 %v720_v17  ;;  %v762_v45 = vld [vmem:[%s1047_s1 + $0x16c] ss:$16 sps:$4 sm:$0xff]   ;;  %v764_v46 = vld [vmem:[%s1047_s1 + $0x160] ss:$16 sps:$4 sm:$0xff]   ;;  %v765_v48 = vld [vmem:[%s1047_s1 + $0x168] ss:$16 sps:$4 sm:$0xff]  }
  0x11   :  { %v792_v47 = vld [vmem:[%s1048_s0 + $0x4] ss:$8 sps:$4 sm:$0xff]   ;;  %v770_v51 = vld [vmem:[%s1047_s1 + $0x180] ss:$16 sps:$4 sm:$0xff]   ;;  %v771_v52 = vld [vmem:[%s1047_s1 + $0x188] ss:$16 sps:$4 sm:$0xff]  }
  0x12   :  { %v766_v49 = vld [vmem:[%s1047_s1 + $0x184] ss:$16 sps:$4 sm:$0xff]   ;;  %v768_v50 = vld [vmem:[%s1047_s1 + $0x18c] ss:$16 sps:$4 sm:$0xff]   ;;  %476 = vmatprep.mubr.bf16.mxu0 %v792_v47  ;;  %529 = vmatprep.mubr.bf16.mxu1 %v792_v47  ;;  %v776_v55 = vld [vmem:[%s1047_s1 + $0x1a0] ss:$16 sps:$4 sm:$0xff]  }
  0x13   :  { %453 = vmatpush1.bf16.msra.mxu0 %v722_v18  ;;  %506 = vmatpush1.bf16.msra.mxu1 %v723_v19  ;;  %v772_v53 = vld [vmem:[%s1047_s1 + $0x1a4] ss:$16 sps:$4 sm:$0xff]   ;;  %v774_v54 = vld [vmem:[%s1047_s1 + $0x1ac] ss:$16 sps:$4 sm:$0xff]   ;;  %v777_v56 = vld [vmem:[%s1047_s1 + $0x1a8] ss:$16 sps:$4 sm:$0xff]  }
  0x14   :  { %454 = vmatprep.subr.bf16.mxu0 %v724_v20  ;;  %507 = vmatprep.subr.bf16.mxu1 %v726_v21  ;;  %v778_v57 = vld [vmem:[%s1047_s1 + $0x1c4] ss:$16 sps:$4 sm:$0xff]   ;;  %v780_v58 = vld [vmem:[%s1047_s1 + $0x1cc] ss:$16 sps:$4 sm:$0xff]   ;;  %v782_v59 = vld [vmem:[%s1047_s1 + $0x1c0] ss:$16 sps:$4 sm:$0xff]  }
  0x15   :  { %v783_v60 = vld [vmem:[%s1047_s1 + $0x1c8] ss:$16 sps:$4 sm:$0xff]   ;;  %v784_v61 = vld [vmem:[%s1047_s1 + $0x1e4] ss:$16 sps:$4 sm:$0xff]   ;;  %v786_v62 = vld [vmem:[%s1047_s1 + $0x1ec] ss:$16 sps:$4 sm:$0xff]  }
  0x16   :  { %v788_v63 = vld [vmem:[%s1047_s1 + $0x1e0] ss:$16 sps:$4 sm:$0xff]   ;;  %v789_v0 = vld [vmem:[%s1047_s1 + $0x1e8] ss:$16 sps:$4 sm:$0xff]   ;;  %v793_v2 = vld [vmem:[%s1048_s0 + $0x14] ss:$8 sps:$4 sm:$0xff]  }
  0x17   :  { %455 = vmatpush1.bf16.msra.mxu0 %v728_v22  ;;  %508 = vmatpush1.bf16.msra.mxu1 %v729_v23  ;;  %v790_v1 = vld [vmem:[%s1048_s0] ss:$8 sps:$4 sm:$0xff]   ;;  %v795_v3 = vld [vmem:[%s1048_s0 + $0x10] ss:$8 sps:$4 sm:$0xff]   ;;  %v85_v5 = vshrl.u32 %v84_v4, 7 }
  0x18   :  { %456 = vmatprep.subr.bf16.mxu0 %v730_v24  ;;  %509 = vmatprep.subr.bf16.mxu1 %v732_v25  ;;  %v82_v8 = vld [vmem:[%s1049_s2] sm:$0xf] }
  0x19   :  { %v86_v6 = vsub.s32 0, %v85_v5  ;;  %v94_v7 = vsub.s32 2, %v85_v5  ;;  %v90_v9 = vsub.s32 1, %v85_v5  ;;  %v98_v10 = vsub.s32 3, %v85_v5 }
  0x1b   :  { %457 = vmatpush1.bf16.msra.mxu0 %v734_v26  ;;  %510 = vmatpush1.bf16.msra.mxu1 %v735_v27  ;;  %v87_v11 = vrot.slane %v82_v8, %v86_v6  ;;  %v95_v12 = vrot.slane %v82_v8, %v94_v7  ;;  %v91_v13 = vrot.slane %v82_v8, %v90_v9 }
  0x1c   :  { %458 = vmatprep.subr.bf16.mxu0 %v736_v28  ;;  %511 = vmatprep.subr.bf16.mxu1 %v738_v29  ;;  %v99_v14 = vrot.slane %v82_v8, %v98_v10 }
  0x1f   :  { %459 = vmatpush1.bf16.msra.mxu0 %v740_v30  ;;  %512 = vmatpush1.bf16.msra.mxu1 %v741_v31 }
  0x20   :  { %460 = vmatprep.subr.bf16.mxu0 %v742_v32  ;;  %513 = vmatprep.subr.bf16.mxu1 %v744_v33 }
  0x23   :  { %461 = vmatpush1.bf16.msra.mxu0 %v746_v34  ;;  %514 = vmatpush1.bf16.msra.mxu1 %v747_v35 }
  0x24   :  { %462 = vmatprep.subr.bf16.mxu0 %v748_v36  ;;  %515 = vmatprep.subr.bf16.mxu1 %v750_v37 }
  0x27   :  { %463 = vmatpush1.bf16.msra.mxu0 %v752_v38  ;;  %516 = vmatpush1.bf16.msra.mxu1 %v753_v39 }
  0x28   :  { %464 = vmatprep.subr.bf16.mxu0 %v754_v40  ;;  %517 = vmatprep.subr.bf16.mxu1 %v756_v41 }
  0x2b   :  { %465 = vmatpush1.bf16.msra.mxu0 %v758_v42  ;;  %518 = vmatpush1.bf16.msra.mxu1 %v759_v43 }
  0x2c   :  { %466 = vmatprep.subr.bf16.mxu0 %v760_v44  ;;  %519 = vmatprep.subr.bf16.mxu1 %v762_v45 }
  0x2f   :  { %467 = vmatpush1.bf16.msra.mxu0 %v764_v46  ;;  %520 = vmatpush1.bf16.msra.mxu1 %v765_v48 }
  0x30   :  { %468 = vmatprep.subr.bf16.mxu0 %v766_v49  ;;  %521 = vmatprep.subr.bf16.mxu1 %v768_v50 }
  0x33   :  { %469 = vmatpush1.bf16.msra.mxu0 %v770_v51  ;;  %522 = vmatpush1.bf16.msra.mxu1 %v771_v52 }
  0x34   :  { %470 = vmatprep.subr.bf16.mxu0 %v772_v53  ;;  %523 = vmatprep.subr.bf16.mxu1 %v774_v54 }
  0x37   :  { %471 = vmatpush1.bf16.msra.mxu0 %v776_v55  ;;  %524 = vmatpush1.bf16.msra.mxu1 %v777_v56 }
  0x38   :  { %472 = vmatprep.subr.bf16.mxu0 %v778_v57  ;;  %525 = vmatprep.subr.bf16.mxu1 %v780_v58 }
  0x3b   :  { %473 = vmatpush1.bf16.msra.mxu0 %v782_v59  ;;  %526 = vmatpush1.bf16.msra.mxu1 %v783_v60 }
  0x3c   :  { %474 = vmatprep.subr.bf16.mxu0 %v784_v61  ;;  %527 = vmatprep.subr.bf16.mxu1 %v786_v62 }
  0x3f   :  { %475 = vmatpush1.bf16.msra.mxu0 %v788_v63  ;;  %528 = vmatpush1.bf16.msra.mxu1 %v789_v0 }
  0x42   :  { %477 = vmatmul.mubr.bf16.vlgmr.msra.gmra.mrb[0].mxu0 %v790_v1  ;;  %530 = vmatmul.mubr.bf16.vlgmr.msra.gmra.mrb[0].mxu1 %v790_v1 }
  0x43   :  { %486 = vmatprep.mubr.bf16.mxu0 %v793_v2  ;;  %539 = vmatprep.mubr.bf16.mxu1 %v793_v2 }
  0x4a   :  { %487 = vmatmul.mubr.bf16.gmra.mrb[4].mxu0 %v795_v3  ;;  %540 = vmatmul.mubr.bf16.gmra.mrb[4].mxu1 %v795_v3 }
 0x115   :  { %v478_v15 = vpop.f32.mrb[0].mxu0  ;;  %v531_v16 = vpop.f32.mrb[0].mxu1 }
 0x116   :  { %v479_v17 = vadd.f32 %v478_v15, %v87_v11  ;;  %v532_v18 = vadd.f32 %v531_v16, %v95_v12  ;;  %v480_v19 = vpop.f32.mrb[1].mxu0  ;;  %v533_v20 = vpop.f32.mrb[1].mxu1 }
 0x117   :  { %v481_v21 = vadd.f32 %v480_v19, %v91_v13  ;;  %v534_v22 = vadd.f32 %v533_v20, %v99_v14  ;;  %v482_v23 = vpop.f32.mrb[2].mxu0  ;;  %v535_v24 = vpop.f32.mrb[2].mxu1 }
 0x118   :  { %v483_v25 = vadd.f32 %v482_v23, %v87_v11  ;;  %v536_v26 = vadd.f32 %v535_v24, %v95_v12  ;;  %v484_v27 = vpop.f32.mrb[3].mxu0  ;;  %v537_v28 = vpop.f32.mrb[3].mxu1 }
 0x119   :  { %v686_v29 = vpack.c.bf16 %v481_v21, %v479_v17  ;;  %v687_v30 = vpack.c.bf16 %v534_v22, %v532_v18  ;;  %v485_v31 = vadd.f32 %v484_v27, %v91_v13  ;;  %v538_v32 = vadd.f32 %v537_v28, %v99_v14 }
 0x11b   :  { %598 = vst [vmem:[%s1050_s3] sm:$0xff] %v686_v29  ;;  %599 = vst [vmem:[%s1050_s3 + $0x8] sm:$0xff] %v687_v30  ;;  %v688_v33 = vpack.c.bf16 %v485_v31, %v483_v25  ;;  %v689_v34 = vpack.c.bf16 %v538_v32, %v536_v26 }
 0x11d   :  { %600 = vst [vmem:[%s1050_s3 + $0x10] sm:$0xff] %v688_v33  ;;  %601 = vst [vmem:[%s1050_s3 + $0x18] sm:$0xff] %v689_v34  ;;  %v488_v35 = vpop.f32.mrb[4].mxu0  ;;  %v541_v36 = vpop.f32.mrb[4].mxu1 }
 0x11e   :  { %v489_v37 = vadd.f32 %v488_v35, %v87_v11  ;;  %v542_v38 = vadd.f32 %v541_v36, %v95_v12  ;;  %v490_v39 = vpop.f32.mrb[5].mxu0  ;;  %v543_v40 = vpop.f32.mrb[5].mxu1 }
 0x11f   :  { %v491_v41 = vadd.f32 %v490_v39, %v91_v13  ;;  %v544_v42 = vadd.f32 %v543_v40, %v99_v14  ;;  %v492_v43 = vpop.f32.mrb[6].mxu0  ;;  %v545_v44 = vpop.f32.mrb[6].mxu1 }
 0x120   :  { %v493_v45 = vadd.f32 %v492_v43, %v87_v11  ;;  %v546_v46 = vadd.f32 %v545_v44, %v95_v12  ;;  %v494_v47 = vpop.f32.mrb[7].mxu0  ;;  %v547_v48 = vpop.f32.mrb[7].mxu1 }
 0x121   :  { %v690_v49 = vpack.c.bf16 %v491_v41, %v489_v37  ;;  %v691_v50 = vpack.c.bf16 %v544_v42, %v542_v38  ;;  %v495_v51 = vadd.f32 %v494_v47, %v91_v13  ;;  %v548_v52 = vadd.f32 %v547_v48, %v99_v14 }
 0x123   :  { %602 = vst [vmem:[%s1050_s3 + $0x20] sm:$0xff] %v690_v49  ;;  %603 = vst [vmem:[%s1050_s3 + $0x28] sm:$0xff] %v691_v50  ;;  %v692_v53 = vpack.c.bf16 %v495_v51, %v493_v45  ;;  %v693_v54 = vpack.c.bf16 %v548_v52, %v546_v46 }
 0x125   :  { %604 = vst [vmem:[%s1050_s3 + $0x30] sm:$0xff] %v692_v53  ;;  %605 = vst [vmem:[%s1050_s3 + $0x38] sm:$0xff] %v693_v54 }

// kernel: _lambda_.37
= control target key start
LH: loop header
LB: loop body
LE: loop exit
PB: predicated region body
PF: predicated region fallthrough
CT: control target
= control target key end

     0   :  { %s1632_s1 = inlined_call_operand.vmem [shape: bf16[1152,128], index: 1, kind: input, shape index: {}]   ;;  %s1633_s0 = inlined_call_operand.vmem [shape: bf16[32,1152], index: 0, kind: input, shape index: {}]   ;;  %s1634_s2 = inlined_call_operand.vmem [shape: f32[1,128], index: 2, kind: input, shape index: {}]   ;;  %s1635_s3 = inlined_call_operand.vmem [shape: bf16[32,128], index: 3, kind: output, shape index: {}]  }
   0x1   :  { %v1235_v0 = vld [vmem:[%s1632_s1 + $0x40] sm:$0xff]   ;;  %v1239_v4 = vld [vmem:[%s1632_s1 + $0x48] sm:$0xff]   ;;  %v1243_v8 = vld [vmem:[%s1632_s1 + $0x50] sm:$0xff]  }
   0x2   :  { %v1236_v1 = vld [vmem:[%s1632_s1] sm:$0xff]   ;;  %1093 = vmatprep.subr.bf16.mxu0 %v1235_v0  ;;  %v1240_v5 = vld [vmem:[%s1632_s1 + $0x8] sm:$0xff]   ;;  %v1244_v9 = vld [vmem:[%s1632_s1 + $0x10] sm:$0xff]  }
   0x3   :  { %v1237_v2 = vld [vmem:[%s1632_s1 + $0xc0] sm:$0xff]   ;;  %1094 = vmatpush3.bf16.msra.mxu0 %v1236_v1  ;;  %v1241_v6 = vld [vmem:[%s1632_s1 + $0xc8] sm:$0xff]   ;;  %v1245_v10 = vld [vmem:[%s1632_s1 + $0xd0] sm:$0xff]  }
   0x4   :  { %v1238_v3 = vld [vmem:[%s1632_s1 + $0x80] sm:$0xff]   ;;  %1121 = vmatprep.subr.bf16.mxu1 %v1237_v2  ;;  %1095 = vmatprep.subr.bf16.mxu0 %v1239_v4  ;;  %v1242_v7 = vld [vmem:[%s1632_s1 + $0x88] sm:$0xff]   ;;  %v1246_v11 = vld [vmem:[%s1632_s1 + $0x90] sm:$0xff]  }
   0x5   :  { %1122 = vmatpush3.bf16.msra.mxu1 %v1238_v3  ;;  %v1247_v12 = vld [vmem:[%s1632_s1 + $0x58] sm:$0xff]   ;;  %v1251_v16 = vld [vmem:[%s1632_s1 + $0x60] sm:$0xff]   ;;  %v1255_v20 = vld [vmem:[%s1632_s1 + $0x68] sm:$0xff]  }
   0x6   :  { %1123 = vmatprep.subr.bf16.mxu1 %v1241_v6  ;;  %v1248_v13 = vld [vmem:[%s1632_s1 + $0x18] sm:$0xff]   ;;  %v1252_v17 = vld [vmem:[%s1632_s1 + $0x20] sm:$0xff]   ;;  %v1256_v21 = vld [vmem:[%s1632_s1 + $0x28] sm:$0xff]  }
   0x7   :  { %1096 = vmatpush3.bf16.msra.mxu0 %v1240_v5  ;;  %v1249_v14 = vld [vmem:[%s1632_s1 + $0xd8] sm:$0xff]   ;;  %v1253_v18 = vld [vmem:[%s1632_s1 + $0xe0] sm:$0xff]   ;;  %v1257_v22 = vld [vmem:[%s1632_s1 + $0xe8] sm:$0xff]  }
   0x8   :  { %1097 = vmatprep.subr.bf16.mxu0 %v1243_v8  ;;  %v1250_v15 = vld [vmem:[%s1632_s1 + $0x98] sm:$0xff]   ;;  %v1254_v19 = vld [vmem:[%s1632_s1 + $0xa0] sm:$0xff]   ;;  %v1258_v23 = vld [vmem:[%s1632_s1 + $0xa8] sm:$0xff]  }
   0x9   :  { %1124 = vmatpush3.bf16.msra.mxu1 %v1242_v7  ;;  %v1259_v24 = vld [vmem:[%s1632_s1 + $0x70] sm:$0xff]   ;;  %v1263_v28 = vld [vmem:[%s1632_s1 + $0x78] sm:$0xff]   ;;  %v1266_v31 = vld [vmem:[%s1633_s0] ss:$36 sps:$4 sm:$0xff]  }
   0xa   :  { %1125 = vmatprep.subr.bf16.mxu1 %v1245_v10  ;;  %v1260_v25 = vld [vmem:[%s1632_s1 + $0x30] sm:$0xff]   ;;  %v1264_v29 = vld [vmem:[%s1632_s1 + $0x38] sm:$0xff]   ;;  %v1268_v32 = vld [vmem:[%s1633_s0 + $0x4] ss:$36 sps:$4 sm:$0xff]  }
   0xb   :  { %1098 = vmatpush3.bf16.msra.mxu0 %v1244_v9  ;;  %v1261_v26 = vld [vmem:[%s1632_s1 + $0xf0] sm:$0xff]   ;;  %v1265_v30 = vld [vmem:[%s1632_s1 + $0xf8] sm:$0xff]   ;;  %742 = vmatprep.mubr.bf16.mxu0 %v1268_v32  ;;  %v1270_v34 = vld [vmem:[%s1632_s1 + $0x140] sm:$0xff]  }
   0xc   :  { %1099 = vmatprep.subr.bf16.mxu0 %v1247_v12  ;;  %v1262_v27 = vld [vmem:[%s1632_s1 + $0xb0] sm:$0xff]   ;;  %v1269_v33 = vld [vmem:[%s1632_s1 + $0xb8] sm:$0xff]   ;;  %v1271_v35 = vld [vmem:[%s1633_s0 + $0x8] ss:$36 sps:$4 sm:$0xff]  }
   0xd   :  { %1126 = vmatpush3.bf16.msra.mxu1 %v1246_v11  ;;  %v1273_v36 = vld [vmem:[%s1633_s0 + $0xc] ss:$36 sps:$4 sm:$0xff]   ;;  %v1274_v37 = vld [vmem:[%s1632_s1 + $0x100] sm:$0xff]   ;;  %v1285_v48 = vld [vmem:[%s1632_s1 + $0x158] sm:$0xff]  }
   0xe   :  { %1127 = vmatprep.subr.bf16.mxu1 %v1249_v14  ;;  %791 = vmatprep.mubr.bf16.mxu1 %v1273_v36  ;;  %v1275_v38 = vld [vmem:[%s1632_s1 + $0x1c0] sm:$0xff]   ;;  %v1277_v40 = vld [vmem:[%s1632_s1 + $0x148] sm:$0xff]   ;;  %v1281_v44 = vld [vmem:[%s1632_s1 + $0x150] sm:$0xff]  }
   0xf   :  { %1100 = vmatpush3.bf16.msra.mxu0 %v1248_v13  ;;  %v1276_v39 = vld [vmem:[%s1632_s1 + $0x180] sm:$0xff]   ;;  %v1278_v41 = vld [vmem:[%s1632_s1 + $0x108] sm:$0xff]   ;;  %v1282_v45 = vld [vmem:[%s1632_s1 + $0x110] sm:$0xff]  }
  0x10   :  { %1101 = vmatprep.subr.bf16.mxu0 %v1251_v16  ;;  %v1279_v42 = vld [vmem:[%s1632_s1 + $0x1c8] sm:$0xff]   ;;  %v1283_v46 = vld [vmem:[%s1632_s1 + $0x1d0] sm:$0xff]   ;;  %v1286_v49 = vld [vmem:[%s1632_s1 + $0x118] sm:$0xff]  }
  0x11   :  { %1128 = vmatpush3.bf16.msra.mxu1 %v1250_v15  ;;  %v1280_v43 = vld [vmem:[%s1632_s1 + $0x188] sm:$0xff]   ;;  %v1284_v47 = vld [vmem:[%s1632_s1 + $0x190] sm:$0xff]   ;;  %v1287_v50 = vld [vmem:[%s1632_s1 + $0x1d8] sm:$0xff]  }
  0x12   :  { %1129 = vmatprep.subr.bf16.mxu1 %v1253_v18  ;;  %v1288_v51 = vld [vmem:[%s1632_s1 + $0x198] sm:$0xff]   ;;  %v1289_v52 = vld [vmem:[%s1632_s1 + $0x160] sm:$0xff]   ;;  %v1293_v56 = vld [vmem:[%s1632_s1 + $0x168] sm:$0xff]  }
  0x13   :  { %1102 = vmatpush3.bf16.msra.mxu0 %v1252_v17  ;;  %v1290_v53 = vld [vmem:[%s1632_s1 + $0x120] sm:$0xff]   ;;  %v1294_v57 = vld [vmem:[%s1633_s0 + $0x4c] ss:$36 sps:$4 sm:$0xff]   ;;  %v1299_v61 = vld [vmem:[%s1633_s0 + $0x54] ss:$36 sps:$4 sm:$0xff]  }
  0x14   :  { %1103 = vmatprep.subr.bf16.mxu0 %v1255_v20  ;;  %v1291_v54 = vld [vmem:[%s1632_s1 + $0x1e0] sm:$0xff]   ;;  %v1296_v58 = vld [vmem:[%s1632_s1 + $0x128] sm:$0xff]   ;;  %v1302_v63 = vld [vmem:[%s1633_s0 + $0x50] ss:$36 sps:$4 sm:$0xff]  }
  0x15   :  { %1130 = vmatpush3.bf16.msra.mxu1 %v1254_v19  ;;  %v1292_v55 = vld [vmem:[%s1632_s1 + $0x1a0] sm:$0xff]   ;;  %v1297_v59 = vld [vmem:[%s1633_s0 + $0x48] ss:$36 sps:$4 sm:$0xff]   ;;  %v1303_v0 = vld [vmem:[%s1632_s1 + $0x170] sm:$0xff]  }
  0x16   :  { %1131 = vmatprep.subr.bf16.mxu1 %v1257_v22  ;;  %v1298_v60 = vld [vmem:[%s1632_s1 + $0x1e8] sm:$0xff]   ;;  %v1304_v1 = vld [vmem:[%s1632_s1 + $0x130] sm:$0xff]   ;;  %v1307_v4 = vld [vmem:[%s1632_s1 + $0x178] sm:$0xff]  }
  0x17   :  { %1104 = vmatpush3.bf16.msra.mxu0 %v1256_v21  ;;  %v1301_v62 = vld [vmem:[%s1632_s1 + $0x1a8] sm:$0xff]   ;;  %v1305_v2 = vld [vmem:[%s1632_s1 + $0x1f0] sm:$0xff]   ;;  %v1308_v5 = vld [vmem:[%s1632_s1 + $0x138] sm:$0xff]  }
  0x18   :  { %1105 = vmatprep.subr.bf16.mxu0 %v1259_v24  ;;  %v1306_v3 = vld [vmem:[%s1632_s1 + $0x1b0] sm:$0xff]   ;;  %v1309_v6 = vld [vmem:[%s1632_s1 + $0x1f8] sm:$0xff]   ;;  %v1314_v10 = vld [vmem:[%s1632_s1 + $0x200] sm:$0xff]  }
  0x19   :  { %1132 = vmatpush3.bf16.msra.mxu1 %v1258_v23  ;;  %v1310_v7 = vld [vmem:[%s1633_s0 + $0x10] ss:$36 sps:$4 sm:$0xff]   ;;  %v1313_v9 = vld [vmem:[%s1632_s1 + $0x1b8] sm:$0xff]   ;;  %v1318_v13 = vld [vmem:[%s1632_s1 + $0x208] sm:$0xff]  }
  0x1a   :  { %1133 = vmatprep.subr.bf16.mxu1 %v1261_v26  ;;  %v1312_v8 = vld [vmem:[%s1633_s0 + $0x14] ss:$36 sps:$4 sm:$0xff]   ;;  %v1317_v12 = vld [vmem:[%s1633_s0 + $0x1c] ss:$36 sps:$4 sm:$0xff]   ;;  %v1323_v17 = vld [vmem:[%s1633_s0 + $0x64] ss:$36 sps:$4 sm:$0xff]  }
  0x1b   :  { %1106 = vmatpush3.bf16.msra.mxu0 %v1260_v25  ;;  %v1315_v11 = vld [vmem:[%s1633_s0 + $0x18] ss:$36 sps:$4 sm:$0xff]   ;;  %v1322_v16 = vld [vmem:[%s1632_s1 + $0x210] sm:$0xff]   ;;  %v1325_v18 = vld [vmem:[%s1633_s0 + $0x60] ss:$36 sps:$4 sm:$0xff]  }
  0x1c   :  { %1107 = vmatprep.subr.bf16.mxu0 %v1263_v28  ;;  %v1319_v14 = vld [vmem:[%s1633_s0 + $0x5c] ss:$36 sps:$4 sm:$0xff]   ;;  %v1328_v22 = vld [vmem:[%s1632_s1 + $0x228] sm:$0xff]   ;;  %v1329_v23 = vld [vmem:[%s1632_s1 + $0x230] sm:$0xff]  }
  0x1d   :  { %1134 = vmatpush3.bf16.msra.mxu1 %v1262_v27  ;;  %v1321_v15 = vld [vmem:[%s1633_s0 + $0x58] ss:$36 sps:$4 sm:$0xff]   ;;  %v1327_v20 = vld [vmem:[%s1632_s1 + $0x220] sm:$0xff]   ;;  %v1332_v25 = vld [vmem:[%s1633_s0 + $0x68] ss:$36 sps:$4 sm:$0xff]  }
  0x1e   :  { %1135 = vmatprep.subr.bf16.mxu1 %v1265_v30  ;;  %v1326_v19 = vld [vmem:[%s1632_s1 + $0x218] sm:$0xff]   ;;  %v1331_v21 = vld [vmem:[%s1633_s0 + $0x20] ss:$36 sps:$4 sm:$0xff]  }
  0x1f   :  { %1108 = vmatpush3.bf16.msra.mxu0 %v1264_v29  ;;  %v1330_v24 = vld [vmem:[%s1632_s1 + $0x238] sm:$0xff]   ;;  %v983_v27 = vld [vmem:[%s1634_s2] ss:$0 sm:$0xff] }
  0x20   :  { %1149 = vmatprep.subr.bf16.mxu0 %v1270_v34 }
  0x21   :  { %1136 = vmatpush3.bf16.msra.mxu1 %v1269_v33 }
  0x22   :  { %743 = vmatmul.mubr.bf16.vlgmr.msra.gmra.mrb[0].mxu0 %v1266_v31  ;;  %1177 = vmatprep.subr.bf16.mxu1 %v1275_v38 }
  0x23   :  { %1150 = vmatpush3.bf16.msra.mxu0 %v1274_v37  ;;  %750 = vmatprep.mubr.bf16.mxu0 %v1294_v57 }
  0x24   :  { %792 = vmatmul.mubr.bf16.vlgmr.msra.gmra.mrb[0].mxu1 %v1271_v35  ;;  %1151 = vmatprep.subr.bf16.mxu0 %v1277_v40 }
  0x25   :  { %1178 = vmatpush3.bf16.msra.mxu1 %v1276_v39  ;;  %799 = vmatprep.mubr.bf16.mxu1 %v1299_v61 }
  0x26   :  { %1179 = vmatprep.subr.bf16.mxu1 %v1279_v42 }
  0x27   :  { %1152 = vmatpush3.bf16.msra.mxu0 %v1278_v41 }
  0x28   :  { %1153 = vmatprep.subr.bf16.mxu0 %v1281_v44 }
  0x29   :  { %1180 = vmatpush3.bf16.msra.mxu1 %v1280_v43 }
  0x2a   :  { %1181 = vmatprep.subr.bf16.mxu1 %v1283_v46  ;;  %751 = vmatmul.mubr.bf16.gmra.mrb[4].mxu0 %v1297_v59 }
  0x2b   :  { %1154 = vmatpush3.bf16.msra.mxu0 %v1282_v45  ;;  %840 = vmatprep.mubr.bf16.mxu0 %v1312_v8 }
  0x2c   :  { %1155 = vmatprep.subr.bf16.mxu0 %v1285_v48  ;;  %800 = vmatmul.mubr.bf16.gmra.mrb[4].mxu1 %v1302_v63 }
  0x2d   :  { %1182 = vmatpush3.bf16.msra.mxu1 %v1284_v47  ;;  %889 = vmatprep.mubr.bf16.mxu1 %v1317_v12 }
  0x2e   :  { %1183 = vmatprep.subr.bf16.mxu1 %v1287_v50 }
  0x2f   :  { %1156 = vmatpush3.bf16.msra.mxu0 %v1286_v49 }
  0x30   :  { %1157 = vmatprep.subr.bf16.mxu0 %v1289_v52 }
  0x31   :  { %1184 = vmatpush3.bf16.msra.mxu1 %v1288_v51 }
  0x32   :  { %1185 = vmatprep.subr.bf16.mxu1 %v1291_v54 }
  0x33   :  { %1158 = vmatpush3.bf16.msra.mxu0 %v1290_v53 }
  0x34   :  { %1159 = vmatprep.subr.bf16.mxu0 %v1293_v56 }
  0x35   :  { %1186 = vmatpush3.bf16.msra.mxu1 %v1292_v55 }
  0x36   :  { %1187 = vmatprep.subr.bf16.mxu1 %v1298_v60 }
  0x37   :  { %1160 = vmatpush3.bf16.msra.mxu0 %v1296_v58 }
  0x38   :  { %1161 = vmatprep.subr.bf16.mxu0 %v1303_v0 }
  0x39   :  { %1188 = vmatpush3.bf16.msra.mxu1 %v1301_v62 }
  0x3a   :  { %1189 = vmatprep.subr.bf16.mxu1 %v1305_v2 }
  0x3b   :  { %1162 = vmatpush3.bf16.msra.mxu0 %v1304_v1 }
  0x3c   :  { %1163 = vmatprep.subr.bf16.mxu0 %v1307_v4 }
  0x3d   :  { %1190 = vmatpush3.bf16.msra.mxu1 %v1306_v3 }
  0x3e   :  { %1191 = vmatprep.subr.bf16.mxu1 %v1309_v6 }
  0x3f   :  { %1164 = vmatpush3.bf16.msra.mxu0 %v1308_v5 }
  0x40   :  { %1215 = vmatprep.subr.bf16.mxu0 %v1314_v10 }
  0x41   :  { %1192 = vmatpush3.bf16.msra.mxu1 %v1313_v9 }
  0x42   :  { %841 = vmatmul.mubr.bf16.vlgmr.msra.gmra.mrb[8].mxu0 %v1310_v7 }
  0x43   :  { %1216 = vmatpush3.bf16.msra.mxu0 %v1314_v10  ;;  %848 = vmatprep.mubr.bf16.mxu0 %v1319_v14 }
  0x44   :  { %890 = vmatmul.mubr.bf16.vlgmr.msra.gmra.mrb[8].mxu1 %v1315_v11  ;;  %1217 = vmatprep.subr.bf16.mxu0 %v1318_v13 }
  0x45   :  { %897 = vmatprep.mubr.bf16.mxu1 %v1323_v17 }
  0x47   :  { %1218 = vmatpush3.bf16.msra.mxu0 %v1318_v13 }
  0x48   :  { %1219 = vmatprep.subr.bf16.mxu0 %v1322_v16 }
  0x4a   :  { %849 = vmatmul.mubr.bf16.gmra.mrb[12].mxu0 %v1321_v15 }
  0x4b   :  { %1220 = vmatpush3.bf16.msra.mxu0 %v1322_v16  ;;  %1231 = vmatprep.mubr.bf16.mxu0 %v1331_v21 }
  0x4c   :  { %898 = vmatmul.mubr.bf16.gmra.mrb[12].mxu1 %v1325_v18  ;;  %1221 = vmatprep.subr.bf16.mxu0 %v1326_v19 }
  0x4f   :  { %1222 = vmatpush3.bf16.msra.mxu0 %v1326_v19 }
  0x50   :  { %1223 = vmatprep.subr.bf16.mxu0 %v1327_v20 }
  0x53   :  { %1224 = vmatpush3.bf16.msra.mxu0 %v1327_v20 }
  0x54   :  { %1225 = vmatprep.subr.bf16.mxu0 %v1328_v22 }
  0x57   :  { %1226 = vmatpush3.bf16.msra.mxu0 %v1328_v22 }
  0x58   :  { %1227 = vmatprep.subr.bf16.mxu0 %v1329_v23 }
  0x5b   :  { %1228 = vmatpush3.bf16.msra.mxu0 %v1329_v23 }
  0x5c   :  { %1229 = vmatprep.subr.bf16.mxu0 %v1330_v24 }
  0x5f   :  { %1230 = vmatpush3.bf16.msra.mxu0 %v1330_v24 }
  0x62   :  { %1232 = vmatmul.mubr.bf16.vlgmr.msra.gmra.mrb[16].mxu0 %v1332_v25 }
  0xf5   :  { %v1109_v26 = vpop.f32.mrb[0].mxu0 }
  0xf6   :  { %v1110_v28 = vpop.f32.mrb[1].mxu0 }
  0xf7   :  { %v1111_v29 = vadd.f32 %v1110_v28, %v1109_v26  ;;  %v1112_v30 = vpop.f32.mrb[2].mxu0  ;;  %v1137_v31 = vpop.f32.mrb[0].mxu1 }
  0xf8   :  { %v1113_v32 = vpop.f32.mrb[3].mxu0  ;;  %v1138_v35 = vpop.f32.mrb[1].mxu1 }
  0xf9   :  { %v745_v33 = vadd.f32 %v1111_v29, %v983_v27  ;;  %v1114_v34 = vadd.f32 %v1113_v32, %v1112_v30  ;;  %v1139_v36 = vadd.f32 %v1138_v35, %v1137_v31  ;;  %v1140_v37 = vpop.f32.mrb[2].mxu1 }
  0xfa   :  { %v1141_v39 = vpop.f32.mrb[3].mxu1 }
  0xfb   :  { %v748_v38 = vadd.f32 %v1114_v34, %v983_v27  ;;  %v794_v40 = vadd.f32 %v1139_v36, %v745_v33  ;;  %v1142_v41 = vadd.f32 %v1141_v39, %v1140_v37 }
  0xfd   :  { %v797_v42 = vadd.f32 %v1142_v41, %v748_v38  ;;  %v1115_v43 = vpop.f32.mrb[4].mxu0 }
  0xfe   :  { %v1116_v44 = vpop.f32.mrb[5].mxu0 }
  0xff   :  { %v1117_v45 = vadd.f32 %v1116_v44, %v1115_v43  ;;  %v1118_v46 = vpop.f32.mrb[6].mxu0  ;;  %v1143_v47 = vpop.f32.mrb[4].mxu1 }
 0x100   :  { %v1119_v48 = vpop.f32.mrb[7].mxu0  ;;  %v1144_v51 = vpop.f32.mrb[5].mxu1 }
 0x101   :  { %v753_v49 = vadd.f32 %v1117_v45, %v983_v27  ;;  %v1120_v50 = vadd.f32 %v1119_v48, %v1118_v46  ;;  %v1145_v52 = vadd.f32 %v1144_v51, %v1143_v47  ;;  %v1146_v53 = vpop.f32.mrb[6].mxu1 }
 0x102   :  { %v1147_v55 = vpop.f32.mrb[7].mxu1 }
 0x103   :  { %v756_v54 = vadd.f32 %v1120_v50, %v983_v27  ;;  %v802_v56 = vadd.f32 %v1145_v52, %v753_v49  ;;  %v1148_v57 = vadd.f32 %v1147_v55, %v1146_v53 }
 0x105   :  { %v805_v58 = vadd.f32 %v1148_v57, %v756_v54 }
 0x115   :  { %v1165_v59 = vpop.f32.mrb[8].mxu0 }
 0x116   :  { %v1166_v60 = vpop.f32.mrb[9].mxu0 }
 0x117   :  { %v1167_v61 = vadd.f32 %v1166_v60, %v1165_v59  ;;  %v1168_v62 = vpop.f32.mrb[10].mxu0  ;;  %v1193_v63 = vpop.f32.mrb[8].mxu1 }
 0x118   :  { %v1169_v0 = vpop.f32.mrb[11].mxu0  ;;  %v1194_v3 = vpop.f32.mrb[9].mxu1 }
 0x119   :  { %v843_v1 = vadd.f32 %v1167_v61, %v794_v40  ;;  %v1170_v2 = vadd.f32 %v1169_v0, %v1168_v62  ;;  %v1195_v4 = vadd.f32 %v1194_v3, %v1193_v63  ;;  %v1196_v5 = vpop.f32.mrb[10].mxu1 }
 0x11a   :  { %v1197_v7 = vpop.f32.mrb[11].mxu1 }
 0x11b   :  { %v846_v6 = vadd.f32 %v1170_v2, %v797_v42  ;;  %v1198_v8 = vadd.f32 %v1197_v7, %v1196_v5  ;;  %v892_v9 = vadd.f32 %v1195_v4, %v843_v1 }
 0x11d   :  { %v1171_v10 = vpop.f32.mrb[12].mxu0  ;;  %v895_v12 = vadd.f32 %v1198_v8, %v846_v6 }
 0x11e   :  { %v1172_v11 = vpop.f32.mrb[13].mxu0 }
 0x11f   :  { %v1173_v13 = vadd.f32 %v1172_v11, %v1171_v10  ;;  %v1174_v14 = vpop.f32.mrb[14].mxu0  ;;  %v1199_v15 = vpop.f32.mrb[12].mxu1 }
 0x120   :  { %v1175_v16 = vpop.f32.mrb[15].mxu0  ;;  %v1200_v19 = vpop.f32.mrb[13].mxu1 }
 0x121   :  { %v851_v17 = vadd.f32 %v1173_v13, %v802_v56  ;;  %v1176_v18 = vadd.f32 %v1175_v16, %v1174_v14  ;;  %v1201_v20 = vadd.f32 %v1200_v19, %v1199_v15  ;;  %v1202_v21 = vpop.f32.mrb[14].mxu1 }
 0x122   :  { %v1203_v23 = vpop.f32.mrb[15].mxu1 }
 0x123   :  { %v854_v22 = vadd.f32 %v1176_v18, %v805_v58  ;;  %v1204_v24 = vadd.f32 %v1203_v23, %v1202_v21  ;;  %v900_v25 = vadd.f32 %v1201_v20, %v851_v17 }
 0x125   :  { %v903_v26 = vadd.f32 %v1204_v24, %v854_v22 }
 0x135   :  { %v1233_v27 = vpop.f32.mrb[16].mxu0 }
 0x136   :  { %v949_v28 = vadd.f32 %v1233_v27, %v900_v25  ;;  %v940_v29 = vpop.f32.mrb[17].mxu0 }
 0x137   :  { %v941_v30 = vadd.f32 %v940_v29, %v892_v9  ;;  %v1234_v31 = vpop.f32.mrb[18].mxu0 }
 0x138   :  { %v952_v32 = vadd.f32 %v1234_v31, %v903_v26  ;;  %v943_v33 = vpop.f32.mrb[19].mxu0  ;;  %v957_v35 = vmax.f32 %v949_v28, 0.0 }
 0x139   :  { %v944_v34 = vadd.f32 %v943_v33, %v895_v12  ;;  %v955_v37 = vmax.f32 %v941_v30, 0.0 }
 0x13a   :  { %v958_v36 = vmax.f32 %v952_v32, 0.0 }
 0x13b   :  { %v956_v38 = vmax.f32 %v944_v34, 0.0 }
 0x13c   :  { %v1090_v39 = vpack.c.bf16 %v958_v36, %v957_v35 }
 0x13d   :  { %v1085_v40 = vpack.c.bf16 %v956_v38, %v955_v37 }
 0x13e   :  { %1092 = vst [vmem:[%s1635_s3 + $0x8] sm:$0xff] %v1090_v39  }
 0x13f   :  { %1086 = vst [vmem:[%s1635_s3] sm:$0xff] %v1085_v40  }

// kernel: _lambda_.40
= control target key start
LH: loop header
LB: loop body
LE: loop exit
PB: predicated region body
PF: predicated region fallthrough
CT: control target
= control target key end

     0   :  { %s761_s1 = inlined_call_operand.vmem [shape: bf16[512,128], index: 1, kind: input, shape index: {}]   ;;  %s762_s0 = inlined_call_operand.vmem [shape: bf16[32,512], index: 0, kind: input, shape index: {}]   ;;  %s763_s2 = inlined_call_operand.vmem [shape: f32[1,128], index: 2, kind: input, shape index: {}]   ;;  %s764_s3 = inlined_call_operand.vmem [shape: bf16[32,128], index: 3, kind: output, shape index: {}]  }
   0x1   :  { %v568_v0 = vld [vmem:[%s761_s1 + $0x40] sm:$0xff]   ;;  %v572_v4 = vld [vmem:[%s761_s1 + $0x48] sm:$0xff]   ;;  %v576_v8 = vld [vmem:[%s761_s1 + $0x50] sm:$0xff]  }
   0x2   :  { %v569_v1 = vld [vmem:[%s761_s1 + $0xc0] sm:$0xff]   ;;  %512 = vmatprep.subr.bf16.mxu0 %v568_v0  ;;  %v573_v5 = vld [vmem:[%s761_s1 + $0xc8] sm:$0xff]   ;;  %v577_v9 = vld [vmem:[%s761_s1 + $0xd0] sm:$0xff]  }
   0x3   :  { %v570_v2 = vld [vmem:[%s761_s1] sm:$0xff]   ;;  %540 = vmatprep.subr.bf16.mxu1 %v569_v1  ;;  %v574_v6 = vld [vmem:[%s761_s1 + $0x8] sm:$0xff]   ;;  %v578_v10 = vld [vmem:[%s761_s1 + $0x10] sm:$0xff]  }
   0x4   :  { %v571_v3 = vld [vmem:[%s761_s1 + $0x80] sm:$0xff]   ;;  %513 = vmatpush3.bf16.msra.mxu0 %v570_v2  ;;  %v575_v7 = vld [vmem:[%s761_s1 + $0x88] sm:$0xff]   ;;  %v579_v11 = vld [vmem:[%s761_s1 + $0x90] sm:$0xff]  }
   0x5   :  { %541 = vmatpush3.bf16.msra.mxu1 %v571_v3  ;;  %514 = vmatprep.subr.bf16.mxu0 %v572_v4  ;;  %v580_v12 = vld [vmem:[%s761_s1 + $0x58] sm:$0xff]   ;;  %v584_v16 = vld [vmem:[%s761_s1 + $0x60] sm:$0xff]   ;;  %v588_v20 = vld [vmem:[%s761_s1 + $0x68] sm:$0xff]  }
   0x6   :  { %542 = vmatprep.subr.bf16.mxu1 %v573_v5  ;;  %v581_v13 = vld [vmem:[%s761_s1 + $0xd8] sm:$0xff]   ;;  %v585_v17 = vld [vmem:[%s761_s1 + $0xe0] sm:$0xff]   ;;  %v589_v21 = vld [vmem:[%s761_s1 + $0xe8] sm:$0xff]  }
   0x7   :  { %v582_v14 = vld [vmem:[%s761_s1 + $0x18] sm:$0xff]   ;;  %v586_v18 = vld [vmem:[%s761_s1 + $0x20] sm:$0xff]   ;;  %v590_v22 = vld [vmem:[%s761_s1 + $0x28] sm:$0xff]  }
   0x8   :  { %515 = vmatpush3.bf16.msra.mxu0 %v574_v6  ;;  %v583_v15 = vld [vmem:[%s761_s1 + $0x98] sm:$0xff]   ;;  %v587_v19 = vld [vmem:[%s761_s1 + $0xa0] sm:$0xff]   ;;  %v591_v23 = vld [vmem:[%s761_s1 + $0xa8] sm:$0xff]  }
   0x9   :  { %543 = vmatpush3.bf16.msra.mxu1 %v575_v7  ;;  %516 = vmatprep.subr.bf16.mxu0 %v576_v8  ;;  %v592_v24 = vld [vmem:[%s761_s1 + $0x70] sm:$0xff]   ;;  %v596_v28 = vld [vmem:[%s761_s1 + $0x78] sm:$0xff]   ;;  %v452_v42 = vld [vmem:[%s763_s2] ss:$0 sm:$0xff] }
   0xa   :  { %544 = vmatprep.subr.bf16.mxu1 %v577_v9  ;;  %v593_v25 = vld [vmem:[%s761_s1 + $0xf0] sm:$0xff]   ;;  %v597_v29 = vld [vmem:[%s761_s1 + $0xf8] sm:$0xff]  }
   0xb   :  { %v594_v26 = vld [vmem:[%s761_s1 + $0x30] sm:$0xff]   ;;  %v598_v30 = vld [vmem:[%s761_s1 + $0x38] sm:$0xff]  }
   0xc   :  { %517 = vmatpush3.bf16.msra.mxu0 %v578_v10  ;;  %v595_v27 = vld [vmem:[%s761_s1 + $0xb0] sm:$0xff]   ;;  %v599_v31 = vld [vmem:[%s761_s1 + $0xb8] sm:$0xff]  }
   0xd   :  { %545 = vmatpush3.bf16.msra.mxu1 %v579_v11  ;;  %518 = vmatprep.subr.bf16.mxu0 %v580_v12  ;;  %v600_v32 = vld [vmem:[%s762_s0] ss:$16 sps:$4 sm:$0xff]   ;;  %v602_v33 = vld [vmem:[%s762_s0 + $0x4] ss:$16 sps:$4 sm:$0xff]   ;;  %v603_v34 = vld [vmem:[%s762_s0 + $0x8] ss:$16 sps:$4 sm:$0xff]  }
   0xe   :  { %546 = vmatprep.subr.bf16.mxu1 %v581_v13  ;;  %v605_v35 = vld [vmem:[%s762_s0 + $0xc] ss:$16 sps:$4 sm:$0xff]   ;;  %358 = vmatprep.mubr.bf16.mxu0 %v602_v33  ;;  %v606_v36 = vld [vmem:[%s762_s0 + $0x24] ss:$16 sps:$4 sm:$0xff]   ;;  %v610_v38 = vld [vmem:[%s762_s0 + $0x20] ss:$16 sps:$4 sm:$0xff]  }
   0xf   :  { %407 = vmatprep.mubr.bf16.mxu1 %v605_v35  ;;  %v608_v37 = vld [vmem:[%s762_s0 + $0x2c] ss:$16 sps:$4 sm:$0xff]   ;;  %v611_v39 = vld [vmem:[%s762_s0 + $0x28] ss:$16 sps:$4 sm:$0xff]  }
  0x10   :  { %519 = vmatpush3.bf16.msra.mxu0 %v582_v14 }
  0x11   :  { %547 = vmatpush3.bf16.msra.mxu1 %v583_v15  ;;  %520 = vmatprep.subr.bf16.mxu0 %v584_v16 }
  0x12   :  { %548 = vmatprep.subr.bf16.mxu1 %v585_v17 }
  0x14   :  { %521 = vmatpush3.bf16.msra.mxu0 %v586_v18 }
  0x15   :  { %549 = vmatpush3.bf16.msra.mxu1 %v587_v19  ;;  %522 = vmatprep.subr.bf16.mxu0 %v588_v20 }
  0x16   :  { %550 = vmatprep.subr.bf16.mxu1 %v589_v21 }
  0x18   :  { %523 = vmatpush3.bf16.msra.mxu0 %v590_v22 }
  0x19   :  { %551 = vmatpush3.bf16.msra.mxu1 %v591_v23  ;;  %524 = vmatprep.subr.bf16.mxu0 %v592_v24 }
  0x1a   :  { %552 = vmatprep.subr.bf16.mxu1 %v593_v25 }
  0x1c   :  { %525 = vmatpush3.bf16.msra.mxu0 %v594_v26 }
  0x1d   :  { %553 = vmatpush3.bf16.msra.mxu1 %v595_v27  ;;  %526 = vmatprep.subr.bf16.mxu0 %v596_v28 }
  0x1e   :  { %554 = vmatprep.subr.bf16.mxu1 %v597_v29 }
  0x20   :  { %527 = vmatpush3.bf16.msra.mxu0 %v598_v30 }
  0x21   :  { %555 = vmatpush3.bf16.msra.mxu1 %v599_v31 }
  0x23   :  { %359 = vmatmul.mubr.bf16.vlgmr.msra.gmra.mrb[0].mxu0 %v600_v32 }
  0x24   :  { %408 = vmatmul.mubr.bf16.vlgmr.msra.gmra.mrb[0].mxu1 %v603_v34  ;;  %366 = vmatprep.mubr.bf16.mxu0 %v606_v36 }
  0x25   :  { %415 = vmatprep.mubr.bf16.mxu1 %v608_v37 }
  0x2b   :  { %367 = vmatmul.mubr.bf16.gmra.mrb[4].mxu0 %v610_v38 }
  0x2c   :  { %416 = vmatmul.mubr.bf16.gmra.mrb[4].mxu1 %v611_v39 }
  0xf6   :  { %v528_v40 = vpop.f32.mrb[0].mxu0 }
  0xf7   :  { %v556_v41 = vpop.f32.mrb[0].mxu1  ;;  %v529_v43 = vpop.f32.mrb[1].mxu0 }
  0xf8   :  { %v530_v44 = vadd.f32 %v529_v43, %v528_v40  ;;  %v557_v45 = vpop.f32.mrb[1].mxu1  ;;  %v531_v46 = vpop.f32.mrb[2].mxu0 }
  0xf9   :  { %v558_v47 = vadd.f32 %v557_v45, %v556_v41  ;;  %v559_v48 = vpop.f32.mrb[2].mxu1  ;;  %v532_v49 = vpop.f32.mrb[3].mxu0 }
  0xfa   :  { %v361_v50 = vadd.f32 %v530_v44, %v452_v42  ;;  %v533_v51 = vadd.f32 %v532_v49, %v531_v46  ;;  %v560_v52 = vpop.f32.mrb[3].mxu1 }
  0xfb   :  { %v561_v53 = vadd.f32 %v560_v52, %v559_v48 }
  0xfc   :  { %v410_v54 = vadd.f32 %v558_v47, %v361_v50  ;;  %v364_v55 = vadd.f32 %v533_v51, %v452_v42 }
  0xfe   :  { %v413_v56 = vadd.f32 %v561_v53, %v364_v55  ;;  %v534_v57 = vpop.f32.mrb[4].mxu0  ;;  %v424_v60 = vmax.f32 %v410_v54, 0.0 }
  0xff   :  { %v562_v58 = vpop.f32.mrb[4].mxu1  ;;  %v535_v59 = vpop.f32.mrb[5].mxu0 }
 0x100   :  { %v425_v61 = vmax.f32 %v413_v56, 0.0  ;;  %v536_v62 = vadd.f32 %v535_v59, %v534_v57  ;;  %v563_v63 = vpop.f32.mrb[5].mxu1  ;;  %v537_v0 = vpop.f32.mrb[6].mxu0 }
 0x101   :  { %v564_v1 = vadd.f32 %v563_v63, %v562_v58  ;;  %v565_v2 = vpop.f32.mrb[6].mxu1  ;;  %v538_v3 = vpop.f32.mrb[7].mxu0 }
 0x102   :  { %v504_v4 = vpack.c.bf16 %v425_v61, %v424_v60  ;;  %v369_v5 = vadd.f32 %v536_v62, %v452_v42  ;;  %v539_v6 = vadd.f32 %v538_v3, %v537_v0  ;;  %v566_v7 = vpop.f32.mrb[7].mxu1 }
 0x103   :  { %v567_v8 = vadd.f32 %v566_v7, %v565_v2 }
 0x104   :  { %505 = vst [vmem:[%s764_s3] sm:$0xff] %v504_v4   ;;  %v418_v9 = vadd.f32 %v564_v1, %v369_v5  ;;  %v372_v10 = vadd.f32 %v539_v6, %v452_v42 }
 0x106   :  { %v421_v11 = vadd.f32 %v567_v8, %v372_v10  ;;  %v426_v12 = vmax.f32 %v418_v9, 0.0 }
 0x108   :  { %v427_v13 = vmax.f32 %v421_v11, 0.0 }
 0x10a   :  { %v509_v14 = vpack.c.bf16 %v427_v13, %v426_v12 }
 0x10c   :  { %511 = vst [vmem:[%s764_s3 + $0x8] sm:$0xff] %v509_v14  }

// kernel: _lambda_.49
= control target key start
LH: loop header
LB: loop body
LE: loop exit
PB: predicated region body
PF: predicated region fallthrough
CT: control target
= control target key end

     0   :  { %s6048_s1 = inlined_call_operand.vmem [shape: bf16[4608,128], index: 1, kind: input, shape index: {}]   ;;  %s6049_s0 = inlined_call_operand.vmem [shape: bf16[32,4608], index: 0, kind: input, shape index: {}]   ;;  %s6050_s2 = inlined_call_operand.vmem [shape: f32[1,128], index: 2, kind: input, shape index: {}]   ;;  %s6051_s3 = inlined_call_operand.vmem [shape: f32[32,128], index: 3, kind: output, shape index: {}]  }
   0x1   :  { %v4513_v0 = vld [vmem:[%s6048_s1 + $0x40] sm:$0xff]   ;;  %v4517_v4 = vld [vmem:[%s6048_s1 + $0x48] sm:$0xff]   ;;  %v4521_v8 = vld [vmem:[%s6048_s1 + $0x50] sm:$0xff]  }
   0x2   :  { %v4514_v1 = vld [vmem:[%s6048_s1 + $0xc0] sm:$0xff]   ;;  %4009 = vmatprep.subr.bf16.mxu0 %v4513_v0  ;;  %v4518_v5 = vld [vmem:[%s6048_s1 + $0xc8] sm:$0xff]   ;;  %v4522_v9 = vld [vmem:[%s6048_s1 + $0xd0] sm:$0xff]  }
   0x3   :  { %v4515_v2 = vld [vmem:[%s6048_s1] sm:$0xff]   ;;  %4037 = vmatprep.subr.bf16.mxu1 %v4514_v1  ;;  %v4519_v6 = vld [vmem:[%s6048_s1 + $0x8] sm:$0xff]   ;;  %v4523_v10 = vld [vmem:[%s6048_s1 + $0x10] sm:$0xff]  }
   0x4   :  { %v4516_v3 = vld [vmem:[%s6048_s1 + $0x80] sm:$0xff]   ;;  %4010 = vmatpush3.bf16.msra.mxu0 %v4515_v2  ;;  %v4520_v7 = vld [vmem:[%s6048_s1 + $0x88] sm:$0xff]   ;;  %v4524_v11 = vld [vmem:[%s6048_s1 + $0x90] sm:$0xff]  }
   0x5   :  { %4038 = vmatpush3.bf16.msra.mxu1 %v4516_v3  ;;  %4011 = vmatprep.subr.bf16.mxu0 %v4517_v4  ;;  %v4525_v12 = vld [vmem:[%s6048_s1 + $0x58] sm:$0xff]   ;;  %v4529_v16 = vld [vmem:[%s6048_s1 + $0x60] sm:$0xff]   ;;  %v4533_v20 = vld [vmem:[%s6048_s1 + $0x68] sm:$0xff]  }
   0x6   :  { %4039 = vmatprep.subr.bf16.mxu1 %v4518_v5  ;;  %v4526_v13 = vld [vmem:[%s6048_s1 + $0xd8] sm:$0xff]   ;;  %v4530_v17 = vld [vmem:[%s6048_s1 + $0xe0] sm:$0xff]   ;;  %v4534_v21 = vld [vmem:[%s6048_s1 + $0xe8] sm:$0xff]  }
   0x7   :  { %v4527_v14 = vld [vmem:[%s6048_s1 + $0x18] sm:$0xff]   ;;  %v4531_v18 = vld [vmem:[%s6048_s1 + $0x20] sm:$0xff]   ;;  %v4535_v22 = vld [vmem:[%s6048_s1 + $0x28] sm:$0xff]  }
   0x8   :  { %4012 = vmatpush3.bf16.msra.mxu0 %v4519_v6  ;;  %v4528_v15 = vld [vmem:[%s6048_s1 + $0x98] sm:$0xff]   ;;  %v4532_v19 = vld [vmem:[%s6048_s1 + $0xa0] sm:$0xff]   ;;  %v4536_v23 = vld [vmem:[%s6048_s1 + $0xa8] sm:$0xff]  }
   0x9   :  { %4040 = vmatpush3.bf16.msra.mxu1 %v4520_v7  ;;  %4013 = vmatprep.subr.bf16.mxu0 %v4521_v8  ;;  %v4537_v24 = vld [vmem:[%s6048_s1 + $0x70] sm:$0xff]   ;;  %v4541_v28 = vld [vmem:[%s6048_s1 + $0x78] sm:$0xff]   ;;  %v4551_v36 = vld [vmem:[%s6048_s1 + $0x140] sm:$0xff]  }
   0xa   :  { %4041 = vmatprep.subr.bf16.mxu1 %v4522_v9  ;;  %v4538_v25 = vld [vmem:[%s6048_s1 + $0xf0] sm:$0xff]   ;;  %v4542_v29 = vld [vmem:[%s6048_s1 + $0xf8] sm:$0xff]   ;;  %v4552_v37 = vld [vmem:[%s6048_s1 + $0x1c0] sm:$0xff]  }
   0xb   :  { %v4539_v26 = vld [vmem:[%s6048_s1 + $0x30] sm:$0xff]   ;;  %v4543_v30 = vld [vmem:[%s6048_s1 + $0x38] sm:$0xff]   ;;  %v4553_v38 = vld [vmem:[%s6048_s1 + $0x100] sm:$0xff]  }
   0xc   :  { %4014 = vmatpush3.bf16.msra.mxu0 %v4523_v10  ;;  %v4540_v27 = vld [vmem:[%s6048_s1 + $0xb0] sm:$0xff]   ;;  %v4544_v31 = vld [vmem:[%s6048_s1 + $0xb8] sm:$0xff]   ;;  %v4554_v39 = vld [vmem:[%s6048_s1 + $0x180] sm:$0xff]  }
   0xd   :  { %4042 = vmatpush3.bf16.msra.mxu1 %v4524_v11  ;;  %4015 = vmatprep.subr.bf16.mxu0 %v4525_v12  ;;  %v4545_v32 = vld [vmem:[%s6049_s0] ss:$144 sps:$4 sm:$0xff]   ;;  %v4547_v33 = vld [vmem:[%s6049_s0 + $0x4] ss:$144 sps:$4 sm:$0xff]   ;;  %v4548_v34 = vld [vmem:[%s6049_s0 + $0x8] ss:$144 sps:$4 sm:$0xff]  }
   0xe   :  { %4043 = vmatprep.subr.bf16.mxu1 %v4526_v13  ;;  %v4550_v35 = vld [vmem:[%s6049_s0 + $0xc] ss:$144 sps:$4 sm:$0xff]   ;;  %2790 = vmatprep.mubr.bf16.mxu0 %v4547_v33  ;;  %v4559_v44 = vld [vmem:[%s6048_s1 + $0x150] sm:$0xff]   ;;  %v4567_v52 = vld [vmem:[%s6048_s1 + $0x160] sm:$0xff]  }
   0xf   :  { %2839 = vmatprep.mubr.bf16.mxu1 %v4550_v35  ;;  %v4555_v40 = vld [vmem:[%s6048_s1 + $0x148] sm:$0xff]   ;;  %v4560_v45 = vld [vmem:[%s6048_s1 + $0x1d0] sm:$0xff]   ;;  %v4563_v48 = vld [vmem:[%s6048_s1 + $0x158] sm:$0xff]  }
  0x10   :  { %4016 = vmatpush3.bf16.msra.mxu0 %v4527_v14  ;;  %v4556_v41 = vld [vmem:[%s6048_s1 + $0x1c8] sm:$0xff]   ;;  %v4561_v46 = vld [vmem:[%s6048_s1 + $0x110] sm:$0xff]   ;;  %v4564_v49 = vld [vmem:[%s6048_s1 + $0x1d8] sm:$0xff]  }
  0x11   :  { %4044 = vmatpush3.bf16.msra.mxu1 %v4528_v15  ;;  %4017 = vmatprep.subr.bf16.mxu0 %v4529_v16  ;;  %v4557_v42 = vld [vmem:[%s6048_s1 + $0x108] sm:$0xff]   ;;  %v4562_v47 = vld [vmem:[%s6048_s1 + $0x190] sm:$0xff]   ;;  %v4565_v50 = vld [vmem:[%s6048_s1 + $0x118] sm:$0xff]  }
  0x12   :  { %4045 = vmatprep.subr.bf16.mxu1 %v4530_v17  ;;  %v4558_v43 = vld [vmem:[%s6048_s1 + $0x188] sm:$0xff]   ;;  %v4566_v51 = vld [vmem:[%s6048_s1 + $0x198] sm:$0xff]   ;;  %v4568_v53 = vld [vmem:[%s6048_s1 + $0x1e0] sm:$0xff]  }
  0x13   :  { %v4569_v54 = vld [vmem:[%s6048_s1 + $0x120] sm:$0xff]   ;;  %v4571_v56 = vld [vmem:[%s6048_s1 + $0x168] sm:$0xff]   ;;  %v4581_v0 = vld [vmem:[%s6048_s1 + $0x170] sm:$0xff]  }
  0x14   :  { %4018 = vmatpush3.bf16.msra.mxu0 %v4531_v18  ;;  %v4570_v55 = vld [vmem:[%s6048_s1 + $0x1a0] sm:$0xff]   ;;  %v4572_v57 = vld [vmem:[%s6048_s1 + $0x1e8] sm:$0xff]   ;;  %v4582_v1 = vld [vmem:[%s6048_s1 + $0x1f0] sm:$0xff]  }
  0x15   :  { %4046 = vmatpush3.bf16.msra.mxu1 %v4532_v19  ;;  %4019 = vmatprep.subr.bf16.mxu0 %v4533_v20  ;;  %v4573_v58 = vld [vmem:[%s6049_s0 + $0x124] ss:$144 sps:$4 sm:$0xff]   ;;  %v4575_v59 = vld [vmem:[%s6048_s1 + $0x128] sm:$0xff]   ;;  %v4577_v61 = vld [vmem:[%s6049_s0 + $0x120] ss:$144 sps:$4 sm:$0xff]  }
  0x16   :  { %4047 = vmatprep.subr.bf16.mxu1 %v4534_v21  ;;  %v4576_v60 = vld [vmem:[%s6048_s1 + $0x1a8] sm:$0xff]   ;;  %v4583_v2 = vld [vmem:[%s6048_s1 + $0x130] sm:$0xff]   ;;  %v4585_v4 = vld [vmem:[%s6048_s1 + $0x178] sm:$0xff]  }
  0x17   :  { %v4578_v62 = vld [vmem:[%s6049_s0 + $0x12c] ss:$144 sps:$4 sm:$0xff]   ;;  %v4580_v63 = vld [vmem:[%s6049_s0 + $0x128] ss:$144 sps:$4 sm:$0xff]   ;;  %v4584_v3 = vld [vmem:[%s6048_s1 + $0x1b0] sm:$0xff]  }
  0x18   :  { %4020 = vmatpush3.bf16.msra.mxu0 %v4535_v22  ;;  %v4586_v5 = vld [vmem:[%s6048_s1 + $0x1f8] sm:$0xff]   ;;  %v4589_v8 = vld [vmem:[%s6049_s0 + $0x10] ss:$144 sps:$4 sm:$0xff]   ;;  %v4591_v9 = vld [vmem:[%s6049_s0 + $0x14] ss:$144 sps:$4 sm:$0xff]  }
  0x19   :  { %4048 = vmatpush3.bf16.msra.mxu1 %v4536_v23  ;;  %4021 = vmatprep.subr.bf16.mxu0 %v4537_v24  ;;  %v4587_v6 = vld [vmem:[%s6048_s1 + $0x138] sm:$0xff]   ;;  %v4595_v12 = vld [vmem:[%s6048_s1 + $0x240] sm:$0xff]   ;;  %v4599_v16 = vld [vmem:[%s6048_s1 + $0x248] sm:$0xff]  }
  0x1a   :  { %4049 = vmatprep.subr.bf16.mxu1 %v4538_v25  ;;  %v4588_v7 = vld [vmem:[%s6048_s1 + $0x1b8] sm:$0xff]   ;;  %v4596_v13 = vld [vmem:[%s6048_s1 + $0x2c0] sm:$0xff]   ;;  %v4600_v17 = vld [vmem:[%s6048_s1 + $0x2c8] sm:$0xff]  }
  0x1b   :  { %v4592_v10 = vld [vmem:[%s6049_s0 + $0x18] ss:$144 sps:$4 sm:$0xff]   ;;  %v4594_v11 = vld [vmem:[%s6049_s0 + $0x1c] ss:$144 sps:$4 sm:$0xff]   ;;  %v4597_v14 = vld [vmem:[%s6048_s1 + $0x200] sm:$0xff]  }
  0x1c   :  { %4022 = vmatpush3.bf16.msra.mxu0 %v4539_v26  ;;  %v4598_v15 = vld [vmem:[%s6048_s1 + $0x280] sm:$0xff]   ;;  %v4601_v18 = vld [vmem:[%s6048_s1 + $0x208] sm:$0xff]   ;;  %v4606_v22 = vld [vmem:[%s6048_s1 + $0x250] sm:$0xff]  }
  0x1d   :  { %4050 = vmatpush3.bf16.msra.mxu1 %v4540_v27  ;;  %4023 = vmatprep.subr.bf16.mxu0 %v4541_v28  ;;  %v4602_v19 = vld [vmem:[%s6048_s1 + $0x288] sm:$0xff]   ;;  %v4603_v20 = vld [vmem:[%s6049_s0 + $0x134] ss:$144 sps:$4 sm:$0xff]   ;;  %v4605_v21 = vld [vmem:[%s6049_s0 + $0x130] ss:$144 sps:$4 sm:$0xff]  }
  0x1e   :  { %4051 = vmatprep.subr.bf16.mxu1 %v4542_v29  ;;  %v4607_v23 = vld [vmem:[%s6048_s1 + $0x2d0] sm:$0xff]   ;;  %v4608_v24 = vld [vmem:[%s6049_s0 + $0x13c] ss:$144 sps:$4 sm:$0xff]   ;;  %v4612_v27 = vld [vmem:[%s6049_s0 + $0x138] ss:$144 sps:$4 sm:$0xff]  }
  0x1f   :  { %v4610_v25 = vld [vmem:[%s6048_s1 + $0x210] sm:$0xff]   ;;  %v4613_v28 = vld [vmem:[%s6048_s1 + $0x258] sm:$0xff]   ;;  %v4618_v33 = vld [vmem:[%s6048_s1 + $0x2e0] sm:$0xff]  }
  0x20   :  { %4024 = vmatpush3.bf16.msra.mxu0 %v4543_v30  ;;  %v4611_v26 = vld [vmem:[%s6048_s1 + $0x290] sm:$0xff]   ;;  %v4614_v29 = vld [vmem:[%s6048_s1 + $0x2d8] sm:$0xff]   ;;  %v4620_v35 = vld [vmem:[%s6048_s1 + $0x2a0] sm:$0xff]  }
  0x21   :  { %4052 = vmatpush3.bf16.msra.mxu1 %v4544_v31  ;;  %4065 = vmatprep.subr.bf16.mxu0 %v4551_v36  ;;  %v4615_v30 = vld [vmem:[%s6048_s1 + $0x218] sm:$0xff]   ;;  %v4621_v36 = vld [vmem:[%s6048_s1 + $0x268] sm:$0xff]  }
  0x22   :  { %4093 = vmatprep.subr.bf16.mxu1 %v4552_v37  ;;  %v4616_v31 = vld [vmem:[%s6048_s1 + $0x298] sm:$0xff]   ;;  %v4622_v37 = vld [vmem:[%s6048_s1 + $0x2e8] sm:$0xff]  }
  0x23   :  { %2791 = vmatmul.mubr.bf16.vlgmr.msra.gmra.mrb[0].mxu0 %v4545_v32  ;;  %v4617_v32 = vld [vmem:[%s6048_s1 + $0x260] sm:$0xff]  }
  0x24   :  { %2840 = vmatmul.mubr.bf16.vlgmr.msra.gmra.mrb[0].mxu1 %v4548_v34  ;;  %4066 = vmatpush3.bf16.msra.mxu0 %v4553_v38  ;;  %v4619_v34 = vld [vmem:[%s6048_s1 + $0x220] sm:$0xff]   ;;  %v4623_v38 = vld [vmem:[%s6048_s1 + $0x228] sm:$0xff]  }
  0x25   :  { %4094 = vmatpush3.bf16.msra.mxu1 %v4554_v39  ;;  %4067 = vmatprep.subr.bf16.mxu0 %v4555_v40  ;;  %v4624_v39 = vld [vmem:[%s6048_s1 + $0x2a8] sm:$0xff]   ;;  %v4625_v40 = vld [vmem:[%s6048_s1 + $0x270] sm:$0xff]  }
  0x26   :  { %4095 = vmatprep.subr.bf16.mxu1 %v4556_v41  ;;  %2798 = vmatprep.mubr.bf16.mxu0 %v4573_v58  ;;  %v4626_v41 = vld [vmem:[%s6048_s1 + $0x2f0] sm:$0xff]   ;;  %v4645_v58 = vld [vmem:[%s6048_s1 + $0x308] sm:$0xff]  }
  0x27   :  { %2847 = vmatprep.mubr.bf16.mxu1 %v4578_v62  ;;  %v4650_v62 = vld [vmem:[%s6048_s1 + $0x350] sm:$0xff]  }
  0x28   :  { %4068 = vmatpush3.bf16.msra.mxu0 %v4557_v42  ;;  %v4627_v42 = vld [vmem:[%s6048_s1 + $0x230] sm:$0xff]  }
  0x29   :  { %4096 = vmatpush3.bf16.msra.mxu1 %v4558_v43  ;;  %4069 = vmatprep.subr.bf16.mxu0 %v4559_v44  ;;  %v4628_v43 = vld [vmem:[%s6048_s1 + $0x2b0] sm:$0xff]   ;;  %v4629_v44 = vld [vmem:[%s6048_s1 + $0x278] sm:$0xff]  }
  0x2a   :  { %4097 = vmatprep.subr.bf16.mxu1 %v4560_v45  ;;  %v4630_v45 = vld [vmem:[%s6048_s1 + $0x2f8] sm:$0xff]  }
  0x2b   :  { %2799 = vmatmul.mubr.bf16.gmra.mrb[4].mxu0 %v4577_v61  ;;  %v4649_v61 = vld [vmem:[%s6049_s0 + $0x140] ss:$144 sps:$4 sm:$0xff]  }
  0x2c   :  { %4070 = vmatpush3.bf16.msra.mxu0 %v4561_v46  ;;  %2848 = vmatmul.mubr.bf16.gmra.mrb[4].mxu1 %v4580_v63  ;;  %v4631_v46 = vld [vmem:[%s6048_s1 + $0x238] sm:$0xff]   ;;  %v4651_v63 = vld [vmem:[%s6048_s1 + $0x3d0] sm:$0xff]  }
  0x2d   :  { %4098 = vmatpush3.bf16.msra.mxu1 %v4562_v47  ;;  %4071 = vmatprep.subr.bf16.mxu0 %v4563_v48  ;;  %v4632_v47 = vld [vmem:[%s6048_s1 + $0x2b8] sm:$0xff]   ;;  %v4633_v48 = vld [vmem:[%s6049_s0 + $0x20] ss:$144 sps:$4 sm:$0xff]  }
  0x2e   :  { %4099 = vmatprep.subr.bf16.mxu1 %v4564_v49  ;;  %2888 = vmatprep.mubr.bf16.mxu0 %v4591_v9  ;;  %v4635_v49 = vld [vmem:[%s6049_s0 + $0x24] ss:$144 sps:$4 sm:$0xff]  }
  0x2f   :  { %2937 = vmatprep.mubr.bf16.mxu1 %v4594_v11  ;;  %v4662_v9 = vld [vmem:[%s6048_s1 + $0x3e0] sm:$0xff]  }
  0x30   :  { %4072 = vmatpush3.bf16.msra.mxu0 %v4565_v50  ;;  %v4636_v50 = vld [vmem:[%s6049_s0 + $0x28] ss:$144 sps:$4 sm:$0xff]   ;;  %v4664_v11 = vld [vmem:[%s6048_s1 + $0x3a0] sm:$0xff]  }
  0x31   :  { %4100 = vmatpush3.bf16.msra.mxu1 %v4566_v51  ;;  %4073 = vmatprep.subr.bf16.mxu0 %v4567_v52  ;;  %v4638_v51 = vld [vmem:[%s6049_s0 + $0x2c] ss:$144 sps:$4 sm:$0xff]   ;;  %v4639_v52 = vld [vmem:[%s6048_s1 + $0x340] sm:$0xff]  }
  0x32   :  { %4101 = vmatprep.subr.bf16.mxu1 %v4568_v53  ;;  %v4640_v53 = vld [vmem:[%s6048_s1 + $0x3c0] sm:$0xff]  }
  0x34   :  { %4074 = vmatpush3.bf16.msra.mxu0 %v4569_v54  ;;  %v4641_v54 = vld [vmem:[%s6048_s1 + $0x300] sm:$0xff]  }
  0x35   :  { %4102 = vmatpush3.bf16.msra.mxu1 %v4570_v55  ;;  %4075 = vmatprep.subr.bf16.mxu0 %v4571_v56  ;;  %v4642_v55 = vld [vmem:[%s6048_s1 + $0x380] sm:$0xff]   ;;  %v4643_v56 = vld [vmem:[%s6048_s1 + $0x348] sm:$0xff]  }
  0x36   :  { %4103 = vmatprep.subr.bf16.mxu1 %v4572_v57  ;;  %v4644_v57 = vld [vmem:[%s6048_s1 + $0x3c8] sm:$0xff]  }
  0x38   :  { %4076 = vmatpush3.bf16.msra.mxu0 %v4575_v59  ;;  %v4646_v59 = vld [vmem:[%s6048_s1 + $0x388] sm:$0xff]  }
  0x39   :  { %4104 = vmatpush3.bf16.msra.mxu1 %v4576_v60  ;;  %4077 = vmatprep.subr.bf16.mxu0 %v4581_v0  ;;  %v4647_v60 = vld [vmem:[%s6049_s0 + $0x144] ss:$144 sps:$4 sm:$0xff]   ;;  %v4652_v0 = vld [vmem:[%s6049_s0 + $0x14c] ss:$144 sps:$4 sm:$0xff]  }
  0x3a   :  { %4105 = vmatprep.subr.bf16.mxu1 %v4582_v1  ;;  %v4654_v1 = vld [vmem:[%s6048_s1 + $0x310] sm:$0xff]  }
  0x3c   :  { %4078 = vmatpush3.bf16.msra.mxu0 %v4583_v2  ;;  %v4655_v2 = vld [vmem:[%s6048_s1 + $0x390] sm:$0xff]  }
  0x3d   :  { %4106 = vmatpush3.bf16.msra.mxu1 %v4584_v3  ;;  %4079 = vmatprep.subr.bf16.mxu0 %v4585_v4  ;;  %v4656_v3 = vld [vmem:[%s6049_s0 + $0x148] ss:$144 sps:$4 sm:$0xff]  }
  0x3e   :  { %4107 = vmatprep.subr.bf16.mxu1 %v4586_v5  ;;  %v4657_v4 = vld [vmem:[%s6048_s1 + $0x358] sm:$0xff]  }
  0x3f   :  { %v4658_v5 = vld [vmem:[%s6048_s1 + $0x3d8] sm:$0xff]  }
  0x40   :  { %4080 = vmatpush3.bf16.msra.mxu0 %v4587_v6  ;;  %v4659_v6 = vld [vmem:[%s6048_s1 + $0x318] sm:$0xff]  }
  0x41   :  { %4108 = vmatpush3.bf16.msra.mxu1 %v4588_v7  ;;  %4121 = vmatprep.subr.bf16.mxu0 %v4595_v12  ;;  %v4660_v7 = vld [vmem:[%s6048_s1 + $0x398] sm:$0xff]   ;;  %v4665_v12 = vld [vmem:[%s6048_s1 + $0x368] sm:$0xff]  }
  0x42   :  { %4149 = vmatprep.subr.bf16.mxu1 %v4596_v13  ;;  %v4666_v13 = vld [vmem:[%s6048_s1 + $0x3e8] sm:$0xff]  }
  0x43   :  { %2889 = vmatmul.mubr.bf16.vlgmr.msra.gmra.mrb[8].mxu0 %v4589_v8  ;;  %v4661_v8 = vld [vmem:[%s6048_s1 + $0x360] sm:$0xff]  }
  0x44   :  { %2938 = vmatmul.mubr.bf16.vlgmr.msra.gmra.mrb[8].mxu1 %v4592_v10  ;;  %4122 = vmatpush3.bf16.msra.mxu0 %v4597_v14  ;;  %v4663_v10 = vld [vmem:[%s6048_s1 + $0x320] sm:$0xff]   ;;  %v4667_v14 = vld [vmem:[%s6048_s1 + $0x328] sm:$0xff]  }
  0x45   :  { %4150 = vmatpush3.bf16.msra.mxu1 %v4598_v15  ;;  %4123 = vmatprep.subr.bf16.mxu0 %v4599_v16  ;;  %v4668_v15 = vld [vmem:[%s6048_s1 + $0x3a8] sm:$0xff]   ;;  %v4669_v16 = vld [vmem:[%s6048_s1 + $0x370] sm:$0xff]  }
  0x46   :  { %4151 = vmatprep.subr.bf16.mxu1 %v4600_v17  ;;  %2896 = vmatprep.mubr.bf16.mxu0 %v4603_v20  ;;  %v4670_v17 = vld [vmem:[%s6048_s1 + $0x3f0] sm:$0xff]   ;;  %v4673_v20 = vld [vmem:[%s6048_s1 + $0x378] sm:$0xff]  }
  0x47   :  { %2945 = vmatprep.mubr.bf16.mxu1 %v4608_v24  ;;  %v4677_v24 = vld [vmem:[%s6049_s0 + $0x30] ss:$144 sps:$4 sm:$0xff]  }
  0x48   :  { %4124 = vmatpush3.bf16.msra.mxu0 %v4601_v18  ;;  %v4671_v18 = vld [vmem:[%s6048_s1 + $0x330] sm:$0xff]  }
  0x49   :  { %4152 = vmatpush3.bf16.msra.mxu1 %v4602_v19  ;;  %4125 = vmatprep.subr.bf16.mxu0 %v4606_v22  ;;  %v4672_v19 = vld [vmem:[%s6048_s1 + $0x3b0] sm:$0xff]   ;;  %v4675_v22 = vld [vmem:[%s6048_s1 + $0x338] sm:$0xff]  }
  0x4a   :  { %4153 = vmatprep.subr.bf16.mxu1 %v4607_v23  ;;  %v4676_v23 = vld [vmem:[%s6048_s1 + $0x3b8] sm:$0xff]  }
  0x4b   :  { %2897 = vmatmul.mubr.bf16.gmra.mrb[12].mxu0 %v4605_v21  ;;  %v4674_v21 = vld [vmem:[%s6048_s1 + $0x3f8] sm:$0xff]  }
  0x4c   :  { %4126 = vmatpush3.bf16.msra.mxu0 %v4610_v25  ;;  %2946 = vmatmul.mubr.bf16.gmra.mrb[12].mxu1 %v4612_v27  ;;  %v4679_v25 = vld [vmem:[%s6049_s0 + $0x34] ss:$144 sps:$4 sm:$0xff]   ;;  %v4682_v27 = vld [vmem:[%s6049_s0 + $0x3c] ss:$144 sps:$4 sm:$0xff]  }
  0x4d   :  { %4154 = vmatpush3.bf16.msra.mxu1 %v4611_v26  ;;  %4127 = vmatprep.subr.bf16.mxu0 %v4613_v28  ;;  %v4680_v26 = vld [vmem:[%s6049_s0 + $0x38] ss:$144 sps:$4 sm:$0xff]   ;;  %v4683_v28 = vld [vmem:[%s6048_s1 + $0x440] sm:$0xff]  }
  0x4e   :  { %4155 = vmatprep.subr.bf16.mxu1 %v4614_v29  ;;  %2986 = vmatprep.mubr.bf16.mxu0 %v4635_v49  ;;  %v4684_v29 = vld [vmem:[%s6048_s1 + $0x4c0] sm:$0xff]  }
  0x4f   :  { %3035 = vmatprep.mubr.bf16.mxu1 %v4638_v51  ;;  %v4706_v49 = vld [vmem:[%s6048_s1 + $0x4e0] sm:$0xff]  }
  0x50   :  { %4128 = vmatpush3.bf16.msra.mxu0 %v4615_v30  ;;  %v4685_v30 = vld [vmem:[%s6048_s1 + $0x400] sm:$0xff]  }
  0x51   :  { %4156 = vmatpush3.bf16.msra.mxu1 %v4616_v31  ;;  %4129 = vmatprep.subr.bf16.mxu0 %v4617_v32  ;;  %v4686_v31 = vld [vmem:[%s6048_s1 + $0x480] sm:$0xff]   ;;  %v4687_v32 = vld [vmem:[%s6048_s1 + $0x448] sm:$0xff]  }
  0x52   :  { %4157 = vmatprep.subr.bf16.mxu1 %v4618_v33  ;;  %v4688_v33 = vld [vmem:[%s6048_s1 + $0x4c8] sm:$0xff]   ;;  %v4708_v51 = vld [vmem:[%s6048_s1 + $0x4a0] sm:$0xff]  }
  0x54   :  { %4130 = vmatpush3.bf16.msra.mxu0 %v4619_v34  ;;  %v4689_v34 = vld [vmem:[%s6048_s1 + $0x408] sm:$0xff]  }
  0x55   :  { %4158 = vmatpush3.bf16.msra.mxu1 %v4620_v35  ;;  %4131 = vmatprep.subr.bf16.mxu0 %v4621_v36  ;;  %v4690_v35 = vld [vmem:[%s6048_s1 + $0x488] sm:$0xff]   ;;  %v4691_v36 = vld [vmem:[%s6049_s0 + $0x154] ss:$144 sps:$4 sm:$0xff]  }
  0x56   :  { %4159 = vmatprep.subr.bf16.mxu1 %v4622_v37  ;;  %v4693_v37 = vld [vmem:[%s6049_s0 + $0x150] ss:$144 sps:$4 sm:$0xff]  }
  0x58   :  { %4132 = vmatpush3.bf16.msra.mxu0 %v4623_v38  ;;  %v4694_v38 = vld [vmem:[%s6048_s1 + $0x450] sm:$0xff]  }
  0x59   :  { %4160 = vmatpush3.bf16.msra.mxu1 %v4624_v39  ;;  %4133 = vmatprep.subr.bf16.mxu0 %v4625_v40  ;;  %v4695_v39 = vld [vmem:[%s6048_s1 + $0x4d0] sm:$0xff]   ;;  %v4696_v40 = vld [vmem:[%s6049_s0 + $0x15c] ss:$144 sps:$4 sm:$0xff]  }
  0x5a   :  { %4161 = vmatprep.subr.bf16.mxu1 %v4626_v41  ;;  %v4698_v41 = vld [vmem:[%s6048_s1 + $0x410] sm:$0xff]  }
  0x5c   :  { %4134 = vmatpush3.bf16.msra.mxu0 %v4627_v42  ;;  %v4699_v42 = vld [vmem:[%s6048_s1 + $0x490] sm:$0xff]  }
  0x5d   :  { %4162 = vmatpush3.bf16.msra.mxu1 %v4628_v43  ;;  %4135 = vmatprep.subr.bf16.mxu0 %v4629_v44  ;;  %v4700_v43 = vld [vmem:[%s6049_s0 + $0x158] ss:$144 sps:$4 sm:$0xff]  }
  0x5e   :  { %4163 = vmatprep.subr.bf16.mxu1 %v4630_v45  ;;  %v4701_v44 = vld [vmem:[%s6048_s1 + $0x458] sm:$0xff]  }
  0x5f   :  { %v4702_v45 = vld [vmem:[%s6048_s1 + $0x4d8] sm:$0xff]  }
  0x60   :  { %4136 = vmatpush3.bf16.msra.mxu0 %v4631_v46  ;;  %v4703_v46 = vld [vmem:[%s6048_s1 + $0x418] sm:$0xff]  }
  0x61   :  { %4164 = vmatpush3.bf16.msra.mxu1 %v4632_v47  ;;  %4177 = vmatprep.subr.bf16.mxu0 %v4639_v52  ;;  %v4704_v47 = vld [vmem:[%s6048_s1 + $0x498] sm:$0xff]   ;;  %v4709_v52 = vld [vmem:[%s6048_s1 + $0x468] sm:$0xff]  }
  0x62   :  { %4205 = vmatprep.subr.bf16.mxu1 %v4640_v53  ;;  %v4710_v53 = vld [vmem:[%s6048_s1 + $0x4e8] sm:$0xff]  }
  0x63   :  { %2987 = vmatmul.mubr.bf16.vlgmr.msra.gmra.mrb[16].mxu0 %v4633_v48  ;;  %v4705_v48 = vld [vmem:[%s6048_s1 + $0x460] sm:$0xff]  }
  0x64   :  { %3036 = vmatmul.mubr.bf16.vlgmr.msra.gmra.mrb[16].mxu1 %v4636_v50  ;;  %4178 = vmatpush3.bf16.msra.mxu0 %v4641_v54  ;;  %v4707_v50 = vld [vmem:[%s6048_s1 + $0x420] sm:$0xff]   ;;  %v4711_v54 = vld [vmem:[%s6048_s1 + $0x428] sm:$0xff]  }
  0x65   :  { %4206 = vmatpush3.bf16.msra.mxu1 %v4642_v55  ;;  %4179 = vmatprep.subr.bf16.mxu0 %v4643_v56  ;;  %v4712_v55 = vld [vmem:[%s6048_s1 + $0x4a8] sm:$0xff]   ;;  %v4713_v56 = vld [vmem:[%s6048_s1 + $0x470] sm:$0xff]  }
  0x66   :  { %4207 = vmatprep.subr.bf16.mxu1 %v4644_v57  ;;  %2994 = vmatprep.mubr.bf16.mxu0 %v4647_v60  ;;  %v4714_v57 = vld [vmem:[%s6048_s1 + $0x4f0] sm:$0xff]   ;;  %v4717_v60 = vld [vmem:[%s6048_s1 + $0x478] sm:$0xff]  }
  0x67   :  { %3043 = vmatprep.mubr.bf16.mxu1 %v4652_v0  ;;  %v4721_v0 = vld [vmem:[%s6049_s0 + $0x40] ss:$144 sps:$4 sm:$0xff]  }
  0x68   :  { %4180 = vmatpush3.bf16.msra.mxu0 %v4645_v58  ;;  %v4715_v58 = vld [vmem:[%s6048_s1 + $0x430] sm:$0xff]  }
  0x69   :  { %4208 = vmatpush3.bf16.msra.mxu1 %v4646_v59  ;;  %4181 = vmatprep.subr.bf16.mxu0 %v4650_v62  ;;  %v4716_v59 = vld [vmem:[%s6048_s1 + $0x4b0] sm:$0xff]   ;;  %v4719_v62 = vld [vmem:[%s6048_s1 + $0x438] sm:$0xff]  }
  0x6a   :  { %4209 = vmatprep.subr.bf16.mxu1 %v4651_v63  ;;  %v4720_v63 = vld [vmem:[%s6048_s1 + $0x4b8] sm:$0xff]  }
  0x6b   :  { %2995 = vmatmul.mubr.bf16.gmra.mrb[20].mxu0 %v4649_v61  ;;  %v4718_v61 = vld [vmem:[%s6048_s1 + $0x4f8] sm:$0xff]  }
  0x6c   :  { %4182 = vmatpush3.bf16.msra.mxu0 %v4654_v1  ;;  %3044 = vmatmul.mubr.bf16.gmra.mrb[20].mxu1 %v4656_v3  ;;  %v4723_v1 = vld [vmem:[%s6049_s0 + $0x44] ss:$144 sps:$4 sm:$0xff]   ;;  %v4726_v3 = vld [vmem:[%s6049_s0 + $0x4c] ss:$144 sps:$4 sm:$0xff]  }
  0x6d   :  { %4210 = vmatpush3.bf16.msra.mxu1 %v4655_v2  ;;  %4183 = vmatprep.subr.bf16.mxu0 %v4657_v4  ;;  %v4724_v2 = vld [vmem:[%s6049_s0 + $0x48] ss:$144 sps:$4 sm:$0xff]   ;;  %v4727_v4 = vld [vmem:[%s6048_s1 + $0x540] sm:$0xff]  }
  0x6e   :  { %4211 = vmatprep.subr.bf16.mxu1 %v4658_v5  ;;  %3084 = vmatprep.mubr.bf16.mxu0 %v4679_v25  ;;  %v4728_v5 = vld [vmem:[%s6048_s1 + $0x5c0] sm:$0xff]  }
  0x6f   :  { %3133 = vmatprep.mubr.bf16.mxu1 %v4682_v27  ;;  %v4750_v25 = vld [vmem:[%s6048_s1 + $0x5e0] sm:$0xff]  }
  0x70   :  { %4184 = vmatpush3.bf16.msra.mxu0 %v4659_v6  ;;  %v4729_v6 = vld [vmem:[%s6048_s1 + $0x500] sm:$0xff]  }
  0x71   :  { %4212 = vmatpush3.bf16.msra.mxu1 %v4660_v7  ;;  %4185 = vmatprep.subr.bf16.mxu0 %v4661_v8  ;;  %v4730_v7 = vld [vmem:[%s6048_s1 + $0x580] sm:$0xff]   ;;  %v4731_v8 = vld [vmem:[%s6048_s1 + $0x548] sm:$0xff]  }
  0x72   :  { %4213 = vmatprep.subr.bf16.mxu1 %v4662_v9  ;;  %v4732_v9 = vld [vmem:[%s6048_s1 + $0x5c8] sm:$0xff]   ;;  %v4752_v27 = vld [vmem:[%s6048_s1 + $0x5a0] sm:$0xff]  }
  0x74   :  { %4186 = vmatpush3.bf16.msra.mxu0 %v4663_v10  ;;  %v4733_v10 = vld [vmem:[%s6048_s1 + $0x508] sm:$0xff]  }
  0x75   :  { %4214 = vmatpush3.bf16.msra.mxu1 %v4664_v11  ;;  %4187 = vmatprep.subr.bf16.mxu0 %v4665_v12  ;;  %v4734_v11 = vld [vmem:[%s6048_s1 + $0x588] sm:$0xff]   ;;  %v4735_v12 = vld [vmem:[%s6049_s0 + $0x164] ss:$144 sps:$4 sm:$0xff]  }
  0x76   :  { %4215 = vmatprep.subr.bf16.mxu1 %v4666_v13  ;;  %v4737_v13 = vld [vmem:[%s6049_s0 + $0x160] ss:$144 sps:$4 sm:$0xff]  }
  0x78   :  { %4188 = vmatpush3.bf16.msra.mxu0 %v4667_v14  ;;  %v4738_v14 = vld [vmem:[%s6048_s1 + $0x550] sm:$0xff]  }
  0x79   :  { %4216 = vmatpush3.bf16.msra.mxu1 %v4668_v15  ;;  %4189 = vmatprep.subr.bf16.mxu0 %v4669_v16  ;;  %v4739_v15 = vld [vmem:[%s6048_s1 + $0x5d0] sm:$0xff]   ;;  %v4740_v16 = vld [vmem:[%s6049_s0 + $0x16c] ss:$144 sps:$4 sm:$0xff]  }
  0x7a   :  { %4217 = vmatprep.subr.bf16.mxu1 %v4670_v17  ;;  %v4742_v17 = vld [vmem:[%s6048_s1 + $0x510] sm:$0xff]  }
  0x7c   :  { %4190 = vmatpush3.bf16.msra.mxu0 %v4671_v18  ;;  %v4743_v18 = vld [vmem:[%s6048_s1 + $0x590] sm:$0xff]  }
  0x7d   :  { %4218 = vmatpush3.bf16.msra.mxu1 %v4672_v19  ;;  %4191 = vmatprep.subr.bf16.mxu0 %v4673_v20  ;;  %v4744_v19 = vld [vmem:[%s6049_s0 + $0x168] ss:$144 sps:$4 sm:$0xff]  }
  0x7e   :  { %4219 = vmatprep.subr.bf16.mxu1 %v4674_v21  ;;  %v4745_v20 = vld [vmem:[%s6048_s1 + $0x558] sm:$0xff]  }
  0x7f   :  { %v4746_v21 = vld [vmem:[%s6048_s1 + $0x5d8] sm:$0xff]  }
  0x80   :  { %4192 = vmatpush3.bf16.msra.mxu0 %v4675_v22  ;;  %v4747_v22 = vld [vmem:[%s6048_s1 + $0x518] sm:$0xff]  }
  0x81   :  { %4220 = vmatpush3.bf16.msra.mxu1 %v4676_v23  ;;  %4233 = vmatprep.subr.bf16.mxu0 %v4683_v28  ;;  %v4748_v23 = vld [vmem:[%s6048_s1 + $0x598] sm:$0xff]   ;;  %v4753_v28 = vld [vmem:[%s6048_s1 + $0x568] sm:$0xff]  }
  0x82   :  { %4261 = vmatprep.subr.bf16.mxu1 %v4684_v29  ;;  %v4754_v29 = vld [vmem:[%s6048_s1 + $0x5e8] sm:$0xff]  }
  0x83   :  { %3085 = vmatmul.mubr.bf16.vlgmr.msra.gmra.mrb[24].mxu0 %v4677_v24  ;;  %v4749_v24 = vld [vmem:[%s6048_s1 + $0x560] sm:$0xff]  }
  0x84   :  { %3134 = vmatmul.mubr.bf16.vlgmr.msra.gmra.mrb[24].mxu1 %v4680_v26  ;;  %4234 = vmatpush3.bf16.msra.mxu0 %v4685_v30  ;;  %v4751_v26 = vld [vmem:[%s6048_s1 + $0x520] sm:$0xff]   ;;  %v4755_v30 = vld [vmem:[%s6048_s1 + $0x528] sm:$0xff]  }
  0x85   :  { %4262 = vmatpush3.bf16.msra.mxu1 %v4686_v31  ;;  %4235 = vmatprep.subr.bf16.mxu0 %v4687_v32  ;;  %v4756_v31 = vld [vmem:[%s6048_s1 + $0x5a8] sm:$0xff]   ;;  %v4757_v32 = vld [vmem:[%s6048_s1 + $0x570] sm:$0xff]  }
  0x86   :  { %4263 = vmatprep.subr.bf16.mxu1 %v4688_v33  ;;  %3092 = vmatprep.mubr.bf16.mxu0 %v4691_v36  ;;  %v4758_v33 = vld [vmem:[%s6048_s1 + $0x5f0] sm:$0xff]   ;;  %v4761_v36 = vld [vmem:[%s6048_s1 + $0x578] sm:$0xff]  }
  0x87   :  { %3141 = vmatprep.mubr.bf16.mxu1 %v4696_v40  ;;  %v4765_v40 = vld [vmem:[%s6049_s0 + $0x50] ss:$144 sps:$4 sm:$0xff]  }
  0x88   :  { %4236 = vmatpush3.bf16.msra.mxu0 %v4689_v34  ;;  %v4759_v34 = vld [vmem:[%s6048_s1 + $0x530] sm:$0xff]  }
  0x89   :  { %4264 = vmatpush3.bf16.msra.mxu1 %v4690_v35  ;;  %4237 = vmatprep.subr.bf16.mxu0 %v4694_v38  ;;  %v4760_v35 = vld [vmem:[%s6048_s1 + $0x5b0] sm:$0xff]   ;;  %v4763_v38 = vld [vmem:[%s6048_s1 + $0x538] sm:$0xff]  }
  0x8a   :  { %4265 = vmatprep.subr.bf16.mxu1 %v4695_v39  ;;  %v4764_v39 = vld [vmem:[%s6048_s1 + $0x5b8] sm:$0xff]  }
  0x8b   :  { %3093 = vmatmul.mubr.bf16.gmra.mrb[28].mxu0 %v4693_v37  ;;  %v4762_v37 = vld [vmem:[%s6048_s1 + $0x5f8] sm:$0xff]  }
  0x8c   :  { %4238 = vmatpush3.bf16.msra.mxu0 %v4698_v41  ;;  %3142 = vmatmul.mubr.bf16.gmra.mrb[28].mxu1 %v4700_v43  ;;  %v4767_v41 = vld [vmem:[%s6049_s0 + $0x54] ss:$144 sps:$4 sm:$0xff]   ;;  %v4770_v43 = vld [vmem:[%s6049_s0 + $0x5c] ss:$144 sps:$4 sm:$0xff]  }
  0x8d   :  { %4266 = vmatpush3.bf16.msra.mxu1 %v4699_v42  ;;  %4239 = vmatprep.subr.bf16.mxu0 %v4701_v44  ;;  %v4768_v42 = vld [vmem:[%s6049_s0 + $0x58] ss:$144 sps:$4 sm:$0xff]   ;;  %v4771_v44 = vld [vmem:[%s6048_s1 + $0x640] sm:$0xff]  }
  0x8e   :  { %4267 = vmatprep.subr.bf16.mxu1 %v4702_v45  ;;  %3182 = vmatprep.mubr.bf16.mxu0 %v4723_v1  ;;  %v4772_v45 = vld [vmem:[%s6048_s1 + $0x6c0] sm:$0xff]  }
  0x8f   :  { %3231 = vmatprep.mubr.bf16.mxu1 %v4726_v3  ;;  %v4794_v1 = vld [vmem:[%s6048_s1 + $0x6e0] sm:$0xff]  }
  0x90   :  { %4240 = vmatpush3.bf16.msra.mxu0 %v4703_v46  ;;  %v4773_v46 = vld [vmem:[%s6048_s1 + $0x600] sm:$0xff]  }
  0x91   :  { %4268 = vmatpush3.bf16.msra.mxu1 %v4704_v47  ;;  %4241 = vmatprep.subr.bf16.mxu0 %v4705_v48  ;;  %v4774_v47 = vld [vmem:[%s6048_s1 + $0x680] sm:$0xff]   ;;  %v4775_v48 = vld [vmem:[%s6048_s1 + $0x648] sm:$0xff]  }
  0x92   :  { %4269 = vmatprep.subr.bf16.mxu1 %v4706_v49  ;;  %v4776_v49 = vld [vmem:[%s6048_s1 + $0x6c8] sm:$0xff]   ;;  %v4796_v3 = vld [vmem:[%s6048_s1 + $0x6a0] sm:$0xff]  }
  0x94   :  { %4242 = vmatpush3.bf16.msra.mxu0 %v4707_v50  ;;  %v4777_v50 = vld [vmem:[%s6048_s1 + $0x608] sm:$0xff]  }
  0x95   :  { %4270 = vmatpush3.bf16.msra.mxu1 %v4708_v51  ;;  %4243 = vmatprep.subr.bf16.mxu0 %v4709_v52  ;;  %v4778_v51 = vld [vmem:[%s6048_s1 + $0x688] sm:$0xff]   ;;  %v4779_v52 = vld [vmem:[%s6049_s0 + $0x174] ss:$144 sps:$4 sm:$0xff]  }
  0x96   :  { %4271 = vmatprep.subr.bf16.mxu1 %v4710_v53  ;;  %v4781_v53 = vld [vmem:[%s6049_s0 + $0x170] ss:$144 sps:$4 sm:$0xff]  }
  0x98   :  { %4244 = vmatpush3.bf16.msra.mxu0 %v4711_v54  ;;  %v4782_v54 = vld [vmem:[%s6048_s1 + $0x650] sm:$0xff]  }
  0x99   :  { %4272 = vmatpush3.bf16.msra.mxu1 %v4712_v55  ;;  %4245 = vmatprep.subr.bf16.mxu0 %v4713_v56  ;;  %v4783_v55 = vld [vmem:[%s6048_s1 + $0x6d0] sm:$0xff]   ;;  %v4784_v56 = vld [vmem:[%s6049_s0 + $0x17c] ss:$144 sps:$4 sm:$0xff]  }
  0x9a   :  { %4273 = vmatprep.subr.bf16.mxu1 %v4714_v57  ;;  %v4786_v57 = vld [vmem:[%s6048_s1 + $0x610] sm:$0xff]  }
  0x9c   :  { %4246 = vmatpush3.bf16.msra.mxu0 %v4715_v58  ;;  %v4787_v58 = vld [vmem:[%s6048_s1 + $0x690] sm:$0xff]  }
  0x9d   :  { %4274 = vmatpush3.bf16.msra.mxu1 %v4716_v59  ;;  %4247 = vmatprep.subr.bf16.mxu0 %v4717_v60  ;;  %v4788_v59 = vld [vmem:[%s6049_s0 + $0x178] ss:$144 sps:$4 sm:$0xff]  }
  0x9e   :  { %4275 = vmatprep.subr.bf16.mxu1 %v4718_v61  ;;  %v4789_v60 = vld [vmem:[%s6048_s1 + $0x658] sm:$0xff]  }
  0x9f   :  { %v4790_v61 = vld [vmem:[%s6048_s1 + $0x6d8] sm:$0xff]  }
  0xa0   :  { %4248 = vmatpush3.bf16.msra.mxu0 %v4719_v62  ;;  %v4791_v62 = vld [vmem:[%s6048_s1 + $0x618] sm:$0xff]  }
  0xa1   :  { %4276 = vmatpush3.bf16.msra.mxu1 %v4720_v63  ;;  %4289 = vmatprep.subr.bf16.mxu0 %v4727_v4  ;;  %v4792_v63 = vld [vmem:[%s6048_s1 + $0x698] sm:$0xff]   ;;  %v4797_v4 = vld [vmem:[%s6048_s1 + $0x668] sm:$0xff]  }
  0xa2   :  { %4317 = vmatprep.subr.bf16.mxu1 %v4728_v5  ;;  %v4798_v5 = vld [vmem:[%s6048_s1 + $0x6e8] sm:$0xff]  }
  0xa3   :  { %3183 = vmatmul.mubr.bf16.vlgmr.msra.gmra.mrb[32].mxu0 %v4721_v0  ;;  %v4793_v0 = vld [vmem:[%s6048_s1 + $0x660] sm:$0xff]  }
  0xa4   :  { %3232 = vmatmul.mubr.bf16.vlgmr.msra.gmra.mrb[32].mxu1 %v4724_v2  ;;  %4290 = vmatpush3.bf16.msra.mxu0 %v4729_v6  ;;  %v4795_v2 = vld [vmem:[%s6048_s1 + $0x620] sm:$0xff]   ;;  %v4799_v6 = vld [vmem:[%s6048_s1 + $0x628] sm:$0xff]  }
  0xa5   :  { %4318 = vmatpush3.bf16.msra.mxu1 %v4730_v7  ;;  %4291 = vmatprep.subr.bf16.mxu0 %v4731_v8  ;;  %v4800_v7 = vld [vmem:[%s6048_s1 + $0x6a8] sm:$0xff]  }
  0xa6   :  { %4319 = vmatprep.subr.bf16.mxu1 %v4732_v9  ;;  %3190 = vmatprep.mubr.bf16.mxu0 %v4735_v12  ;;  %v4801_v9 = vld [vmem:[%s6048_s1 + $0x670] sm:$0xff]  }
  0xa7   :  { %3239 = vmatprep.mubr.bf16.mxu1 %v4740_v16  ;;  %v4804_v16 = vld [vmem:[%s6048_s1 + $0x6b0] sm:$0xff]  }
  0xa8   :  { %4292 = vmatpush3.bf16.msra.mxu0 %v4733_v10 }
  0xa9   :  { %4320 = vmatpush3.bf16.msra.mxu1 %v4734_v11  ;;  %4293 = vmatprep.subr.bf16.mxu0 %v4738_v14  ;;  %v4802_v11 = vld [vmem:[%s6048_s1 + $0x6f0] sm:$0xff]  }
  0xaa   :  { %4321 = vmatprep.subr.bf16.mxu1 %v4739_v15 }
  0xab   :  { %3191 = vmatmul.mubr.bf16.gmra.mrb[36].mxu0 %v4737_v13  ;;  %v4803_v13 = vld [vmem:[%s6048_s1 + $0x630] sm:$0xff]  }
  0xac   :  { %4294 = vmatpush3.bf16.msra.mxu0 %v4742_v17  ;;  %3240 = vmatmul.mubr.bf16.gmra.mrb[36].mxu1 %v4744_v19  ;;  %v4805_v19 = vld [vmem:[%s6048_s1 + $0x678] sm:$0xff]  }
  0xad   :  { %4322 = vmatpush3.bf16.msra.mxu1 %v4743_v18  ;;  %4295 = vmatprep.subr.bf16.mxu0 %v4745_v20 }
  0xae   :  { %4323 = vmatprep.subr.bf16.mxu1 %v4746_v21  ;;  %3280 = vmatprep.mubr.bf16.mxu0 %v4767_v41  ;;  %v4806_v21 = vld [vmem:[%s6048_s1 + $0x6f8] sm:$0xff]   ;;  %v4825_v41 = vld [vmem:[%s6049_s0 + $0x180] ss:$144 sps:$4 sm:$0xff]  }
  0xaf   :  { %3329 = vmatprep.mubr.bf16.mxu1 %v4770_v43  ;;  %v4827_v43 = vld [vmem:[%s6048_s1 + $0x7d0] sm:$0xff]  }
  0xb0   :  { %4296 = vmatpush3.bf16.msra.mxu0 %v4747_v22 }
  0xb1   :  { %4324 = vmatpush3.bf16.msra.mxu1 %v4748_v23  ;;  %4297 = vmatprep.subr.bf16.mxu0 %v4749_v24  ;;  %v4807_v23 = vld [vmem:[%s6048_s1 + $0x638] sm:$0xff]  }
  0xb2   :  { %4325 = vmatprep.subr.bf16.mxu1 %v4750_v25 }
  0xb4   :  { %4298 = vmatpush3.bf16.msra.mxu0 %v4751_v26  ;;  %v4808_v26 = vld [vmem:[%s6048_s1 + $0x6b8] sm:$0xff]  }
  0xb5   :  { %4326 = vmatpush3.bf16.msra.mxu1 %v4752_v27  ;;  %4299 = vmatprep.subr.bf16.mxu0 %v4753_v28  ;;  %v4809_v28 = vld [vmem:[%s6049_s0 + $0x60] ss:$144 sps:$4 sm:$0xff]  }
  0xb6   :  { %4327 = vmatprep.subr.bf16.mxu1 %v4754_v29  ;;  %v4811_v29 = vld [vmem:[%s6049_s0 + $0x64] ss:$144 sps:$4 sm:$0xff]  }
  0xb8   :  { %4300 = vmatpush3.bf16.msra.mxu0 %v4755_v30  ;;  %v4812_v30 = vld [vmem:[%s6049_s0 + $0x68] ss:$144 sps:$4 sm:$0xff]  }
  0xb9   :  { %4328 = vmatpush3.bf16.msra.mxu1 %v4756_v31  ;;  %4301 = vmatprep.subr.bf16.mxu0 %v4757_v32  ;;  %v4814_v31 = vld [vmem:[%s6049_s0 + $0x6c] ss:$144 sps:$4 sm:$0xff]   ;;  %v4815_v32 = vld [vmem:[%s6048_s1 + $0x740] sm:$0xff]  }
  0xba   :  { %4329 = vmatprep.subr.bf16.mxu1 %v4758_v33  ;;  %v4816_v33 = vld [vmem:[%s6048_s1 + $0x7c0] sm:$0xff]  }
  0xbc   :  { %4302 = vmatpush3.bf16.msra.mxu0 %v4759_v34  ;;  %v4817_v34 = vld [vmem:[%s6048_s1 + $0x700] sm:$0xff]  }
  0xbd   :  { %4330 = vmatpush3.bf16.msra.mxu1 %v4760_v35  ;;  %4303 = vmatprep.subr.bf16.mxu0 %v4761_v36  ;;  %v4818_v35 = vld [vmem:[%s6048_s1 + $0x780] sm:$0xff]   ;;  %v4819_v36 = vld [vmem:[%s6048_s1 + $0x748] sm:$0xff]  }
  0xbe   :  { %4331 = vmatprep.subr.bf16.mxu1 %v4762_v37  ;;  %v4820_v37 = vld [vmem:[%s6048_s1 + $0x7c8] sm:$0xff]  }
  0xc0   :  { %4304 = vmatpush3.bf16.msra.mxu0 %v4763_v38  ;;  %v4821_v38 = vld [vmem:[%s6048_s1 + $0x708] sm:$0xff]  }
  0xc1   :  { %4332 = vmatpush3.bf16.msra.mxu1 %v4764_v39  ;;  %4345 = vmatprep.subr.bf16.mxu0 %v4771_v44  ;;  %v4822_v39 = vld [vmem:[%s6048_s1 + $0x788] sm:$0xff]  }
  0xc2   :  { %4373 = vmatprep.subr.bf16.mxu1 %v4772_v45  ;;  %v4828_v44 = vld [vmem:[%s6049_s0 + $0x18c] ss:$144 sps:$4 sm:$0xff]   ;;  %v4830_v45 = vld [vmem:[%s6048_s1 + $0x710] sm:$0xff]  }
  0xc3   :  { %3281 = vmatmul.mubr.bf16.vlgmr.msra.gmra.mrb[40].mxu0 %v4765_v40  ;;  %v4823_v40 = vld [vmem:[%s6049_s0 + $0x184] ss:$144 sps:$4 sm:$0xff]  }
  0xc4   :  { %3330 = vmatmul.mubr.bf16.vlgmr.msra.gmra.mrb[40].mxu1 %v4768_v42  ;;  %4346 = vmatpush3.bf16.msra.mxu0 %v4773_v46  ;;  %v4826_v42 = vld [vmem:[%s6048_s1 + $0x750] sm:$0xff]  }
  0xc5   :  { %4374 = vmatpush3.bf16.msra.mxu1 %v4774_v47  ;;  %4347 = vmatprep.subr.bf16.mxu0 %v4775_v48  ;;  %v4831_v46 = vld [vmem:[%s6048_s1 + $0x790] sm:$0xff]   ;;  %v4832_v48 = vld [vmem:[%s6049_s0 + $0x188] ss:$144 sps:$4 sm:$0xff]  }
  0xc6   :  { %4375 = vmatprep.subr.bf16.mxu1 %v4776_v49  ;;  %3288 = vmatprep.mubr.bf16.mxu0 %v4779_v52  ;;  %v4833_v49 = vld [vmem:[%s6048_s1 + $0x758] sm:$0xff]  }
  0xc7   :  { %3337 = vmatprep.mubr.bf16.mxu1 %v4784_v56  ;;  %v4836_v56 = vld [vmem:[%s6048_s1 + $0x798] sm:$0xff]  }
  0xc8   :  { %4348 = vmatpush3.bf16.msra.mxu0 %v4777_v50 }
  0xc9   :  { %4376 = vmatpush3.bf16.msra.mxu1 %v4778_v51  ;;  %4349 = vmatprep.subr.bf16.mxu0 %v4782_v54  ;;  %v4834_v51 = vld [vmem:[%s6048_s1 + $0x7d8] sm:$0xff]  }
  0xca   :  { %4377 = vmatprep.subr.bf16.mxu1 %v4783_v55  ;;  %v4835_v54 = vld [vmem:[%s6048_s1 + $0x718] sm:$0xff]  }
  0xcb   :  { %3289 = vmatmul.mubr.bf16.gmra.mrb[44].mxu0 %v4781_v53 }
  0xcc   :  { %4350 = vmatpush3.bf16.msra.mxu0 %v4786_v57  ;;  %3338 = vmatmul.mubr.bf16.gmra.mrb[44].mxu1 %v4788_v59 }
  0xcd   :  { %4378 = vmatpush3.bf16.msra.mxu1 %v4787_v58  ;;  %4351 = vmatprep.subr.bf16.mxu0 %v4789_v60  ;;  %v4837_v58 = vld [vmem:[%s6048_s1 + $0x760] sm:$0xff]  }
  0xce   :  { %4379 = vmatprep.subr.bf16.mxu1 %v4790_v61  ;;  %3378 = vmatprep.mubr.bf16.mxu0 %v4811_v29  ;;  %v4838_v61 = vld [vmem:[%s6048_s1 + $0x7e0] sm:$0xff]  }
  0xcf   :  { %3427 = vmatprep.mubr.bf16.mxu1 %v4814_v31 }
  0xd0   :  { %4352 = vmatpush3.bf16.msra.mxu0 %v4791_v62 }
  0xd1   :  { %4380 = vmatpush3.bf16.msra.mxu1 %v4792_v63  ;;  %4353 = vmatprep.subr.bf16.mxu0 %v4793_v0  ;;  %v4839_v0 = vld [vmem:[%s6048_s1 + $0x720] sm:$0xff]  }
  0xd2   :  { %4381 = vmatprep.subr.bf16.mxu1 %v4794_v1 }
  0xd4   :  { %4354 = vmatpush3.bf16.msra.mxu0 %v4795_v2  ;;  %v4840_v2 = vld [vmem:[%s6048_s1 + $0x7a0] sm:$0xff]  }
  0xd5   :  { %4382 = vmatpush3.bf16.msra.mxu1 %v4796_v3  ;;  %4355 = vmatprep.subr.bf16.mxu0 %v4797_v4  ;;  %v3648_v3 = vld [vmem:[%s6050_s2] ss:$0 sm:$0xff] }
  0xd6   :  { %4383 = vmatprep.subr.bf16.mxu1 %v4798_v5 }
  0xd8   :  { %4356 = vmatpush3.bf16.msra.mxu0 %v4799_v6  ;;  %v4841_v6 = vld [vmem:[%s6048_s1 + $0x768] sm:$0xff]  }
  0xd9   :  { %4384 = vmatpush3.bf16.msra.mxu1 %v4800_v7  ;;  %4357 = vmatprep.subr.bf16.mxu0 %v4801_v9 }
  0xda   :  { %4385 = vmatprep.subr.bf16.mxu1 %v4802_v11 }
  0xdc   :  { %4358 = vmatpush3.bf16.msra.mxu0 %v4803_v13 }
  0xdd   :  { %4386 = vmatpush3.bf16.msra.mxu1 %v4804_v16  ;;  %4359 = vmatprep.subr.bf16.mxu0 %v4805_v19 }
  0xde   :  { %4387 = vmatprep.subr.bf16.mxu1 %v4806_v21  ;;  %v4846_v21 = vld [vmem:[%s6048_s1 + $0x7f0] sm:$0xff]  }
  0xe0   :  { %4360 = vmatpush3.bf16.msra.mxu0 %v4807_v23 }
  0xe1   :  { %4388 = vmatpush3.bf16.msra.mxu1 %v4808_v26  ;;  %4401 = vmatprep.subr.bf16.mxu0 %v4815_v32  ;;  %v4850_v32 = vld [vmem:[%s6048_s1 + $0x7f8] sm:$0xff]  }
  0xe2   :  { %4429 = vmatprep.subr.bf16.mxu1 %v4816_v33 }
  0xe3   :  { %3379 = vmatmul.mubr.bf16.vlgmr.msra.gmra.mrb[48].mxu0 %v4809_v28 }
  0xe4   :  { %3428 = vmatmul.mubr.bf16.vlgmr.msra.gmra.mrb[48].mxu1 %v4812_v30  ;;  %4402 = vmatpush3.bf16.msra.mxu0 %v4817_v34  ;;  %v4849_v30 = vld [vmem:[%s6048_s1 + $0x778] sm:$0xff]  }
  0xe5   :  { %4430 = vmatpush3.bf16.msra.mxu1 %v4818_v35  ;;  %4403 = vmatprep.subr.bf16.mxu0 %v4819_v36  ;;  %v4851_v36 = vld [vmem:[%s6048_s1 + $0x738] sm:$0xff]  }
  0xe6   :  { %4431 = vmatprep.subr.bf16.mxu1 %v4820_v37  ;;  %3386 = vmatprep.mubr.bf16.mxu0 %v4823_v40  ;;  %v4853_v40 = vld [vmem:[%s6049_s0 + $0x70] ss:$144 sps:$4 sm:$0xff]  }
  0xe7   :  { %3435 = vmatprep.mubr.bf16.mxu1 %v4828_v44 }
  0xe8   :  { %4404 = vmatpush3.bf16.msra.mxu0 %v4821_v38  ;;  %v4852_v38 = vld [vmem:[%s6048_s1 + $0x7b8] sm:$0xff]  }
  0xe9   :  { %4432 = vmatpush3.bf16.msra.mxu1 %v4822_v39  ;;  %4405 = vmatprep.subr.bf16.mxu0 %v4826_v42 }
  0xea   :  { %4433 = vmatprep.subr.bf16.mxu1 %v4827_v43  ;;  %v4856_v43 = vld [vmem:[%s6049_s0 + $0x78] ss:$144 sps:$4 sm:$0xff]  }
  0xeb   :  { %3387 = vmatmul.mubr.bf16.gmra.mrb[52].mxu0 %v4825_v41  ;;  %v4855_v41 = vld [vmem:[%s6049_s0 + $0x74] ss:$144 sps:$4 sm:$0xff]  }
  0xec   :  { %4406 = vmatpush3.bf16.msra.mxu0 %v4830_v45  ;;  %3436 = vmatmul.mubr.bf16.gmra.mrb[52].mxu1 %v4832_v48  ;;  %v4859_v48 = vld [vmem:[%s6048_s1 + $0x840] sm:$0xff]  }
  0xed   :  { %4434 = vmatpush3.bf16.msra.mxu1 %v4831_v46  ;;  %4407 = vmatprep.subr.bf16.mxu0 %v4833_v49  ;;  %v4858_v46 = vld [vmem:[%s6049_s0 + $0x7c] ss:$144 sps:$4 sm:$0xff]  }
  0xee   :  { %4435 = vmatprep.subr.bf16.mxu1 %v4834_v51  ;;  %3476 = vmatprep.mubr.bf16.mxu0 %v4855_v41 }
  0xef   :  { %3525 = vmatprep.mubr.bf16.mxu1 %v4858_v46 }
  0xf0   :  { %4408 = vmatpush3.bf16.msra.mxu0 %v4835_v54 }
  0xf1   :  { %4436 = vmatpush3.bf16.msra.mxu1 %v4836_v56  ;;  %4409 = vmatprep.subr.bf16.mxu0 %v4837_v58 }
  0xf2   :  { %4437 = vmatprep.subr.bf16.mxu1 %v4838_v61 }
  0xf4   :  { %4410 = vmatpush3.bf16.msra.mxu0 %v4839_v0 }
  0xf5   :  { %4438 = vmatpush3.bf16.msra.mxu1 %v4840_v2  ;;  %4411 = vmatprep.subr.bf16.mxu0 %v4841_v6  ;;  %v4870_v6 = vld [vmem:[%s6048_s1 + $0x850] sm:$0xff]  }
  0xf6   :  { %v4025_v8 = vpop.f32.mrb[0].mxu0 }
  0xf7   :  { %v4053_v10 = vpop.f32.mrb[0].mxu1  ;;  %v4026_v12 = vpop.f32.mrb[1].mxu0 }
  0xf8   :  { %v5730_v14 = vadd.f32 %v4026_v12, %v4025_v8  ;;  %v4054_v15 = vpop.f32.mrb[1].mxu1  ;;  %v4028_v18 = vpop.f32.mrb[2].mxu0  ;;  %v4843_v12 = vld [vmem:[%s6048_s1 + $0x728] sm:$0xff]  }
  0xf9   :  { %v5735_v17 = vadd.f32 %v4054_v15, %v4053_v10  ;;  %v4056_v20 = vpop.f32.mrb[2].mxu1  ;;  %v4029_v22 = vpop.f32.mrb[3].mxu0  ;;  %v4842_v10 = vld [vmem:[%s6048_s1 + $0x7e8] sm:$0xff]   ;;  %4412 = vmatpush3.bf16.msra.mxu0 %v4843_v12 }
  0xfa   :  { %v5746_v24 = vadd.f32 %v4029_v22, %v4028_v18  ;;  %v4057_v25 = vpop.f32.mrb[3].mxu1  ;;  %v2793_v5 = vadd.f32 %v5730_v14, %v3648_v3  ;;  %4439 = vmatprep.subr.bf16.mxu1 %v4842_v10  ;;  %v4844_v18 = vld [vmem:[%s6048_s1 + $0x7a8] sm:$0xff]   ;;  %v4874_v10 = vld [vmem:[%s6048_s1 + $0x810] sm:$0xff]  }
  0xfb   :  { %v5751_v27 = vadd.f32 %v4057_v25, %v4056_v20  ;;  %4440 = vmatpush3.bf16.msra.mxu1 %v4844_v18  ;;  %v4876_v12 = vld [vmem:[%s6049_s0 + $0x198] ss:$144 sps:$4 sm:$0xff]   ;;  %v4881_v18 = vld [vmem:[%s6048_s1 + $0x860] sm:$0xff]  }
  0xfc   :  { %v2796_v7 = vadd.f32 %v5746_v24, %v3648_v3  ;;  %v2842_v11 = vadd.f32 %v5735_v17, %v2793_v5  ;;  %v4845_v17 = vld [vmem:[%s6048_s1 + $0x770] sm:$0xff]   ;;  %4441 = vmatprep.subr.bf16.mxu1 %v4846_v21  ;;  %v4885_v21 = vld [vmem:[%s6048_s1 + $0x868] sm:$0xff]  }
  0xfd   :  { %4413 = vmatprep.subr.bf16.mxu0 %v4845_v17  ;;  %v4847_v24 = vld [vmem:[%s6048_s1 + $0x730] sm:$0xff]   ;;  %v4883_v17 = vld [vmem:[%s6048_s1 + $0x820] sm:$0xff]  }
  0xfe   :  { %v4031_v47 = vpop.f32.mrb[4].mxu0  ;;  %v2845_v13 = vadd.f32 %v5751_v27, %v2796_v7  ;;  %v4848_v27 = vld [vmem:[%s6048_s1 + $0x7b0] sm:$0xff]   ;;  %4414 = vmatpush3.bf16.msra.mxu0 %v4847_v24 }
  0xff   :  { %v4032_v50 = vpop.f32.mrb[5].mxu0  ;;  %v4059_v55 = vpop.f32.mrb[4].mxu1  ;;  %4442 = vmatpush3.bf16.msra.mxu1 %v4848_v27  ;;  %4415 = vmatprep.subr.bf16.mxu0 %v4849_v30  ;;  %v4869_v5 = vld [vmem:[%s6049_s0 + $0x190] ss:$144 sps:$4 sm:$0xff]  }
 0x100   :  { %v4033_v52 = vadd.f32 %v4032_v50, %v4031_v47  ;;  %v4034_v53 = vpop.f32.mrb[6].mxu0  ;;  %v4060_v60 = vpop.f32.mrb[5].mxu1  ;;  %4443 = vmatprep.subr.bf16.mxu1 %v4850_v32  ;;  %v4860_v50 = vld [vmem:[%s6048_s1 + $0x8c0] sm:$0xff]   ;;  %v4889_v27 = vld [vmem:[%s6048_s1 + $0x870] sm:$0xff]  }
 0x101   :  { %v4035_v57 = vpop.f32.mrb[7].mxu0  ;;  %v4061_v62 = vadd.f32 %v4060_v60, %v4059_v55  ;;  %v4062_v63 = vpop.f32.mrb[6].mxu1  ;;  %v4862_v55 = vld [vmem:[%s6048_s1 + $0x880] sm:$0xff]   ;;  %v4864_v60 = vld [vmem:[%s6048_s1 + $0x8c8] sm:$0xff]   ;;  %v4890_v30 = vld [vmem:[%s6048_s1 + $0x8f0] sm:$0xff]  }
 0x102   :  { %v4036_v59 = vadd.f32 %v4035_v57, %v4034_v53  ;;  %v4063_v1 = vpop.f32.mrb[7].mxu1  ;;  %v2801_v8 = vadd.f32 %v4033_v52, %v3648_v3  ;;  %4416 = vmatpush3.bf16.msra.mxu0 %v4851_v36  ;;  %v4861_v53 = vld [vmem:[%s6048_s1 + $0x800] sm:$0xff]   ;;  %v4863_v57 = vld [vmem:[%s6048_s1 + $0x848] sm:$0xff]   ;;  %v4891_v32 = vld [vmem:[%s6048_s1 + $0x830] sm:$0xff]  }
 0x103   :  { %v4064_v4 = vadd.f32 %v4063_v1, %v4062_v63  ;;  %4444 = vmatpush3.bf16.msra.mxu1 %v4852_v38  ;;  %4457 = vmatprep.subr.bf16.mxu0 %v4859_v48  ;;  %v4865_v63 = vld [vmem:[%s6048_s1 + $0x808] sm:$0xff]  }
 0x104   :  { %v2804_v9 = vadd.f32 %v4036_v59, %v3648_v3  ;;  %v2850_v14 = vadd.f32 %v4061_v62, %v2801_v8  ;;  %4485 = vmatprep.subr.bf16.mxu1 %v4860_v50  ;;  %v4866_v1 = vld [vmem:[%s6048_s1 + $0x888] sm:$0xff]   ;;  %v4871_v8 = vld [vmem:[%s6048_s1 + $0x8d0] sm:$0xff]  }
 0x105   :  { %3477 = vmatmul.mubr.bf16.vlgmr.msra.gmra.mrb[56].mxu0 %v4853_v40  ;;  %v4899_v50 = vld [vmem:[%s6049_s0 + $0x84] ss:$144 sps:$4 sm:$0xff]  }
 0x106   :  { %v2853_v15 = vadd.f32 %v4064_v4, %v2804_v9  ;;  %3526 = vmatmul.mubr.bf16.vlgmr.msra.gmra.mrb[56].mxu1 %v4856_v43  ;;  %4458 = vmatpush3.bf16.msra.mxu0 %v4861_v53  ;;  %v4867_v4 = vld [vmem:[%s6049_s0 + $0x194] ss:$144 sps:$4 sm:$0xff]   ;;  %v4872_v9 = vld [vmem:[%s6049_s0 + $0x19c] ss:$144 sps:$4 sm:$0xff]   ;;  %v4900_v53 = vld [vmem:[%s6049_s0 + $0x88] ss:$144 sps:$4 sm:$0xff]  }
 0x107   :  { %4486 = vmatpush3.bf16.msra.mxu1 %v4862_v55  ;;  %4459 = vmatprep.subr.bf16.mxu0 %v4863_v57  ;;  %v4903_v55 = vld [vmem:[%s6049_s0 + $0x1a4] ss:$144 sps:$4 sm:$0xff]  }
 0x108   :  { %4487 = vmatprep.subr.bf16.mxu1 %v4864_v60  ;;  %3484 = vmatprep.mubr.bf16.mxu0 %v4867_v4 }
 0x109   :  { %3533 = vmatprep.mubr.bf16.mxu1 %v4872_v9 }
 0x10a   :  { %4460 = vmatpush3.bf16.msra.mxu0 %v4865_v63 }
 0x10b   :  { %4488 = vmatpush3.bf16.msra.mxu1 %v4866_v1  ;;  %4461 = vmatprep.subr.bf16.mxu0 %v4870_v6  ;;  %v4907_v1 = vld [vmem:[%s6049_s0 + $0x1a0] ss:$144 sps:$4 sm:$0xff]  }
 0x10c   :  { %4489 = vmatprep.subr.bf16.mxu1 %v4871_v8 }
 0x10d   :  { %3485 = vmatmul.mubr.bf16.gmra.mrb[60].mxu0 %v4869_v5  ;;  %v4908_v5 = vld [vmem:[%s6049_s0 + $0x1a8] ss:$144 sps:$4 sm:$0xff]  }
 0x10e   :  { %4462 = vmatpush3.bf16.msra.mxu0 %v4874_v10  ;;  %3534 = vmatmul.mubr.bf16.gmra.mrb[60].mxu1 %v4876_v12 }
 0x10f   :  { %3574 = vmatprep.mubr.bf16.mxu0 %v4899_v50 }
 0x116   :  { %v4081_v16 = vpop.f32.mrb[8].mxu0 }
 0x117   :  { %v4109_v19 = vpop.f32.mrb[8].mxu1  ;;  %v4082_v20 = vpop.f32.mrb[9].mxu0 }
 0x118   :  { %v4083_v22 = vadd.f32 %v4082_v20, %v4081_v16  ;;  %v4110_v23 = vpop.f32.mrb[9].mxu1  ;;  %v4084_v26 = vpop.f32.mrb[10].mxu0  ;;  %v4880_v16 = vld [vmem:[%s6048_s1 + $0x898] sm:$0xff]   ;;  %v4884_v20 = vld [vmem:[%s6048_s1 + $0x8a0] sm:$0xff]  }
 0x119   :  { %v4111_v25 = vadd.f32 %v4110_v23, %v4109_v19  ;;  %v4112_v29 = vpop.f32.mrb[10].mxu1  ;;  %v4085_v31 = vpop.f32.mrb[11].mxu0  ;;  %v4882_v19 = vld [vmem:[%s6048_s1 + $0x8e0] sm:$0xff]   ;;  %v4887_v23 = vld [vmem:[%s6048_s1 + $0x828] sm:$0xff]  }
 0x11a   :  { %v2891_v28 = vadd.f32 %v4083_v22, %v2842_v11  ;;  %v4086_v34 = vadd.f32 %v4085_v31, %v4084_v26  ;;  %v4113_v35 = vpop.f32.mrb[11].mxu1  ;;  %v4875_v11 = vld [vmem:[%s6048_s1 + $0x890] sm:$0xff]   ;;  %v4886_v22 = vld [vmem:[%s6048_s1 + $0x8e8] sm:$0xff]  }
 0x11b   :  { %v4114_v37 = vadd.f32 %v4113_v35, %v4112_v29  ;;  %4490 = vmatpush3.bf16.msra.mxu1 %v4875_v11 }
 0x11c   :  { %v5874_v33 = vadd.f32 %v4111_v25, %v2891_v28  ;;  %v2894_v39 = vadd.f32 %v4086_v34, %v2845_v13  ;;  %v4877_v13 = vld [vmem:[%s6048_s1 + $0x858] sm:$0xff]   ;;  %v4888_v25 = vld [vmem:[%s6048_s1 + $0x8a8] sm:$0xff]  }
 0x11d   :  { %4463 = vmatprep.subr.bf16.mxu0 %v4877_v13 }
 0x11e   :  { %v4087_v42 = vpop.f32.mrb[12].mxu0  ;;  %v5891_v44 = vadd.f32 %v4114_v37, %v2894_v39  ;;  %v4892_v37 = vld [vmem:[%s6048_s1 + $0x8b0] sm:$0xff]   ;;  %v4893_v39 = vld [vmem:[%s6048_s1 + $0x878] sm:$0xff]  }
 0x11f   :  { %v4088_v45 = vpop.f32.mrb[13].mxu0  ;;  %v4115_v56 = vpop.f32.mrb[12].mxu1 }
 0x120   :  { %v4089_v47 = vadd.f32 %v4088_v45, %v4087_v42  ;;  %v4090_v49 = vpop.f32.mrb[14].mxu0  ;;  %v4116_v59 = vpop.f32.mrb[13].mxu1  ;;  %v4895_v45 = vld [vmem:[%s6048_s1 + $0x838] sm:$0xff]  }
 0x121   :  { %v4091_v52 = vpop.f32.mrb[15].mxu0  ;;  %v4117_v61 = vadd.f32 %v4116_v59, %v4115_v56  ;;  %v4118_v62 = vpop.f32.mrb[14].mxu1 }
 0x122   :  { %v2899_v51 = vadd.f32 %v4089_v47, %v2850_v14  ;;  %v4092_v54 = vadd.f32 %v4091_v52, %v4090_v49  ;;  %v4119_v0 = vpop.f32.mrb[15].mxu1  ;;  %v4878_v14 = vld [vmem:[%s6048_s1 + $0x8d8] sm:$0xff]   ;;  %v4897_v49 = vld [vmem:[%s6049_s0 + $0x80] ss:$144 sps:$4 sm:$0xff]  }
 0x123   :  { %v4120_v3 = vadd.f32 %v4119_v0, %v4118_v62  ;;  %4491 = vmatprep.subr.bf16.mxu1 %v4878_v14  ;;  %v4896_v47 = vld [vmem:[%s6048_s1 + $0x8b8] sm:$0xff]  }
 0x124   :  { %v2902_v58 = vadd.f32 %v4092_v54, %v2853_v15  ;;  %v5920_v2 = vadd.f32 %v4117_v61, %v2899_v51  ;;  %v4879_v15 = vld [vmem:[%s6048_s1 + $0x818] sm:$0xff]   ;;  %4492 = vmatpush3.bf16.msra.mxu1 %v4880_v16 }
 0x125   :  { %4464 = vmatpush3.bf16.msra.mxu0 %v4879_v15  ;;  %4493 = vmatprep.subr.bf16.mxu1 %v4882_v19 }
 0x126   :  { %v5931_v7 = vadd.f32 %v4120_v3, %v2902_v58  ;;  %4465 = vmatprep.subr.bf16.mxu0 %v4881_v18  ;;  %v4905_v58 = vld [vmem:[%s6049_s0 + $0x1ac] ss:$144 sps:$4 sm:$0xff]  }
 0x128   :  { %4494 = vmatpush3.bf16.msra.mxu1 %v4884_v20 }
 0x129   :  { %4466 = vmatpush3.bf16.msra.mxu0 %v4883_v17  ;;  %4495 = vmatprep.subr.bf16.mxu1 %v4886_v22 }
 0x12a   :  { %4467 = vmatprep.subr.bf16.mxu0 %v4885_v21 }
 0x12c   :  { %4496 = vmatpush3.bf16.msra.mxu1 %v4888_v25 }
 0x12d   :  { %4468 = vmatpush3.bf16.msra.mxu0 %v4887_v23  ;;  %4497 = vmatprep.subr.bf16.mxu1 %v4890_v30 }
 0x12e   :  { %4469 = vmatprep.subr.bf16.mxu0 %v4889_v27 }
 0x130   :  { %4498 = vmatpush3.bf16.msra.mxu1 %v4892_v37 }
 0x131   :  { %4470 = vmatpush3.bf16.msra.mxu0 %v4891_v32 }
 0x132   :  { %4471 = vmatprep.subr.bf16.mxu0 %v4893_v39 }
 0x135   :  { %4472 = vmatpush3.bf16.msra.mxu0 %v4895_v45 }
 0x136   :  { %v4137_v24 = vpop.f32.mrb[16].mxu0 }
 0x137   :  { %v4138_v26 = vpop.f32.mrb[17].mxu0  ;;  %v4165_v28 = vpop.f32.mrb[16].mxu1 }
 0x138   :  { %v4139_v29 = vadd.f32 %v4138_v26, %v4137_v24  ;;  %v4166_v31 = vpop.f32.mrb[17].mxu1  ;;  %v4140_v36 = vpop.f32.mrb[18].mxu0  ;;  %3575 = vmatmul.mubr.bf16.vlgmr.msra.gmra.mrb[64].mxu0 %v4897_v49 }
 0x139   :  { %v4167_v35 = vadd.f32 %v4166_v31, %v4165_v28  ;;  %v4168_v38 = vpop.f32.mrb[18].mxu1  ;;  %v4141_v41 = vpop.f32.mrb[19].mxu0  ;;  %3582 = vmatprep.mubr.bf16.mxu0 %v4903_v55 }
 0x13a   :  { %v2989_v34 = vadd.f32 %v4139_v29, %v5874_v33  ;;  %v4894_v33 = vld [vmem:[%s6048_s1 + $0x8f8] sm:$0xff]   ;;  %v4142_v42 = vadd.f32 %v4141_v41, %v4140_v36  ;;  %v4169_v43 = vpop.f32.mrb[19].mxu1 }
 0x13b   :  { %v4170_v46 = vadd.f32 %v4169_v43, %v4168_v38  ;;  %4499 = vmatprep.subr.bf16.mxu1 %v4894_v33 }
 0x13c   :  { %v3038_v40 = vadd.f32 %v4167_v35, %v2989_v34  ;;  %v2992_v48 = vadd.f32 %v4142_v42, %v5891_v44  ;;  %4500 = vmatpush3.bf16.msra.mxu1 %v4896_v47  ;;  %v4902_v44 = vld [vmem:[%s6049_s0 + $0x8c] ss:$144 sps:$4 sm:$0xff]  }
 0x13d   :  { %3623 = vmatprep.mubr.bf16.mxu1 %v4902_v44 }
 0x13e   :  { %v3041_v51 = vadd.f32 %v4170_v46, %v2992_v48  ;;  %v4143_v52 = vpop.f32.mrb[20].mxu0 }
 0x13f   :  { %v4144_v54 = vpop.f32.mrb[21].mxu0  ;;  %3624 = vmatmul.mubr.bf16.vlgmr.msra.gmra.mrb[64].mxu1 %v4900_v53  ;;  %v4171_v62 = vpop.f32.mrb[20].mxu1 }
 0x140   :  { %v4145_v56 = vadd.f32 %v4144_v54, %v4143_v52  ;;  %v4146_v57 = vpop.f32.mrb[22].mxu0  ;;  %3631 = vmatprep.mubr.bf16.mxu1 %v4905_v58  ;;  %v4172_v0 = vpop.f32.mrb[21].mxu1  ;;  %3583 = vmatmul.mubr.bf16.gmra.mrb[68].mxu0 %v4907_v1 }
 0x141   :  { %v4147_v59 = vpop.f32.mrb[23].mxu0  ;;  %v4173_v3 = vadd.f32 %v4172_v0, %v4171_v62  ;;  %v4174_v4 = vpop.f32.mrb[22].mxu1 }
 0x142   :  { %v2997_v60 = vadd.f32 %v4145_v56, %v5920_v2  ;;  %v4148_v61 = vadd.f32 %v4147_v59, %v4146_v57  ;;  %v4175_v6 = vpop.f32.mrb[23].mxu1 }
 0x143   :  { %v4176_v9 = vadd.f32 %v4175_v6, %v4174_v4 }
 0x144   :  { %v3000_v63 = vadd.f32 %v4148_v61, %v5931_v7  ;;  %v3046_v8 = vadd.f32 %v4173_v3, %v2997_v60 }
 0x146   :  { %v3049_v2 = vadd.f32 %v4176_v9, %v3000_v63 }
 0x147   :  { %3632 = vmatmul.mubr.bf16.gmra.mrb[68].mxu1 %v4908_v5 }
 0x156   :  { %v4193_v10 = vpop.f32.mrb[24].mxu0 }
 0x157   :  { %v4221_v11 = vpop.f32.mrb[24].mxu1  ;;  %v4194_v7 = vpop.f32.mrb[25].mxu0 }
 0x158   :  { %v4195_v12 = vadd.f32 %v4194_v7, %v4193_v10  ;;  %v4222_v13 = vpop.f32.mrb[25].mxu1  ;;  %v4196_v14 = vpop.f32.mrb[26].mxu0 }
 0x159   :  { %v4223_v15 = vadd.f32 %v4222_v13, %v4221_v11  ;;  %v4224_v16 = vpop.f32.mrb[26].mxu1  ;;  %v4197_v18 = vpop.f32.mrb[27].mxu0 }
 0x15a   :  { %v3087_v19 = vadd.f32 %v4195_v12, %v3038_v40  ;;  %v4198_v17 = vadd.f32 %v4197_v18, %v4196_v14  ;;  %v4225_v20 = vpop.f32.mrb[27].mxu1 }
 0x15b   :  { %v4226_v21 = vadd.f32 %v4225_v20, %v4224_v16 }
 0x15c   :  { %v3136_v22 = vadd.f32 %v4223_v15, %v3087_v19  ;;  %v3090_v23 = vadd.f32 %v4198_v17, %v3041_v51 }
 0x15e   :  { %v3139_v24 = vadd.f32 %v4226_v21, %v3090_v23  ;;  %v4199_v25 = vpop.f32.mrb[28].mxu0 }
 0x15f   :  { %v4200_v26 = vpop.f32.mrb[29].mxu0  ;;  %v4227_v32 = vpop.f32.mrb[28].mxu1 }
 0x160   :  { %v4201_v27 = vadd.f32 %v4200_v26, %v4199_v25  ;;  %v4202_v28 = vpop.f32.mrb[30].mxu0  ;;  %v4228_v35 = vpop.f32.mrb[29].mxu1 }
 0x161   :  { %v4203_v29 = vpop.f32.mrb[31].mxu0  ;;  %v4229_v36 = vadd.f32 %v4228_v35, %v4227_v32  ;;  %v4230_v37 = vpop.f32.mrb[30].mxu1 }
 0x162   :  { %v3095_v30 = vadd.f32 %v4201_v27, %v3046_v8  ;;  %v4204_v31 = vadd.f32 %v4203_v29, %v4202_v28  ;;  %v4231_v38 = vpop.f32.mrb[31].mxu1 }
 0x163   :  { %v4232_v40 = vadd.f32 %v4231_v38, %v4230_v37 }
 0x164   :  { %v3098_v34 = vadd.f32 %v4204_v31, %v3049_v2  ;;  %v3144_v39 = vadd.f32 %v4229_v36, %v3095_v30 }
 0x166   :  { %v3147_v41 = vadd.f32 %v4232_v40, %v3098_v34 }
 0x176   :  { %v4249_v33 = vpop.f32.mrb[32].mxu0 }
 0x177   :  { %v4277_v42 = vpop.f32.mrb[32].mxu1  ;;  %v4250_v43 = vpop.f32.mrb[33].mxu0 }
 0x178   :  { %v4251_v45 = vadd.f32 %v4250_v43, %v4249_v33  ;;  %v4278_v46 = vpop.f32.mrb[33].mxu1  ;;  %v4252_v47 = vpop.f32.mrb[34].mxu0 }
 0x179   :  { %v4279_v48 = vadd.f32 %v4278_v46, %v4277_v42  ;;  %v4280_v49 = vpop.f32.mrb[34].mxu1  ;;  %v4253_v50 = vpop.f32.mrb[35].mxu0 }
 0x17a   :  { %v3185_v51 = vadd.f32 %v4251_v45, %v3136_v22  ;;  %v4254_v52 = vadd.f32 %v4253_v50, %v4252_v47  ;;  %v4281_v53 = vpop.f32.mrb[35].mxu1 }
 0x17b   :  { %v4282_v44 = vadd.f32 %v4281_v53, %v4280_v49 }
 0x17c   :  { %v3234_v54 = vadd.f32 %v4279_v48, %v3185_v51  ;;  %v3188_v55 = vadd.f32 %v4254_v52, %v3139_v24 }
 0x17e   :  { %v3237_v56 = vadd.f32 %v4282_v44, %v3188_v55  ;;  %v4255_v57 = vpop.f32.mrb[36].mxu0 }
 0x17f   :  { %v4256_v58 = vpop.f32.mrb[37].mxu0  ;;  %v4283_v0 = vpop.f32.mrb[36].mxu1 }
 0x180   :  { %v4257_v59 = vadd.f32 %v4256_v58, %v4255_v57  ;;  %v4258_v60 = vpop.f32.mrb[38].mxu0  ;;  %v4284_v3 = vpop.f32.mrb[37].mxu1 }
 0x181   :  { %v4259_v61 = vpop.f32.mrb[39].mxu0  ;;  %v4285_v4 = vadd.f32 %v4284_v3, %v4283_v0  ;;  %v4286_v5 = vpop.f32.mrb[38].mxu1 }
 0x182   :  { %v3193_v62 = vadd.f32 %v4257_v59, %v3144_v39  ;;  %v4260_v63 = vadd.f32 %v4259_v61, %v4258_v60  ;;  %v4287_v6 = vpop.f32.mrb[39].mxu1 }
 0x183   :  { %v4288_v9 = vadd.f32 %v4287_v6, %v4286_v5 }
 0x184   :  { %v3196_v1 = vadd.f32 %v4260_v63, %v3147_v41  ;;  %v3242_v8 = vadd.f32 %v4285_v4, %v3193_v62 }
 0x186   :  { %v3245_v2 = vadd.f32 %v4288_v9, %v3196_v1 }
 0x196   :  { %v4305_v10 = vpop.f32.mrb[40].mxu0 }
 0x197   :  { %v4306_v11 = vpop.f32.mrb[41].mxu0  ;;  %v4333_v7 = vpop.f32.mrb[40].mxu1 }
 0x198   :  { %v4307_v12 = vadd.f32 %v4306_v11, %v4305_v10  ;;  %v4308_v13 = vpop.f32.mrb[42].mxu0  ;;  %v4334_v14 = vpop.f32.mrb[41].mxu1 }
 0x199   :  { %v4309_v15 = vpop.f32.mrb[43].mxu0  ;;  %v4335_v18 = vadd.f32 %v4334_v14, %v4333_v7  ;;  %v4336_v19 = vpop.f32.mrb[42].mxu1 }
 0x19a   :  { %v3283_v16 = vadd.f32 %v4307_v12, %v3234_v54  ;;  %v4310_v17 = vadd.f32 %v4309_v15, %v4308_v13  ;;  %v4337_v20 = vpop.f32.mrb[43].mxu1 }
 0x19b   :  { %v4338_v23 = vadd.f32 %v4337_v20, %v4336_v19 }
 0x19c   :  { %v3332_v21 = vadd.f32 %v4335_v18, %v3283_v16  ;;  %v3286_v22 = vadd.f32 %v4310_v17, %v3237_v56 }
 0x19e   :  { %v3335_v24 = vadd.f32 %v4338_v23, %v3286_v22  ;;  %v4311_v25 = vpop.f32.mrb[44].mxu0 }
 0x19f   :  { %v4312_v26 = vpop.f32.mrb[45].mxu0  ;;  %v4339_v32 = vpop.f32.mrb[44].mxu1 }
 0x1a0   :  { %v4313_v27 = vadd.f32 %v4312_v26, %v4311_v25  ;;  %v4314_v28 = vpop.f32.mrb[46].mxu0  ;;  %v4340_v35 = vpop.f32.mrb[45].mxu1 }
 0x1a1   :  { %v4315_v29 = vpop.f32.mrb[47].mxu0  ;;  %v4341_v36 = vadd.f32 %v4340_v35, %v4339_v32  ;;  %v4342_v37 = vpop.f32.mrb[46].mxu1 }
 0x1a2   :  { %v3291_v30 = vadd.f32 %v4313_v27, %v3242_v8  ;;  %v4316_v31 = vadd.f32 %v4315_v29, %v4314_v28  ;;  %v4343_v38 = vpop.f32.mrb[47].mxu1 }
 0x1a3   :  { %v4344_v40 = vadd.f32 %v4343_v38, %v4342_v37 }
 0x1a4   :  { %v3294_v34 = vadd.f32 %v4316_v31, %v3245_v2  ;;  %v3340_v39 = vadd.f32 %v4341_v36, %v3291_v30 }
 0x1a6   :  { %v3343_v41 = vadd.f32 %v4344_v40, %v3294_v34 }
 0x1b6   :  { %v4361_v33 = vpop.f32.mrb[48].mxu0 }
 0x1b7   :  { %v4389_v42 = vpop.f32.mrb[48].mxu1  ;;  %v4362_v43 = vpop.f32.mrb[49].mxu0 }
 0x1b8   :  { %v4363_v45 = vadd.f32 %v4362_v43, %v4361_v33  ;;  %v4390_v46 = vpop.f32.mrb[49].mxu1  ;;  %v4364_v47 = vpop.f32.mrb[50].mxu0 }
 0x1b9   :  { %v4391_v48 = vadd.f32 %v4390_v46, %v4389_v42  ;;  %v4392_v49 = vpop.f32.mrb[50].mxu1  ;;  %v4365_v50 = vpop.f32.mrb[51].mxu0 }
 0x1ba   :  { %v3381_v51 = vadd.f32 %v4363_v45, %v3332_v21  ;;  %v4366_v52 = vadd.f32 %v4365_v50, %v4364_v47  ;;  %v4393_v53 = vpop.f32.mrb[51].mxu1 }
 0x1bb   :  { %v4394_v44 = vadd.f32 %v4393_v53, %v4392_v49 }
 0x1bc   :  { %v3430_v54 = vadd.f32 %v4391_v48, %v3381_v51  ;;  %v3384_v55 = vadd.f32 %v4366_v52, %v3335_v24 }
 0x1be   :  { %v3433_v56 = vadd.f32 %v4394_v44, %v3384_v55  ;;  %v4367_v57 = vpop.f32.mrb[52].mxu0 }
 0x1bf   :  { %v4368_v58 = vpop.f32.mrb[53].mxu0  ;;  %v4395_v0 = vpop.f32.mrb[52].mxu1 }
 0x1c0   :  { %v4369_v59 = vadd.f32 %v4368_v58, %v4367_v57  ;;  %v4370_v60 = vpop.f32.mrb[54].mxu0  ;;  %v4396_v3 = vpop.f32.mrb[53].mxu1 }
 0x1c1   :  { %v4371_v61 = vpop.f32.mrb[55].mxu0  ;;  %v4397_v4 = vadd.f32 %v4396_v3, %v4395_v0  ;;  %v4398_v5 = vpop.f32.mrb[54].mxu1 }
 0x1c2   :  { %v3389_v62 = vadd.f32 %v4369_v59, %v3340_v39  ;;  %v4372_v63 = vadd.f32 %v4371_v61, %v4370_v60  ;;  %v4399_v6 = vpop.f32.mrb[55].mxu1 }
 0x1c3   :  { %v4400_v9 = vadd.f32 %v4399_v6, %v4398_v5 }
 0x1c4   :  { %v3392_v1 = vadd.f32 %v4372_v63, %v3343_v41  ;;  %v3438_v8 = vadd.f32 %v4397_v4, %v3389_v62 }
 0x1c6   :  { %v3441_v2 = vadd.f32 %v4400_v9, %v3392_v1 }
 0x1d8   :  { %v4417_v10 = vpop.f32.mrb[56].mxu0 }
 0x1d9   :  { %v4418_v11 = vpop.f32.mrb[57].mxu0  ;;  %v4445_v7 = vpop.f32.mrb[56].mxu1 }
 0x1da   :  { %v4419_v12 = vadd.f32 %v4418_v11, %v4417_v10  ;;  %v4420_v13 = vpop.f32.mrb[58].mxu0  ;;  %v4446_v14 = vpop.f32.mrb[57].mxu1 }
 0x1db   :  { %v4421_v15 = vpop.f32.mrb[59].mxu0  ;;  %v4447_v18 = vadd.f32 %v4446_v14, %v4445_v7  ;;  %v4448_v19 = vpop.f32.mrb[58].mxu1 }
 0x1dc   :  { %v3479_v16 = vadd.f32 %v4419_v12, %v3430_v54  ;;  %v4422_v17 = vadd.f32 %v4421_v15, %v4420_v13  ;;  %v4449_v20 = vpop.f32.mrb[59].mxu1 }
 0x1dd   :  { %v4450_v23 = vadd.f32 %v4449_v20, %v4448_v19 }
 0x1de   :  { %v3528_v21 = vadd.f32 %v4447_v18, %v3479_v16  ;;  %v3482_v22 = vadd.f32 %v4422_v17, %v3433_v56 }
 0x1e0   :  { %v3531_v24 = vadd.f32 %v4450_v23, %v3482_v22  ;;  %v4423_v25 = vpop.f32.mrb[60].mxu0 }
 0x1e1   :  { %v4424_v26 = vpop.f32.mrb[61].mxu0  ;;  %v4451_v32 = vpop.f32.mrb[60].mxu1 }
 0x1e2   :  { %v4425_v27 = vadd.f32 %v4424_v26, %v4423_v25  ;;  %v4426_v28 = vpop.f32.mrb[62].mxu0  ;;  %v4452_v35 = vpop.f32.mrb[61].mxu1 }
 0x1e3   :  { %v4427_v29 = vpop.f32.mrb[63].mxu0  ;;  %v4453_v36 = vadd.f32 %v4452_v35, %v4451_v32  ;;  %v4454_v37 = vpop.f32.mrb[62].mxu1 }
 0x1e4   :  { %v3487_v30 = vadd.f32 %v4425_v27, %v3438_v8  ;;  %v4428_v31 = vadd.f32 %v4427_v29, %v4426_v28  ;;  %v4455_v38 = vpop.f32.mrb[63].mxu1 }
 0x1e5   :  { %v4456_v40 = vadd.f32 %v4455_v38, %v4454_v37 }
 0x1e6   :  { %v3490_v34 = vadd.f32 %v4428_v31, %v3441_v2  ;;  %v3536_v39 = vadd.f32 %v4453_v36, %v3487_v30 }
 0x1e8   :  { %v3539_v41 = vadd.f32 %v4456_v40, %v3490_v34 }
 0x20b   :  { %v4473_v33 = vpop.f32.mrb[64].mxu0 }
 0x20c   :  { %v4474_v43 = vpop.f32.mrb[65].mxu0 }
 0x20d   :  { %v4475_v45 = vadd.f32 %v4474_v43, %v4473_v33  ;;  %v4476_v47 = vpop.f32.mrb[66].mxu0 }
 0x20e   :  { %v4477_v50 = vpop.f32.mrb[67].mxu0 }
 0x20f   :  { %v3577_v51 = vadd.f32 %v4475_v45, %v3528_v21  ;;  %v4478_v52 = vadd.f32 %v4477_v50, %v4476_v47 }
 0x211   :  { %v3580_v55 = vadd.f32 %v4478_v52, %v3531_v24 }
 0x212   :  { %v4501_v42 = vpop.f32.mrb[64].mxu1 }
 0x213   :  { %v4502_v46 = vpop.f32.mrb[65].mxu1  ;;  %v4479_v57 = vpop.f32.mrb[68].mxu0 }
 0x214   :  { %v4503_v48 = vadd.f32 %v4502_v46, %v4501_v42  ;;  %v4504_v49 = vpop.f32.mrb[66].mxu1  ;;  %v4480_v59 = vpop.f32.mrb[69].mxu0 }
 0x215   :  { %v4505_v53 = vpop.f32.mrb[67].mxu1  ;;  %v4481_v60 = vadd.f32 %v4480_v59, %v4479_v57  ;;  %v4482_v62 = vpop.f32.mrb[70].mxu0 }
 0x216   :  { %v4506_v44 = vadd.f32 %v4505_v53, %v4504_v49  ;;  %v3626_v54 = vadd.f32 %v4503_v48, %v3577_v51  ;;  %v4483_v1 = vpop.f32.mrb[71].mxu0 }
 0x217   :  { %v3585_v3 = vadd.f32 %v4481_v60, %v3536_v39  ;;  %v4484_v4 = vadd.f32 %v4483_v1, %v4482_v62 }
 0x218   :  { %3640 = vst [vmem:[%s6051_s3] sm:$0xff] %v3626_v54  ;;  %v3629_v56 = vadd.f32 %v4506_v44, %v3580_v55 }
 0x219   :  { %v3588_v9 = vadd.f32 %v4484_v4, %v3539_v41 }
 0x21a   :  { %v4507_v58 = vpop.f32.mrb[68].mxu1  ;;  %3641 = vst [vmem:[%s6051_s3 + $0x8] sm:$0xff] %v3629_v56 }
 0x21b   :  { %v4508_v61 = vpop.f32.mrb[69].mxu1 }
 0x21c   :  { %v4509_v63 = vadd.f32 %v4508_v61, %v4507_v58  ;;  %v4510_v0 = vpop.f32.mrb[70].mxu1 }
 0x21d   :  { %v4511_v5 = vpop.f32.mrb[71].mxu1 }
 0x21e   :  { %v4512_v6 = vadd.f32 %v4511_v5, %v4510_v0  ;;  %v3634_v8 = vadd.f32 %v4509_v63, %v3585_v3 }
 0x220   :  { %3642 = vst [vmem:[%s6051_s3 + $0x10] sm:$0xff] %v3634_v8  ;;  %v3637_v2 = vadd.f32 %v4512_v6, %v3588_v9 }
 0x222   :  { %3643 = vst [vmem:[%s6051_s3 + $0x18] sm:$0xff] %v3637_v2 }

</bundles_post_ra>
